<compile_context>
chip_gen: v6e
topology: v6e:2x2x1
jax: 0.10.0
libtpu: 0.0.40
codegen_flags: <defaults>
</compile_context>

<pallas_src>
import jax
import jax.numpy as jnp
from jax.experimental import pallas as pl
from jax.experimental.pallas import tpu as pltpu


def se_kernel(xvec_ref, w1_ref, b1_ref, w2_ref, x_ref, o_ref):
    # conv2d185 (1x1, with bias) on the squeezed vector + sigmoid37:
    #   [1, C_sq] @ [C_sq, C_mid] + [1, C_mid] -> gate row [1, C_mid]
    # bf16 MXU matvec, f32 accumulation, f32 bias add (precision is irrelevant
    # pre-sigmoid; sigmoid saturates).
    pre = jnp.dot(xvec_ref[...].astype(jnp.bfloat16), w1_ref[...],
                  preferred_element_type=jnp.float32) + b1_ref[...]
    scale = jax.nn.sigmoid(pre)                                   # [1, C_mid] f32

    # Fold the gate into this C_out-block of the second conv's weight.
    # Pure-bf16 multiply: no f32 [tn, C_mid] temporary, native on bf16 VPUs.
    w2s = w2_ref[...] * scale.astype(jnp.bfloat16)                # [tn, C_mid] bf16

    # conv2d186 (1x1, no bias), channel-major: bf16 MXU matmul, f32 accumulate.
    # TODO(synk): if the upstream producer can emit x in bf16, pass it through
    # directly (the astype below becomes a no-op) and halve the x HBM read.
    o_ref[...] = jnp.dot(w2s, x_ref[...].astype(jnp.bfloat16),
                         preferred_element_type=jnp.float32)      # [tn, HW] f32


def _dual_tensorcore() -> bool:
    """True on chips with 2 TensorCores per device (v4/v5p megacore, v7x)."""
    try:
        kind = jax.devices()[0].device_kind.lower()
    except Exception:
        return False
    return ("v4" in kind) or ("v5p" in kind) or ("v7" in kind) or ("7x" in kind)


def se_block(x579, x582, w1, b1, w2):
    """x579: [1, C_mid, H, W] f32 (NCHW), x582: [1, C_sq, 1, 1] f32.
    Parameters are stored once at init in kernel-friendly layout/dtype:
      w1: [C_sq, C_mid] bf16   (conv2d185 weight, transposed)
      b1: [C_mid]       f32    (conv2d185 bias)
      w2: [C_out, C_mid] bf16  (conv2d186 weight)"""
    N, Cmid, H, W = x579.shape
    # TODO(synk): channel-major free reshape + gate broadcast assume N == 1
    # (matches the module spec); N > 1 would need a per-sample grid axis.
    assert N == 1
    Csq = x582.shape[1]
    Cout = w2.shape[0]
    HW = H * W

    # Channel-major views — all contiguous reshapes, zero data movement.
    x_cm = x579.reshape(Cmid, HW)            # [1344, 196]
    xvec = x582.reshape(1, Csq)              # [1, 56]
    b1_row = b1.reshape(1, Cmid)             # [1, 1344]

    # Single grid step on single-TC chips (v5e/v6e); split C_out over the two
    # TensorCores on dual-TC chips.  Everything fits VMEM either way.
    if _dual_tensorcore() and Cout % 2 == 0 and (Cout // 2) % 8 == 0:
        n_blk = 2
        # TODO(synk): if the Mosaic dump on v7x shows a serial 2-step loop,
        # switch to dimension_semantics=(pltpu.CORE_PARALLEL,).
        semantics = ("parallel",)
    else:
        n_blk = 1
        semantics = ("arbitrary",)
    tn = Cout // n_blk

    # Advisory cost for XLA's scheduler (main matmul + gate matvec + fold).
    flops = 2 * Cout * Cmid * HW + 2 * Csq * Cmid + Cout * Cmid
    bytes_accessed = (Cmid * HW * 4      # x (f32 in)
                      + Cout * Cmid * 2  # w2 (bf16)
                      + Csq * Cmid * 2   # w1 (bf16)
                      + Cmid * 4         # b1
                      + Csq * 4          # xvec
                      + Cout * HW * 4)   # out (f32)
    cost = pl.CostEstimate(flops=int(flops), transcendentals=int(Cmid),
                           bytes_accessed=int(bytes_accessed))

    out_cm = pl.pallas_call(
        se_kernel,
        out_shape=jax.ShapeDtypeStruct((Cout, HW), jnp.float32),
        grid=(n_blk,),
        in_specs=[
            pl.BlockSpec((1, Csq), lambda i: (0, 0)),      # xvec (resident)
            pl.BlockSpec((Csq, Cmid), lambda i: (0, 0)),   # w1   (resident)
            pl.BlockSpec((1, Cmid), lambda i: (0, 0)),     # b1   (resident)
            pl.BlockSpec((tn, Cmid), lambda i: (i, 0)),    # w2   (split over C_out)
            pl.BlockSpec((Cmid, HW), lambda i: (0, 0)),    # x    (resident)
        ],
        out_specs=pl.BlockSpec((tn, HW), lambda i: (i, 0)),
        compiler_params=pltpu.CompilerParams(dimension_semantics=semantics),
        cost_estimate=cost,
    )(xvec, w1, b1_row, w2, x_cm)

    # [C_out, H*W] -> NCHW [1, C_out, H, W]: free reshape, no transpose.
    return out_cm.reshape(1, Cout, H, W)


if __name__ == "__main__":
    key = jax.random.PRNGKey(0)
    k1, k2, k3, k4, k5 = jax.random.split(key, 5)

    N, H, W = 1, 14, 14
    C_sq, C_mid, C_out = 56, 1344, 224

    # Inputs (match the module's forward signature shapes, f32 as in the spec).
    x579 = jax.random.normal(k1, (N, C_mid, H, W), dtype=jnp.float32)
    x582 = jax.random.normal(k2, (N, C_sq, 1, 1), dtype=jnp.float32)

    # Synthetic deterministic parameters, stored in kernel-friendly layout/dtype:
    # conv2d185: PyTorch weight [1344, 56, 1, 1] -> [C_sq, C_mid], kept bf16.
    w1 = (jax.random.normal(k3, (C_sq, C_mid), dtype=jnp.float32) * 0.05
          ).astype(jnp.bfloat16)
    b1 = jax.random.normal(k4, (C_mid,), dtype=jnp.float32) * 0.05
    # conv2d186: PyTorch weight [224, 1344, 1, 1] -> [C_out, C_mid], kept bf16.
    w2 = (jax.random.normal(k5, (C_out, C_mid), dtype=jnp.float32) * 0.02
          ).astype(jnp.bfloat16)

    se = jax.jit(se_block)
    out = jax.block_until_ready(se(x579, x582, w1, b1, w2))

    # Plain-JAX f32 reference of the original module semantics, using the
    # (bf16-rounded) stored parameters so we isolate kernel error.
    w1_f = w1.astype(jnp.float32)
    w2_f = w2.astype(jnp.float32)
    scale_ref = jax.nn.sigmoid(x582.reshape(N, C_sq) @ w1_f + b1[None, :])  # [1, C_mid]
    y_ref = x579 * scale_ref.reshape(N, C_mid, 1, 1)
    out_ref = jnp.einsum("nchw,oc->nohw", y_ref, w2_f)

    assert out.shape == (N, C_out, H, W)
    assert jnp.allclose(out, out_ref, atol=3e-2, rtol=3e-2), \
        float(jnp.max(jnp.abs(out - out_ref)))

    print("KERNEL_OK")
</pallas_src>

<mosaic_0001>
module attributes {stable_mosaic.version = 11 : i64} {
  func.func @se_kernel(%arg0: i32, %arg1: memref<1x56xf32, #tpu.memory_space<vmem>>, %arg2: memref<56x1344xbf16, #tpu.memory_space<vmem>>, %arg3: memref<1x1344xf32, #tpu.memory_space<vmem>>, %arg4: memref<224x1344xbf16, #tpu.memory_space<vmem>>, %arg5: memref<1344x196xf32, #tpu.memory_space<vmem>>, %arg6: memref<224x196xf32, #tpu.memory_space<vmem>>) attributes {dimension_semantics = [#tpu.dimension_semantics<arbitrary>], iteration_bounds = array<i64: 1>, scalar_prefetch = 0 : i64, scratch_operands = 0 : i64, tpu.core_type = #tpu.core_type<tc>, window_params = [{pipeline_mode = #tpu.pipeline_mode<synchronous>, transform_indices = @transform_0, window_bounds = array<i64: 1, 56>}, {pipeline_mode = #tpu.pipeline_mode<synchronous>, transform_indices = @transform_1, window_bounds = array<i64: 56, 1344>}, {pipeline_mode = #tpu.pipeline_mode<synchronous>, transform_indices = @transform_2, window_bounds = array<i64: 1, 1344>}, {transform_indices = @transform_3, window_bounds = array<i64: 224, 1344>}, {pipeline_mode = #tpu.pipeline_mode<synchronous>, transform_indices = @transform_4, window_bounds = array<i64: 1344, 196>}, {transform_indices = @transform_5, window_bounds = array<i64: 224, 196>}]} {
    %c0 = arith.constant 0 : index
    %c0_0 = arith.constant 0 : index
    %0 = vector.load %arg1[%c0, %c0_0] : memref<1x56xf32, #tpu.memory_space<vmem>>, vector<1x56xf32>
    %1 = arith.truncf %0 : vector<1x56xf32> to vector<1x56xbf16>
    %c0_1 = arith.constant 0 : index
    %c0_2 = arith.constant 0 : index
    %2 = vector.load %arg2[%c0_1, %c0_2] : memref<56x1344xbf16, #tpu.memory_space<vmem>>, vector<56x1344xbf16>
    %cst = arith.constant dense<0.000000e+00> : vector<1x1344xf32>
    %3 = tpu.matmul %1, %2, %cst {dimension_numbers = #tpu.dot_dimension_numbers<[1], [0], [0], [1], [0, 0, 1, 1], [], []>} : vector<1x56xbf16>, vector<56x1344xbf16>, vector<1x1344xf32> -> vector<1x1344xf32>
    %c0_3 = arith.constant 0 : index
    %c0_4 = arith.constant 0 : index
    %4 = vector.load %arg3[%c0_3, %c0_4] : memref<1x1344xf32, #tpu.memory_space<vmem>>, vector<1x1344xf32>
    %5 = arith.addf %3, %4 : vector<1x1344xf32>
    %6 = arith.negf %5 : vector<1x1344xf32>
    %7 = math.exp %6 : vector<1x1344xf32>
    %cst_5 = arith.constant 1.000000e+00 : f32
    %8 = vector.broadcast %cst_5 : f32 to vector<1x1344xf32>
    %9 = arith.addf %8, %7 : vector<1x1344xf32>
    %10 = arith.divf %8, %9 : vector<1x1344xf32>
    %c0_6 = arith.constant 0 : index
    %c0_7 = arith.constant 0 : index
    %11 = vector.load %arg4[%c0_6, %c0_7] : memref<224x1344xbf16, #tpu.memory_space<vmem>>, vector<224x1344xbf16>
    %12 = arith.truncf %10 : vector<1x1344xf32> to vector<1x1344xbf16>
    %13 = vector.broadcast %12 : vector<1x1344xbf16> to vector<224x1344xbf16>
    %14 = arith.mulf %11, %13 : vector<224x1344xbf16>
    %c0_8 = arith.constant 0 : index
    %c0_9 = arith.constant 0 : index
    %15 = vector.load %arg5[%c0_8, %c0_9] : memref<1344x196xf32, #tpu.memory_space<vmem>>, vector<1344x196xf32>
    %16 = arith.truncf %15 : vector<1344x196xf32> to vector<1344x196xbf16>
    %cst_10 = arith.constant dense<0.000000e+00> : vector<224x196xf32>
    %17 = tpu.matmul %14, %16, %cst_10 {dimension_numbers = #tpu.dot_dimension_numbers<[1], [0], [0], [1], [0, 0, 1, 1], [], []>} : vector<224x1344xbf16>, vector<1344x196xbf16>, vector<224x196xf32> -> vector<224x196xf32>
    %c0_11 = arith.constant 0 : index
    %c0_12 = arith.constant 0 : index
    %18 = vector.load %arg6[%c0_11, %c0_12] : memref<224x196xf32, #tpu.memory_space<vmem>>, vector<224x196xf32>
    tpu.vector_store %arg6[%c0_11, %c0_12], %17 {strides = array<i32>} : memref<224x196xf32, #tpu.memory_space<vmem>>, vector<224x196xf32>,
    return
  }
  func.func @transform_0(%arg0: i32) -> (i32, i32) {
    %c0_i32 = arith.constant 0 : i32
    %c0_i32_0 = arith.constant 0 : i32
    %c0_i32_1 = arith.constant 0 : i32
    return %c0_i32, %c0_i32_0 : i32, i32
  }
  func.func @transform_1(%arg0: i32) -> (i32, i32) {
    %c0_i32 = arith.constant 0 : i32
    %c0_i32_0 = arith.constant 0 : i32
    %c0_i32_1 = arith.constant 0 : i32
    return %c0_i32, %c0_i32_0 : i32, i32
  }
  func.func @transform_2(%arg0: i32) -> (i32, i32) {
    %c0_i32 = arith.constant 0 : i32
    %c0_i32_0 = arith.constant 0 : i32
    %c0_i32_1 = arith.constant 0 : i32
    return %c0_i32, %c0_i32_0 : i32, i32
  }
  func.func @transform_3(%arg0: i32) -> (i32, i32) {
    %c0_i32 = arith.constant 0 : i32
    %c0_i32_0 = arith.constant 0 : i32
    return %arg0, %c0_i32 : i32, i32
  }
  func.func @transform_4(%arg0: i32) -> (i32, i32) {
    %c0_i32 = arith.constant 0 : i32
    %c0_i32_0 = arith.constant 0 : i32
    %c0_i32_1 = arith.constant 0 : i32
    return %c0_i32, %c0_i32_0 : i32, i32
  }
  func.func @transform_5(%arg0: i32) -> (i32, i32) {
    %c0_i32 = arith.constant 0 : i32
    %c0_i32_0 = arith.constant 0 : i32
    return %arg0, %c0_i32 : i32, i32
  }
}

</mosaic_0001>

<bundles_post_ra>
// kernel: se_block.1
= control target key start
LH: loop header
LB: loop body
LE: loop exit
PB: predicated region body
PF: predicated region fallthrough
CT: control target
= control target key end

     0   :  { %vm324_vm0 = vcmask 1043456   ;;  %v6593_v2 = vmov 0   ;;  %vm320_vm1 = vcmask 457728   ;;  %v3907_v48 = vmov 0.0   ;;  %s6587_s1 = inlined_call_operand.vmem [shape: bf16[56,1344], index: 1, kind: input, shape index: {}]   ;;  %s6588_s0 = inlined_call_operand.vmem [shape: f32[1,56], index: 0, kind: input, shape index: {}]   ;;  %s6589_s4 = inlined_call_operand.vmem [shape: f32[1344,196], index: 4, kind: input, shape index: {}]   ;;  %s6590_s2 = inlined_call_operand.vmem [shape: f32[1,1344], index: 2, kind: input, shape index: {}]   ;;  %s6591_s3 = inlined_call_operand.vmem [shape: bf16[224,1344], index: 3, kind: input, shape index: {}]   ;;  %s6592_s5 = inlined_call_operand.vmem [shape: f32[224,196], index: 5, kind: output, shape index: {}]  }
   0x1   :  { %v59_v0 = vld [vmem:[%s6587_s1 + $0x108] sm:$0xff]  ;;  %v60_v1 = vld [vmem:[%s6587_s1 + $0x110] sm:$0xff]  ;;  %390 = vmatprep.mubr.bf16.mxu0 %v6593_v2  ;;  %431 = vmatprep.mubr.bf16.mxu1 %v6593_v2  ;;  %v3812_v12 = vld [vmem:[%s6587_s1 + $0xb8] ss:$44 sps:$4 sm:$0xff]   ;;  %vm3908_vm2 = vmmov 0   ;;  %vm2401_vm3 = vcmask 523264  }
   0x2   :  { %v3577_v3 = vcombine.high %v59_v0, %v59_v0  ;;  %v3579_v4 = vcombine.high %v60_v1, %v60_v1  ;;  %v3576_v5 = vcombine.low %v59_v0, %v59_v0  ;;  %v3578_v6 = vcombine.low %v60_v1, %v60_v1  ;;  %v3807_v7 = vld [vmem:[%s6587_s1 + $0xb4] ss:$44 sps:$4 sm:$0xff]   ;;  %v3809_v8 = vld [vmem:[%s6587_s1 + $0xbc] ss:$44 sps:$4 sm:$0xff]   ;;  %v3815_v14 = vld [vmem:[%s6587_s1 + $0x64] ss:$44 sps:$4 sm:$0xff]  }
   0x3   :  { %v3811_v11 = vld [vmem:[%s6587_s1 + $0xb0] ss:$44 sps:$4 sm:$0xff]   ;;  %v3817_v15 = vld [vmem:[%s6587_s1 + $0x58] ss:$44 sps:$4 sm:$0xff]   ;;  %v3818_v16 = vld [vmem:[%s6587_s1 + $0x60] ss:$44 sps:$4 sm:$0xff]  }
   0x4   :  { %3587 = vmatprep.subr.msk.bf16.mxu0 %vm324_vm0, %v3577_v3  ;;  %3589 = vmatprep.subr.msk.bf16.mxu1 %vm324_vm0, %v3579_v4  ;;  %v326_v9 = vsel %vm324_vm0, %v3576_v5, 0  ;;  %v332_v10 = vsel %vm324_vm0, %v3578_v6, 0  ;;  %v3813_v13 = vld [vmem:[%s6587_s1 + $0x5c] ss:$44 sps:$4 sm:$0xff]   ;;  %v3819_v17 = vld [vmem:[%s6587_s1 + $0x4] ss:$44 sps:$4 sm:$0xff]  }
   0x5   :  { %367 = vmatpush1.bf16.msra.mxu0 %v326_v9  ;;  %408 = vmatpush1.bf16.msra.mxu1 %v332_v10  ;;  %v3821_v18 = vld [vmem:[%s6587_s1 + $0xc] ss:$44 sps:$4 sm:$0xff]   ;;  %v62_v21 = vld [vmem:[%s6587_s1 + $0x120] sm:$0xff]  ;;  %v3824_v22 = vld [vmem:[%s6587_s1 + $0x8] ss:$44 sps:$4 sm:$0xff]   ;;  %vm3483_vm4 = vcmask 556032  }
   0x6   :  { %368 = vmatprep.subr.bf16.mxu0 %v3807_v7  ;;  %409 = vmatprep.subr.bf16.mxu1 %v3809_v8  ;;  %v61_v19 = vld [vmem:[%s6587_s1 + $0x118] sm:$0xff]  ;;  %v3823_v20 = vld [vmem:[%s6587_s1] ss:$44 sps:$4 sm:$0xff]   ;;  %v3583_v26 = vcombine.high %v62_v21, %v62_v21  ;;  %v3582_v27 = vcombine.low %v62_v21, %v62_v21  ;;  %v3831_v31 = vld [vmem:[%s6587_s1 + $0xc4] ss:$44 sps:$4 sm:$0xff]  }
   0x7   :  { %v21_v23 = vld [vmem:[%s6588_s0] sm:$0x1]  ;;  %v3581_v24 = vcombine.high %v61_v19, %v61_v19  ;;  %v3580_v25 = vcombine.low %v61_v19, %v61_v19  ;;  %v3834_v32 = vld [vmem:[%s6587_s1 + $0xcc] ss:$44 sps:$4 sm:$0xff]   ;;  %v3832_v34 = vld [vmem:[%s6587_s1 + $0xc8] ss:$44 sps:$4 sm:$0xff]  }
   0x8   :  { %v3996_v28 = vpack.c.bf16 %v21_v23, %v21_v23  ;;  %v344_v30 = vsel %vm324_vm0, %v3582_v27, 0  ;;  %v3829_v33 = vld [vmem:[%s6587_s1 + $0xc0] ss:$44 sps:$4 sm:$0xff]   ;;  %v3835_v37 = vld [vmem:[%s6587_s1 + $0x68] ss:$44 sps:$4 sm:$0xff]   ;;  %v1158_v58 = vld [vmem:[%s6589_s4 + $0xf8] sm:$0xff] }
   0x9   :  { %369 = vmatpush1.bf16.msra.mxu0 %v3811_v11  ;;  %410 = vmatpush1.bf16.msra.mxu1 %v3812_v12  ;;  %v338_v29 = vsel %vm324_vm0, %v3580_v25, 0  ;;  %v3837_v35 = vld [vmem:[%s6587_s1 + $0x6c] ss:$44 sps:$4 sm:$0xff]   ;;  %v3840_v36 = vld [vmem:[%s6587_s1 + $0x74] ss:$44 sps:$4 sm:$0xff]  }
   0xa   :  { %370 = vmatprep.subr.bf16.mxu0 %v3813_v13  ;;  %411 = vmatprep.subr.bf16.mxu1 %v3815_v14  ;;  %v3838_v38 = vld [vmem:[%s6587_s1 + $0x70] ss:$44 sps:$4 sm:$0xff]   ;;  %v3843_v39 = vld [vmem:[%s6587_s1 + $0x14] ss:$44 sps:$4 sm:$0xff]   ;;  %v63_v41 = vld [vmem:[%s6587_s1 + $0x128] sm:$0xff] }
   0xb   :  { %v3846_v40 = vld [vmem:[%s6587_s1 + $0x1c] ss:$44 sps:$4 sm:$0xff]   ;;  %v3844_v43 = vld [vmem:[%s6587_s1 + $0x18] ss:$44 sps:$4 sm:$0xff]   ;;  %v3585_v44 = vcombine.high %v63_v41, %v63_v41  ;;  %v3584_v45 = vcombine.low %v63_v41, %v63_v41  ;;  %v3849_v46 = vld [vmem:[%s6587_s1 + $0x130] ss:$0 sps:$4 sm:$0xff]  }
   0xc   :  { %v3841_v42 = vld [vmem:[%s6587_s1 + $0x10] ss:$44 sps:$4 sm:$0xff]   ;;  %v356_v49 = vsel %vm324_vm0, %v3849_v46, 0  ;;  %v3852_v50 = vld [vmem:[%s6587_s1 + $0xd4] ss:$44 sps:$4 sm:$0xff]   ;;  %v1156_v57 = vld [vmem:[%s6589_s4 + $0xe8] sm:$0xff] }
   0xd   :  { %371 = vmatpush1.bf16.msra.mxu0 %v3817_v15  ;;  %412 = vmatpush1.bf16.msra.mxu1 %v3818_v16  ;;  %v350_v47 = vsel %vm324_vm0, %v3584_v45, 0  ;;  %v3850_v51 = vld [vmem:[%s6587_s1 + $0xd0] ss:$44 sps:$4 sm:$0xff]   ;;  %v3853_v52 = vld [vmem:[%s6587_s1 + $0xd8] ss:$44 sps:$4 sm:$0xff]   ;;  %v1220_v59 = vld [vmem:[%s6589_s4 + $0x2e8] sm:$0xff]  ;;  %v1478_v1 = vpack.c.bf16 %v1158_v58, %v1156_v57 }
   0xe   :  { %372 = vmatprep.subr.bf16.mxu0 %v3819_v17  ;;  %413 = vmatprep.subr.bf16.mxu1 %v3821_v18  ;;  %v3856_v53 = vld [vmem:[%s6587_s1 + $0x7c] ss:$44 sps:$4 sm:$0xff]   ;;  %v3854_v54 = vld [vmem:[%s6587_s1 + $0x78] ss:$44 sps:$4 sm:$0xff]   ;;  %v3857_v55 = vld [vmem:[%s6587_s1 + $0x80] ss:$44 sps:$4 sm:$0xff]  }
   0xf   :  { %v3860_v56 = vld [vmem:[%s6587_s1 + $0x24] ss:$44 sps:$4 sm:$0xff]   ;;  %v1222_v60 = vld [vmem:[%s6589_s4 + $0x2f8] sm:$0xff]  ;;  %v3858_v61 = vld [vmem:[%s6587_s1 + $0x20] ss:$44 sps:$4 sm:$0xff]  }
  0x10   :  { %v3861_v62 = vld [vmem:[%s6587_s1 + $0x28] ss:$44 sps:$4 sm:$0xff]   ;;  %v1155_v63 = vld [vmem:[%s6589_s4 + $0xe0] sm:$0xff]  ;;  %v1510_v3 = vpack.c.bf16 %v1222_v60, %v1220_v59  ;;  %v1154_v7 = vld [vmem:[%s6589_s4 + $0xd8] sm:$0xff] }
  0x11   :  { %373 = vmatpush1.bf16.msra.mxu0 %v3823_v20  ;;  %414 = vmatpush1.bf16.msra.mxu1 %v3824_v22  ;;  %v1157_v0 = vld [vmem:[%s6589_s4 + $0xf0] sm:$0xff]  ;;  %v1219_v4 = vld [vmem:[%s6589_s4 + $0x2e0] sm:$0xff]  ;;  %v1152_v6 = vld [vmem:[%s6589_s4 + $0xc8] sm:$0xff] }
  0x12   :  { %3591 = vmatprep.subr.msk.bf16.mxu0 %vm324_vm0, %v3581_v24  ;;  %3593 = vmatprep.subr.msk.bf16.mxu1 %vm324_vm0, %v3583_v26  ;;  %v1221_v5 = vld [vmem:[%s6589_s4 + $0x2f0] sm:$0xff]  ;;  %v1216_v8 = vld [vmem:[%s6589_s4 + $0x2c8] sm:$0xff]  ;;  %v1218_v9 = vld [vmem:[%s6589_s4 + $0x2d8] sm:$0xff]  ;;  %v1477_v10 = vpack.c.bf16 %v1157_v0, %v1155_v63  ;;  %v1476_v14 = vpack.c.bf16 %v1154_v7, %v1152_v6 }
  0x13   :  { %v1509_v11 = vpack.c.bf16 %v1221_v5, %v1219_v4  ;;  %v1151_v12 = vld [vmem:[%s6589_s4 + $0xc0] sm:$0xff]  ;;  %v1153_v13 = vld [vmem:[%s6589_s4 + $0xd0] sm:$0xff]  ;;  %v1508_v15 = vpack.c.bf16 %v1218_v9, %v1216_v8  ;;  %v1148_v18 = vld [vmem:[%s6589_s4 + $0xa8] sm:$0xff] }
  0x14   :  { %3588 = vmatmul.mubr.msk.bf16.vlgmr.msra.gmra.mxu0 %vm320_vm1, %v3996_v28  ;;  %3590 = vmatmul.mubr.msk.bf16.vlgmr.msra.gmra.mxu1 %vm320_vm1, %v3996_v28  ;;  %v1215_v16 = vld [vmem:[%s6589_s4 + $0x2c0] sm:$0xff]  ;;  %v1217_v17 = vld [vmem:[%s6589_s4 + $0x2d0] sm:$0xff]  ;;  %v1150_v19 = vld [vmem:[%s6589_s4 + $0xb8] sm:$0xff]  ;;  %v1475_v22 = vpack.c.bf16 %v1153_v13, %v1151_v12 }
  0x15   :  { %449 = vmatpush1.bf16.msra.mxu0 %v338_v29  ;;  %490 = vmatpush1.bf16.msra.mxu1 %v344_v30  ;;  %v1212_v20 = vld [vmem:[%s6589_s4 + $0x2a8] sm:$0xff]  ;;  %v1214_v21 = vld [vmem:[%s6589_s4 + $0x2b8] sm:$0xff]  ;;  %v1507_v23 = vpack.c.bf16 %v1217_v17, %v1215_v16  ;;  %v1147_v24 = vld [vmem:[%s6589_s4 + $0xa0] sm:$0xff]  ;;  %v1474_v26 = vpack.c.bf16 %v1150_v19, %v1148_v18 }
  0x16   :  { %450 = vmatprep.subr.bf16.mxu0 %v3831_v31  ;;  %491 = vmatprep.subr.bf16.mxu1 %v3834_v32  ;;  %v1149_v25 = vld [vmem:[%s6589_s4 + $0xb0] sm:$0xff]  ;;  %v1506_v27 = vpack.c.bf16 %v1214_v21, %v1212_v20  ;;  %v1144_v30 = vld [vmem:[%s6589_s4 + $0x88] sm:$0xff]  ;;  %v1146_v31 = vld [vmem:[%s6589_s4 + $0x98] sm:$0xff] }
  0x17   :  { %472 = vmatprep.mubr.bf16.mxu0 %v6593_v2  ;;  %513 = vmatprep.mubr.bf16.mxu1 %v6593_v2  ;;  %v1213_v29 = vld [vmem:[%s6589_s4 + $0x2b0] sm:$0xff]  ;;  %v1208_v32 = vld [vmem:[%s6589_s4 + $0x288] sm:$0xff]  ;;  %v1142_v45 = vld [vmem:[%s6589_s4 + $0x78] sm:$0xff] }
  0x18   :  { %v1209_v41 = vld [vmem:[%s6589_s4 + $0x290] sm:$0xff]  ;;  %v1138_v57 = vld [vmem:[%s6589_s4 + $0x58] sm:$0xff]  ;;  %v1200_v58 = vld [vmem:[%s6589_s4 + $0x248] sm:$0xff] }
  0x19   :  { %451 = vmatpush1.bf16.msra.mxu0 %v3829_v33  ;;  %492 = vmatpush1.bf16.msra.mxu1 %v3832_v34  ;;  %v1210_v33 = vld [vmem:[%s6589_s4 + $0x298] sm:$0xff]  ;;  %v1473_v34 = vpack.c.bf16 %v1149_v25, %v1147_v24  ;;  %v1135_v60 = vld [vmem:[%s6589_s4 + $0x40] sm:$0xff]  ;;  %v1132_v5 = vld [vmem:[%s6589_s4 + $0x28] sm:$0xff] }
  0x1a   :  { %452 = vmatprep.subr.bf16.mxu0 %v3837_v35  ;;  %493 = vmatprep.subr.bf16.mxu1 %v3840_v36  ;;  %v1143_v36 = vld [vmem:[%s6589_s4 + $0x80] sm:$0xff]  ;;  %v1134_v6 = vld [vmem:[%s6589_s4 + $0x38] sm:$0xff]  ;;  %v1196_v7 = vld [vmem:[%s6589_s4 + $0x228] sm:$0xff] }
  0x1b   :  { %v1466_v8 = vpack.c.bf16 %v1134_v6, %v1132_v5  ;;  %v1131_v9 = vld [vmem:[%s6589_s4 + $0x20] sm:$0xff]  ;;  %v1128_v17 = vld [vmem:[%s6589_s4 + $0x8] sm:$0xff]  ;;  %v1130_v18 = vld [vmem:[%s6589_s4 + $0x18] sm:$0xff] }
  0x1c   :  { %v1192_v19 = vld [vmem:[%s6589_s4 + $0x208] sm:$0xff]  ;;  %v1464_v20 = vpack.c.bf16 %v1130_v18, %v1128_v17  ;;  %v1127_v21 = vld [vmem:[%s6589_s4] sm:$0xff] }
  0x1d   :  { %453 = vmatpush1.bf16.msra.mxu0 %v3835_v37  ;;  %494 = vmatpush1.bf16.msra.mxu1 %v3838_v38  ;;  %v1472_v37 = vpack.c.bf16 %v1146_v31, %v1144_v30  ;;  %v1145_v38 = vld [vmem:[%s6589_s4 + $0x90] sm:$0xff]  ;;  %v1190_v30 = vld [vmem:[%s6589_s4 + $0x1f8] sm:$0xff]  ;;  %v1252_v31 = vld [vmem:[%s6589_s4 + $0x3e8] sm:$0xff] }
  0x1e   :  { %454 = vmatprep.subr.bf16.mxu0 %v3843_v39  ;;  %495 = vmatprep.subr.bf16.mxu1 %v3846_v40  ;;  %v1504_v39 = vpack.c.bf16 %v1210_v33, %v1208_v32  ;;  %v1207_v40 = vld [vmem:[%s6589_s4 + $0x280] sm:$0xff] }
  0x1f   :  { %v1187_v33 = vld [vmem:[%s6589_s4 + $0x1e0] sm:$0xff] }
  0x20   :  { %v1175_v6 = vld [vmem:[%s6589_s4 + $0x180] sm:$0xff] }
  0x21   :  { %455 = vmatpush1.bf16.msra.mxu0 %v3841_v42  ;;  %496 = vmatpush1.bf16.msra.mxu1 %v3844_v43  ;;  %v1471_v42 = vpack.c.bf16 %v1145_v38, %v1143_v36  ;;  %v1503_v43 = vpack.c.bf16 %v1209_v41, %v1207_v40  ;;  %v1251_v38 = vld [vmem:[%s6589_s4 + $0x3e0] sm:$0xff]  ;;  %v1184_v41 = vld [vmem:[%s6589_s4 + $0x1c8] sm:$0xff] }
  0x22   :  { %3595 = vmatprep.subr.msk.bf16.mxu0 %vm324_vm0, %v3585_v44  ;;  %3788 = vmatprep.subr.bf16.mxu1 %v3907_v48  ;;  %v1140_v44 = vld [vmem:[%s6589_s4 + $0x68] sm:$0xff]  ;;  %v1171_v18 = vld [vmem:[%s6589_s4 + $0x160] sm:$0xff] }
  0x23   :  { %v1470_v46 = vpack.c.bf16 %v1142_v45, %v1140_v44  ;;  %v1183_v45 = vld [vmem:[%s6589_s4 + $0x1c0] sm:$0xff] }
  0x24   :  { %3592 = vmatmul.mubr.msk.bf16.vlgmr.msra.gmra.mxu0 %vm320_vm1, %v3996_v28  ;;  %3594 = vmatmul.mubr.msk.bf16.vlgmr.msra.gmra.mxu1 %vm320_vm1, %v3996_v28 }
  0x25   :  { %531 = vmatpush1.bf16.msra.mxu0 %v350_v47  ;;  %3789 = vmatpush3.bf16.msra.mxu1 %v356_v49  ;;  %v1204_v47 = vld [vmem:[%s6589_s4 + $0x268] sm:$0xff]  ;;  %v1139_v49 = vld [vmem:[%s6589_s4 + $0x60] sm:$0xff] }
  0x26   :  { %532 = vmatprep.subr.bf16.mxu0 %v3852_v50  ;;  %3790 = vmatprep.subr.bf16.mxu1 %v3907_v48  ;;  %v1141_v50 = vld [vmem:[%s6589_s4 + $0x70] sm:$0xff] }
  0x27   :  { %554 = vmatprep.mubr.bf16.mxu0 %v6593_v2  ;;  %3796 = vmatprep.mubr.msk.bf16.mxu1 %vm3908_vm2, %v3907_v48 }
  0x29   :  { %533 = vmatpush1.bf16.msra.mxu0 %v3850_v51  ;;  %3791 = vmatpush3.bf16.msra.mxu1 %v3853_v52  ;;  %v1203_v52 = vld [vmem:[%s6589_s4 + $0x260] sm:$0xff] }
  0x2a   :  { %534 = vmatprep.subr.bf16.mxu0 %v3856_v53  ;;  %3792 = vmatprep.subr.bf16.mxu1 %v3907_v48  ;;  %v1469_v53 = vpack.c.bf16 %v1141_v50, %v1139_v49  ;;  %v1247_v50 = vld [vmem:[%s6589_s4 + $0x3c0] sm:$0xff] }
  0x2d   :  { %535 = vmatpush1.bf16.msra.mxu0 %v3854_v54  ;;  %3793 = vmatpush3.bf16.msra.mxu1 %v3857_v55  ;;  %v1205_v54 = vld [vmem:[%s6589_s4 + $0x270] sm:$0xff] }
  0x2e   :  { %536 = vmatprep.subr.bf16.mxu0 %v3860_v56  ;;  %3794 = vmatprep.subr.bf16.mxu1 %v3907_v48  ;;  %v1206_v48 = vld [vmem:[%s6589_s4 + $0x278] sm:$0xff]  ;;  %v1501_v55 = vpack.c.bf16 %v1205_v54, %v1203_v52  ;;  %v1136_v56 = vld [vmem:[%s6589_s4 + $0x48] sm:$0xff] }
  0x2f   :  { %v1502_v51 = vpack.c.bf16 %v1206_v48, %v1204_v47  ;;  %v1468_v59 = vpack.c.bf16 %v1138_v57, %v1136_v56  ;;  %v1250_v47 = vld [vmem:[%s6589_s4 + $0x3d8] sm:$0xff]  ;;  %v1179_v57 = vld [vmem:[%s6589_s4 + $0x1a0] sm:$0xff] }
  0x30   :  { %v1182_v54 = vld [vmem:[%s6589_s4 + $0x1b8] sm:$0xff] }
  0x31   :  { %537 = vmatpush1.bf16.msra.mxu0 %v3858_v61  ;;  %3795 = vmatpush3.bf16.msra.mxu1 %v3861_v62  ;;  %v1137_v61 = vld [vmem:[%s6589_s4 + $0x50] sm:$0xff]  ;;  %v1202_v62 = vld [vmem:[%s6589_s4 + $0x258] sm:$0xff] }
  0x32   :  { %2444 = vmatprep.subr.bf16.mxu0 %v1478_v1  ;;  %2617 = vmatprep.subr.bf16.mxu1 %v1510_v3  ;;  %v1467_v63 = vpack.c.bf16 %v1137_v61, %v1135_v60  ;;  %v1500_v0 = vpack.c.bf16 %v1202_v62, %v1200_v58  ;;  %v1199_v1 = vld [vmem:[%s6589_s4 + $0x240] sm:$0xff]  ;;  %v1201_v3 = vld [vmem:[%s6589_s4 + $0x250] sm:$0xff] }
  0x33   :  { %v1499_v4 = vpack.c.bf16 %v1201_v3, %v1199_v1  ;;  %v1181_v58 = vld [vmem:[%s6589_s4 + $0x1b0] sm:$0xff]  ;;  %v1243_v62 = vld [vmem:[%s6589_s4 + $0x3a0] sm:$0xff]  ;;  %v1176_v1 = vld [vmem:[%s6589_s4 + $0x188] sm:$0xff] }
  0x34   :  { %3596 = vmatmul.mubr.msk.bf16.vlgmr.msra.gmra.mxu0 %vm320_vm1, %v3996_v28  ;;  %3797 = vmatmul.mubr.msk.bf16.vlgmr.msra.gmra.mxu1 %vm320_vm1, %v3996_v28  ;;  %v1211_v28 = vld [vmem:[%s6589_s4 + $0x2a0] sm:$0xff]  ;;  %v1489_v60 = vpack.c.bf16 %v1181_v58, %v1179_v57  ;;  %v1178_v3 = vld [vmem:[%s6589_s4 + $0x198] sm:$0xff] }
  0x35   :  { %2445 = vmatpush1.bf16.msra.mxu0 %v1477_v10  ;;  %2618 = vmatpush1.bf16.msra.mxu1 %v1509_v11  ;;  %v1505_v35 = vpack.c.bf16 %v1213_v29, %v1211_v28  ;;  %v1133_v10 = vld [vmem:[%s6589_s4 + $0x30] sm:$0xff]  ;;  %v1198_v11 = vld [vmem:[%s6589_s4 + $0x238] sm:$0xff]  ;;  %v1188_v29 = vld [vmem:[%s6589_s4 + $0x1e8] sm:$0xff]  ;;  %v1488_v5 = vpack.c.bf16 %v1178_v3, %v1176_v1 }
  0x36   :  { %2446 = vmatprep.subr.bf16.mxu0 %v1476_v14  ;;  %2619 = vmatprep.subr.bf16.mxu1 %v1508_v15  ;;  %v1465_v12 = vpack.c.bf16 %v1133_v10, %v1131_v9  ;;  %v1498_v13 = vpack.c.bf16 %v1198_v11, %v1196_v7  ;;  %v1195_v14 = vld [vmem:[%s6589_s4 + $0x220] sm:$0xff]  ;;  %v1197_v15 = vld [vmem:[%s6589_s4 + $0x230] sm:$0xff]  ;;  %v1494_v32 = vpack.c.bf16 %v1190_v30, %v1188_v29  ;;  %v1348_v1 = vld [vmem:[%s6589_s4 + $0x6e8] sm:$0xff] }
  0x37   :  { %v1497_v16 = vpack.c.bf16 %v1197_v15, %v1195_v14  ;;  %v1177_v7 = vld [vmem:[%s6589_s4 + $0x190] sm:$0xff]  ;;  %v1239_v11 = vld [vmem:[%s6589_s4 + $0x380] sm:$0xff]  ;;  %v1172_v14 = vld [vmem:[%s6589_s4 + $0x168] sm:$0xff] }
  0x38   :  { %v1487_v9 = vpack.c.bf16 %v1177_v7, %v1175_v6  ;;  %v1174_v15 = vld [vmem:[%s6589_s4 + $0x178] sm:$0xff]  ;;  %v1167_v30 = vld [vmem:[%s6589_s4 + $0x140] sm:$0xff] }
  0x39   :  { %2447 = vmatpush1.bf16.msra.mxu0 %v1475_v22  ;;  %2620 = vmatpush1.bf16.msra.mxu1 %v1507_v23  ;;  %v1129_v22 = vld [vmem:[%s6589_s4 + $0x10] sm:$0xff]  ;;  %v1194_v23 = vld [vmem:[%s6589_s4 + $0x218] sm:$0xff]  ;;  %v1486_v17 = vpack.c.bf16 %v1174_v15, %v1172_v14 }
  0x3a   :  { %2448 = vmatprep.subr.bf16.mxu0 %v1474_v26  ;;  %2621 = vmatprep.subr.bf16.mxu1 %v1506_v27  ;;  %v1463_v24 = vpack.c.bf16 %v1129_v22, %v1127_v21  ;;  %v1496_v25 = vpack.c.bf16 %v1194_v23, %v1192_v19  ;;  %v1191_v26 = vld [vmem:[%s6589_s4 + $0x200] sm:$0xff]  ;;  %v1193_v27 = vld [vmem:[%s6589_s4 + $0x210] sm:$0xff]  ;;  %v1350_v3 = vld [vmem:[%s6589_s4 + $0x6f8] sm:$0xff] }
  0x3b   :  { %v1495_v28 = vpack.c.bf16 %v1193_v27, %v1191_v26  ;;  %v1173_v19 = vld [vmem:[%s6589_s4 + $0x170] sm:$0xff]  ;;  %v1235_v23 = vld [vmem:[%s6589_s4 + $0x360] sm:$0xff]  ;;  %v1168_v26 = vld [vmem:[%s6589_s4 + $0x148] sm:$0xff] }
  0x3c   :  { %v1485_v21 = vpack.c.bf16 %v1173_v19, %v1171_v18  ;;  %v1170_v27 = vld [vmem:[%s6589_s4 + $0x158] sm:$0xff] }
  0x3d   :  { %2449 = vmatpush1.bf16.msra.mxu0 %v1473_v34  ;;  %2622 = vmatpush1.bf16.msra.mxu1 %v1505_v35  ;;  %v1189_v34 = vld [vmem:[%s6589_s4 + $0x1f0] sm:$0xff]  ;;  %v1254_v35 = vld [vmem:[%s6589_s4 + $0x3f8] sm:$0xff]  ;;  %v1484_v29 = vpack.c.bf16 %v1170_v27, %v1168_v26 }
  0x3e   :  { %2450 = vmatprep.subr.bf16.mxu0 %v1472_v37  ;;  %2623 = vmatprep.subr.bf16.mxu1 %v1504_v39  ;;  %v1493_v36 = vpack.c.bf16 %v1189_v34, %v1187_v33  ;;  %v1526_v37 = vpack.c.bf16 %v1254_v35, %v1252_v31  ;;  %v1253_v39 = vld [vmem:[%s6589_s4 + $0x3f0] sm:$0xff]  ;;  %v1231_v35 = vld [vmem:[%s6589_s4 + $0x340] sm:$0xff] }
  0x3f   :  { %v1525_v40 = vpack.c.bf16 %v1253_v39, %v1251_v38  ;;  %v1169_v31 = vld [vmem:[%s6589_s4 + $0x150] sm:$0xff]  ;;  %v1164_v38 = vld [vmem:[%s6589_s4 + $0x128] sm:$0xff]  ;;  %v1166_v39 = vld [vmem:[%s6589_s4 + $0x138] sm:$0xff] }
  0x40   :  { %v1483_v33 = vpack.c.bf16 %v1169_v31, %v1167_v30 }
  0x41   :  { %2451 = vmatpush1.bf16.msra.mxu0 %v1471_v42  ;;  %2624 = vmatpush1.bf16.msra.mxu1 %v1503_v43  ;;  %v1186_v42 = vld [vmem:[%s6589_s4 + $0x1d8] sm:$0xff]  ;;  %v1248_v43 = vld [vmem:[%s6589_s4 + $0x3c8] sm:$0xff] }
  0x42   :  { %2452 = vmatprep.subr.bf16.mxu0 %v1470_v46  ;;  %2625 = vmatprep.subr.bf16.mxu1 %v1502_v51  ;;  %v1492_v44 = vpack.c.bf16 %v1186_v42, %v1184_v41  ;;  %v1185_v46 = vld [vmem:[%s6589_s4 + $0x1d0] sm:$0xff]  ;;  %v1524_v49 = vpack.c.bf16 %v1250_v47, %v1248_v43  ;;  %v1482_v41 = vpack.c.bf16 %v1166_v39, %v1164_v38  ;;  %v1163_v42 = vld [vmem:[%s6589_s4 + $0x120] sm:$0xff] }
  0x43   :  { %v1491_v48 = vpack.c.bf16 %v1185_v46, %v1183_v45  ;;  %v1249_v51 = vld [vmem:[%s6589_s4 + $0x3d0] sm:$0xff]  ;;  %v1227_v47 = vld [vmem:[%s6589_s4 + $0x320] sm:$0xff] }
  0x44   :  { %v1523_v52 = vpack.c.bf16 %v1249_v51, %v1247_v50  ;;  %v1165_v43 = vld [vmem:[%s6589_s4 + $0x130] sm:$0xff]  ;;  %v1160_v50 = vld [vmem:[%s6589_s4 + $0x108] sm:$0xff]  ;;  %v1162_v51 = vld [vmem:[%s6589_s4 + $0x118] sm:$0xff] }
  0x45   :  { %2453 = vmatpush1.bf16.msra.mxu0 %v1469_v53  ;;  %2626 = vmatpush1.bf16.msra.mxu1 %v1501_v55  ;;  %v1180_v53 = vld [vmem:[%s6589_s4 + $0x1a8] sm:$0xff]  ;;  %v1481_v45 = vpack.c.bf16 %v1165_v43, %v1163_v42 }
  0x46   :  { %2454 = vmatprep.subr.bf16.mxu0 %v1468_v59  ;;  %2627 = vmatprep.subr.bf16.mxu1 %v1500_v0  ;;  %v1244_v55 = vld [vmem:[%s6589_s4 + $0x3a8] sm:$0xff]  ;;  %v1490_v56 = vpack.c.bf16 %v1182_v54, %v1180_v53  ;;  %v1246_v59 = vld [vmem:[%s6589_s4 + $0x3b8] sm:$0xff]  ;;  %v1480_v53 = vpack.c.bf16 %v1162_v51, %v1160_v50  ;;  %v1161_v54 = vld [vmem:[%s6589_s4 + $0x110] sm:$0xff] }
  0x47   :  { %v1522_v61 = vpack.c.bf16 %v1246_v59, %v1244_v55  ;;  %v1224_v55 = vld [vmem:[%s6589_s4 + $0x308] sm:$0xff]  ;;  %v1223_v59 = vld [vmem:[%s6589_s4 + $0x300] sm:$0xff] }
  0x49   :  { %2455 = vmatpush1.bf16.msra.mxu0 %v1467_v63  ;;  %2628 = vmatpush1.bf16.msra.mxu1 %v1499_v4  ;;  %v1245_v63 = vld [vmem:[%s6589_s4 + $0x3b0] sm:$0xff]  ;;  %v1240_v4 = vld [vmem:[%s6589_s4 + $0x388] sm:$0xff] }
  0x4a   :  { %2456 = vmatprep.subr.bf16.mxu0 %v1466_v8  ;;  %2629 = vmatprep.subr.bf16.mxu1 %v1498_v13  ;;  %v1521_v0 = vpack.c.bf16 %v1245_v63, %v1243_v62  ;;  %v1242_v8 = vld [vmem:[%s6589_s4 + $0x398] sm:$0xff]  ;;  %v1284_v62 = vld [vmem:[%s6589_s4 + $0x4e8] sm:$0xff] }
  0x4b   :  { %v1520_v10 = vpack.c.bf16 %v1242_v8, %v1240_v4  ;;  %v1286_v63 = vld [vmem:[%s6589_s4 + $0x4f8] sm:$0xff]  ;;  %v1574_v4 = vpack.c.bf16 %v1350_v3, %v1348_v1 }
  0x4d   :  { %2457 = vmatpush1.bf16.msra.mxu0 %v1465_v12  ;;  %2630 = vmatpush1.bf16.msra.mxu1 %v1497_v16  ;;  %v1241_v12 = vld [vmem:[%s6589_s4 + $0x390] sm:$0xff]  ;;  %v1236_v16 = vld [vmem:[%s6589_s4 + $0x368] sm:$0xff] }
  0x4e   :  { %2458 = vmatprep.subr.bf16.mxu0 %v1464_v20  ;;  %2631 = vmatprep.subr.bf16.mxu1 %v1496_v25  ;;  %v1519_v13 = vpack.c.bf16 %v1241_v12, %v1239_v11  ;;  %v1238_v20 = vld [vmem:[%s6589_s4 + $0x378] sm:$0xff] }
  0x4f   :  { %v1518_v22 = vpack.c.bf16 %v1238_v20, %v1236_v16 }
  0x51   :  { %2459 = vmatpush1.bf16.msra.mxu0 %v1463_v24  ;;  %2632 = vmatpush1.bf16.msra.mxu1 %v1495_v28  ;;  %v1237_v24 = vld [vmem:[%s6589_s4 + $0x370] sm:$0xff]  ;;  %v1232_v28 = vld [vmem:[%s6589_s4 + $0x348] sm:$0xff] }
  0x52   :  { %2460 = vmatprep.subr.bf16.mxu0 %v1494_v32  ;;  %2633 = vmatprep.subr.bf16.mxu1 %v1526_v37  ;;  %v1517_v25 = vpack.c.bf16 %v1237_v24, %v1235_v23  ;;  %v1234_v32 = vld [vmem:[%s6589_s4 + $0x358] sm:$0xff] }
  0x53   :  { %v1516_v34 = vpack.c.bf16 %v1234_v32, %v1232_v28 }
  0x55   :  { %2461 = vmatpush2.bf16.msra.mxu0 %v1493_v36  ;;  %2634 = vmatpush2.bf16.msra.mxu1 %v1525_v40  ;;  %v1233_v36 = vld [vmem:[%s6589_s4 + $0x350] sm:$0xff]  ;;  %v1228_v40 = vld [vmem:[%s6589_s4 + $0x328] sm:$0xff] }
  0x56   :  { %2462 = vmatprep.subr.bf16.mxu0 %v1492_v44  ;;  %2635 = vmatprep.subr.bf16.mxu1 %v1524_v49  ;;  %v1515_v37 = vpack.c.bf16 %v1233_v36, %v1231_v35  ;;  %v1230_v44 = vld [vmem:[%s6589_s4 + $0x338] sm:$0xff] }
  0x57   :  { %v1514_v46 = vpack.c.bf16 %v1230_v44, %v1228_v40 }
  0x59   :  { %2463 = vmatpush2.bf16.msra.mxu0 %v1491_v48  ;;  %2636 = vmatpush2.bf16.msra.mxu1 %v1523_v52  ;;  %v1229_v48 = vld [vmem:[%s6589_s4 + $0x330] sm:$0xff]  ;;  %v1159_v52 = vld [vmem:[%s6589_s4 + $0x100] sm:$0xff] }
  0x5a   :  { %2464 = vmatprep.subr.bf16.mxu0 %v1490_v56  ;;  %2637 = vmatprep.subr.bf16.mxu1 %v1522_v61  ;;  %v1513_v49 = vpack.c.bf16 %v1229_v48, %v1227_v47  ;;  %v1226_v56 = vld [vmem:[%s6589_s4 + $0x318] sm:$0xff]  ;;  %v1479_v57 = vpack.c.bf16 %v1161_v54, %v1159_v52 }
  0x5b   :  { %v1512_v58 = vpack.c.bf16 %v1226_v56, %v1224_v55 }
  0x5d   :  { %2465 = vmatpush2.bf16.msra.mxu0 %v1489_v60  ;;  %2638 = vmatpush2.bf16.msra.mxu1 %v1521_v0  ;;  %v1225_v60 = vld [vmem:[%s6589_s4 + $0x310] sm:$0xff]  ;;  %v1542_v0 = vpack.c.bf16 %v1286_v63, %v1284_v62 }
  0x5e   :  { %2466 = vmatprep.subr.bf16.mxu0 %v1488_v5  ;;  %2639 = vmatprep.subr.bf16.mxu1 %v1520_v10  ;;  %v1511_v61 = vpack.c.bf16 %v1225_v60, %v1223_v59  ;;  %v265_v5 = vlaneseq }
  0x60   :  { %v4485_v6 = vshrl.u32 %v265_v5, 7 }
  0x61   :  { %2467 = vmatpush2.bf16.msra.mxu0 %v1487_v9  ;;  %2640 = vmatpush2.bf16.msra.mxu1 %v1519_v13  ;;  %v65_v9 = vld [vmem:[%s6590_s2] sm:$0xff] }
  0x62   :  { %2468 = vmatprep.subr.bf16.mxu0 %v1486_v17  ;;  %2641 = vmatprep.subr.bf16.mxu1 %v1518_v22  ;;  %v4488_v7 = vsub.s32 0, %v4485_v6  ;;  %v275_v8 = vsub.s32 2, %v4485_v6  ;;  %v271_v10 = vsub.s32 1, %v4485_v6  ;;  %v279_v11 = vsub.s32 3, %v4485_v6 }
  0x63   :  { %v283_v32 = vsub.s32 4, %v4485_v6  ;;  %v295_v35 = vsub.s32 7, %v4485_v6 }
  0x64   :  { %v268_v12 = vrot.slane %v65_v9, %v4488_v7  ;;  %v276_v13 = vrot.slane %v65_v9, %v275_v8  ;;  %v272_v14 = vrot.slane %v65_v9, %v271_v10  ;;  %v280_v15 = vrot.slane %v65_v9, %v279_v11 }
  0x65   :  { %2469 = vmatpush2.bf16.msra.mxu0 %v1485_v21  ;;  %2642 = vmatpush2.bf16.msra.mxu1 %v1517_v25  ;;  %v284_v36 = vrot.slane %v65_v9, %v283_v32  ;;  %v676_v32 = vld [vmem:[%s6591_s3 + $0x34] sm:$0xff] }
  0x66   :  { %2470 = vmatprep.subr.bf16.mxu0 %v1484_v29  ;;  %2643 = vmatprep.subr.bf16.mxu1 %v1516_v34  ;;  %v291_v34 = vsub.s32 6, %v4485_v6 }
  0x68   :  { %v292_v38 = vrot.slane %v65_v9, %v291_v34  ;;  %v688_v34 = vld [vmem:[%s6591_s3 + $0x8c] sm:$0xff] }
  0x69   :  { %2471 = vmatpush2.bf16.msra.mxu0 %v1483_v33  ;;  %2644 = vmatpush2.bf16.msra.mxu1 %v1515_v37  ;;  %v287_v33 = vsub.s32 5, %v4485_v6 }
  0x6a   :  { %2472 = vmatprep.subr.bf16.mxu0 %v1482_v41  ;;  %2645 = vmatprep.subr.bf16.mxu1 %v1514_v46  ;;  %v296_v41 = vrot.slane %v65_v9, %v295_v35 }
  0x6b   :  { %v288_v37 = vrot.slane %v65_v9, %v287_v33  ;;  %v682_v33 = vld [vmem:[%s6591_s3 + $0x60] sm:$0xff] }
  0x6d   :  { %2473 = vmatpush2.bf16.msra.mxu0 %v1481_v45  ;;  %2646 = vmatpush2.bf16.msra.mxu1 %v1513_v49 }
  0x6e   :  { %2474 = vmatprep.subr.bf16.mxu0 %v1480_v53  ;;  %2647 = vmatprep.subr.bf16.mxu1 %v1512_v58 }
  0x71   :  { %2475 = vmatpush2.bf16.msra.mxu0 %v1479_v57  ;;  %2648 = vmatpush2.bf16.msra.mxu1 %v1511_v61 }
  0x72   :  { %2790 = vmatprep.subr.bf16.mxu0 %v1542_v0  ;;  %2963 = vmatprep.subr.bf16.mxu1 %v1574_v4 }
  0xd4   :  { %v392_v16 = vpop.f32.mrf.mxu0  ;;  %v433_v17 = vpop.f32.mrf.mxu1 }
  0xd5   :  { %v393_v18 = vadd.f32 %v392_v16, %v268_v12  ;;  %v434_v19 = vadd.f32 %v433_v17, %v276_v13 }
  0xd6   :  { %v394_v20 = vpop.f32.mrf.mxu0  ;;  %v435_v21 = vpop.f32.mrf.mxu1 }
  0xd7   :  { %v3598_v22 = vmul.f32 -1.442695, %v393_v18  ;;  %v3600_v23 = vmul.f32 -1.442695, %v434_v19  ;;  %v395_v24 = vadd.f32 %v394_v20, %v272_v14  ;;  %v436_v25 = vadd.f32 %v435_v21, %v280_v15 }
  0xd8   :  { %v396_v26 = vpop.f32.mrf.mxu0  ;;  %v437_v27 = vpop.f32.mrf.mxu1 }
  0xd9   :  { %3862 = vpow2.f32 %v3598_v22  ;;  %v3599_v28 = vmul.f32 -1.442695, %v395_v24  ;;  %v3601_v29 = vmul.f32 -1.442695, %v436_v25  ;;  %v669_v25 = vld [vmem:[%s6591_s3] sm:$0xff]  ;;  %v675_v26 = vld [vmem:[%s6591_s3 + $0x2c] sm:$0xff] }
  0xda   :  { %3864 = vpow2.f32 %v3600_v23  ;;  %v397_v30 = vpop.f32.mrf.mxu0  ;;  %v438_v31 = vpop.f32.mrf.mxu1 }
  0xdb   :  { %3866 = vpow2.f32 %v3599_v28  ;;  %v670_v28 = vld [vmem:[%s6591_s3 + $0x8] sm:$0xff] }
  0xdc   :  { %3868 = vpow2.f32 %v3601_v29  ;;  %v681_v29 = vld [vmem:[%s6591_s3 + $0x58] sm:$0xff]  ;;  %v687_v30 = vld [vmem:[%s6591_s3 + $0x84] sm:$0xff] }
  0xe4   :  { %v474_v39 = vpop.f32.mrf.mxu0  ;;  %v515_v40 = vpop.f32.mrf.mxu1 }
  0xe5   :  { %v475_v42 = vadd.f32 %v474_v39, %v284_v36  ;;  %v516_v49 = vadd.f32 %v515_v40, %v292_v38  ;;  %v1285_v38 = vld [vmem:[%s6589_s4 + $0x4f0] sm:$0xff] }
  0xe6   :  { %v3863_v43 = vpop.eup %3862  ;;  %v476_v44 = vpop.f32.mrf.mxu0 }
  0xe7   :  { %v517_v45 = vpop.f32.mrf.mxu1  ;;  %v3865_v46 = vpop.eup %3864  ;;  %v636_v47 = vadd.f32 1.0, %v3863_v43  ;;  %v477_v48 = vadd.f32 %v476_v44, %v288_v37  ;;  %v3602_v57 = vmul.f32 -1.442695, %v475_v42  ;;  %v3604_v62 = vmul.f32 -1.442695, %v516_v49  ;;  %v1283_v37 = vld [vmem:[%s6589_s4 + $0x4e0] sm:$0xff] }
  0xe8   :  { %v3867_v50 = vpop.eup %3866  ;;  %v638_v51 = vadd.f32 1.0, %v3865_v46  ;;  %v478_v52 = vpop.f32.mrf.mxu0  ;;  %v518_v53 = vadd.f32 %v517_v45, %v296_v41 }
  0xe9   :  { %v519_v54 = vpop.f32.mrf.mxu1  ;;  %v3869_v55 = vpop.eup %3868  ;;  %3870 = vrcp.f32 %v636_v47  ;;  %v637_v56 = vadd.f32 1.0, %v3867_v50  ;;  %v3603_v59 = vmul.f32 -1.442695, %v477_v48  ;;  %v1347_v47 = vld [vmem:[%s6589_s4 + $0x6e0] sm:$0xff]  ;;  %v1349_v52 = vld [vmem:[%s6589_s4 + $0x6f0] sm:$0xff] }
  0xea   :  { %3872 = vrcp.f32 %v638_v51  ;;  %v639_v58 = vadd.f32 1.0, %v3869_v55  ;;  %v479_v60 = vpop.f32.mrf.mxu0  ;;  %v3605_v63 = vmul.f32 -1.442695, %v518_v53  ;;  %v1280_v53 = vld [vmem:[%s6589_s4 + $0x4c8] sm:$0xff]  ;;  %v1282_v54 = vld [vmem:[%s6589_s4 + $0x4d8] sm:$0xff] }
  0xeb   :  { %v520_v61 = vpop.f32.mrf.mxu1  ;;  %3874 = vrcp.f32 %v637_v56  ;;  %v1344_v60 = vld [vmem:[%s6589_s4 + $0x6c8] sm:$0xff] }
  0xec   :  { %3876 = vrcp.f32 %v639_v58  ;;  %v1346_v61 = vld [vmem:[%s6589_s4 + $0x6d8] sm:$0xff] }
  0xed   :  { %3878 = vpow2.f32 %v3602_v57 }
  0xee   :  { %3880 = vpow2.f32 %v3603_v59  ;;  %v1541_v59 = vpack.c.bf16 %v1285_v38, %v1283_v37 }
  0xef   :  { %3882 = vpow2.f32 %v3604_v62 }
  0xf0   :  { %3884 = vpow2.f32 %v3605_v63 }
  0xf4   :  { %v4543_v41 = vpop.f32.mrf.mxu0  ;;  %v4545_v42 = vpop.f32.mrf.mxu1 }
  0xf6   :  { %v3871_v0 = vpop.eup %3870  ;;  %v4575_v55 = vpop.f32.mrf.mxu0 }
  0xf7   :  { %v3873_v1 = vpop.eup %3872  ;;  %v837_v3 = vpack.c.bf16 %v3871_v0, %v3871_v0  ;;  %v3798_v56 = vpop.f32.mrf.mxu1  ;;  %v1279_v0 = vld [vmem:[%s6589_s4 + $0x4c0] sm:$0xff] }
  0xf8   :  { %v3875_v4 = vpop.eup %3874  ;;  %v839_v5 = vpack.c.bf16 %v3873_v1, %v3873_v1  ;;  %v1281_v1 = vld [vmem:[%s6589_s4 + $0x4d0] sm:$0xff]  ;;  %v705_v56 = vld [vmem:[%s6591_s3 + $0x108] sm:$0xff] }
  0xf9   :  { %v3877_v9 = vpop.eup %3876  ;;  %v849_v11 = vpack.i.b16 %v837_v3, %v837_v3  ;;  %v838_v12 = vpack.c.bf16 %v3875_v4, %v3875_v4  ;;  %v693_v3 = vld [vmem:[%s6591_s3 + $0xb0] sm:$0xff]  ;;  %v560_v4 = vpop.f32.mrf.mxu0 }
  0xfa   :  { %v3879_v13 = vpop.eup %3878  ;;  %v863_v14 = vpack.i.b16 %v839_v5, %v839_v5  ;;  %v840_v15 = vpack.c.bf16 %v3877_v9, %v3877_v9  ;;  %v600_v5 = vpop.f32.mrf.mxu1  ;;  %v1573_v9 = vpack.c.bf16 %v1349_v52, %v1347_v47  ;;  %v1273_v47 = vld [vmem:[%s6589_s4 + $0x490] sm:$0xff]  ;;  %v4668_v52 = vld [vmem:[%s6589_s4 + $0x680] sm:$0xff] }
  0xfb   :  { %v3881_v16 = vpop.eup %3880  ;;  %v856_v17 = vpack.i.b16 %v838_v12, %v838_v12  ;;  %v640_v21 = vadd.f32 1.0, %v3879_v13  ;;  %v854_v23 = vrot.slane %v849_v11, %v4488_v7  ;;  %v1540_v11 = vpack.c.bf16 %v1282_v54, %v1280_v53  ;;  %v699_v12 = vld [vmem:[%s6591_s3 + $0xdc] sm:$0xff]  ;;  %v1276_v13 = vld [vmem:[%s6589_s4 + $0x4a8] sm:$0xff] }
  0xfc   :  { %v3883_v18 = vpop.eup %3882  ;;  %v868_v19 = vrot.slane %v863_v14, %v4488_v7  ;;  %v870_v20 = vpack.i.b16 %v840_v15, %v840_v15  ;;  %v641_v35 = vadd.f32 1.0, %v3881_v16  ;;  %v1278_v14 = vld [vmem:[%s6589_s4 + $0x4b8] sm:$0xff] }
  0xfd   :  { %v3885_v22 = vpop.eup %3884  ;;  %v861_v24 = vrot.slane %v856_v17, %v4488_v7  ;;  %3886 = vrcp.f32 %v640_v21  ;;  %v642_v39 = vadd.f32 1.0, %v3883_v18  ;;  %v1572_v17 = vpack.c.bf16 %v1346_v61, %v1344_v60  ;;  %v694_v18 = vld [vmem:[%s6591_s3 + $0xb8] sm:$0xff]  ;;  %v561_v21 = vpop.f32.mrf.mxu0 }
  0xfe   :  { %v875_v27 = vrot.slane %v870_v20, %v4488_v7  ;;  %v643_v40 = vadd.f32 1.0, %v3885_v22  ;;  %3888 = vrcp.f32 %v641_v35  ;;  %v1345_v20 = vld [vmem:[%s6589_s4 + $0x6d0] sm:$0xff]  ;;  %v3799_v22 = vpop.f32.mrf.mxu1  ;;  %v4749_v21 = vld [vmem:[%s6589_s4 + $0x648] sm:$0xff] }
  0xff   :  { %v4524_v31 = vcombine.low %v854_v23, %v861_v24  ;;  %3890 = vrcp.f32 %v642_v39  ;;  %v1539_v23 = vpack.c.bf16 %v1281_v1, %v1279_v0  ;;  %v700_v24 = vld [vmem:[%s6591_s3 + $0xe4] sm:$0xff]  ;;  %v1341_v39 = vld [vmem:[%s6589_s4 + $0x6b0] sm:$0xff]  ;;  %v712_v0 = vld [vmem:[%s6591_s3 + $0x13c] sm:$0xff] }
 0x100   :  { %v4535_v36 = vcombine.low %v868_v19, %v875_v27  ;;  %3892 = vrcp.f32 %v643_v40  ;;  %v1343_v19 = vld [vmem:[%s6589_s4 + $0x6c0] sm:$0xff]  ;;  %v1538_v27 = vpack.c.bf16 %v1278_v14, %v1276_v13  ;;  %v1272_v40 = vld [vmem:[%s6589_s4 + $0x488] sm:$0xff]  ;;  %v4733_v14 = vld [vmem:[%s6589_s4 + $0x458] sm:$0xff] }
 0x101   :  { %v959_v43 = vmul.bf16 %v4524_v31, %v669_v25  ;;  %v965_v44 = vmul.bf16 %v4524_v31, %v675_v26  ;;  %v4550_v45 = vmul.bf16 %v4524_v31, %v681_v29  ;;  %v4553_v46 = vmul.bf16 %v4524_v31, %v687_v30  ;;  %v1340_v25 = vld [vmem:[%s6589_s4 + $0x6a8] sm:$0xff]  ;;  %v1342_v26 = vld [vmem:[%s6589_s4 + $0x6b8] sm:$0xff] }
 0x102   :  { %v960_v48 = vmul.bf16 %v4535_v36, %v670_v28  ;;  %v966_v49 = vmul.bf16 %v4535_v36, %v676_v32  ;;  %v4561_v50 = vmul.bf16 %v4535_v36, %v682_v33  ;;  %v4564_v51 = vmul.bf16 %v4535_v36, %v688_v34  ;;  %v1275_v32 = vld [vmem:[%s6589_s4 + $0x4a0] sm:$0xff]  ;;  %v1277_v33 = vld [vmem:[%s6589_s4 + $0x4b0] sm:$0xff]  ;;  %v4728_v13 = vld [vmem:[%s6589_s4 + $0x448] sm:$0xff] }
 0x103   :  { %v3616_v57 = vcombine.high %v959_v43, %v965_v44  ;;  %v3615_v58 = vcombine.low %v959_v43, %v965_v44  ;;  %v3627_v15 = vcombine.high %v4550_v45, %v4553_v46  ;;  %v4624_v28 = vmul.bf16 %v4524_v31, %v693_v3  ;;  %v1339_v34 = vld [vmem:[%s6589_s4 + $0x6a0] sm:$0xff]  ;;  %v1274_v43 = vld [vmem:[%s6589_s4 + $0x498] sm:$0xff] }
 0x104   :  { %v3618_v62 = vcombine.high %v960_v48, %v966_v49  ;;  %v3617_v63 = vcombine.low %v960_v48, %v966_v49  ;;  %v3629_v16 = vcombine.high %v4561_v50, %v4564_v51  ;;  %v4627_v29 = vmul.bf16 %v4524_v31, %v699_v12  ;;  %v1271_v44 = vld [vmem:[%s6589_s4 + $0x480] sm:$0xff]  ;;  %v1336_v48 = vld [vmem:[%s6589_s4 + $0x688] sm:$0xff]  ;;  %v1338_v49 = vld [vmem:[%s6589_s4 + $0x698] sm:$0xff] }
 0x105   :  { %2476 = vmatprep.mubr.bf16.mxu0 %v3616_v57  ;;  %v1571_v30 = vpack.c.bf16 %v1345_v20, %v1343_v19  ;;  %v4639_v35 = vmul.bf16 %v4535_v36, %v694_v18  ;;  %v4642_v37 = vmul.bf16 %v4535_v36, %v700_v24  ;;  %v1570_v38 = vpack.c.bf16 %v1342_v26, %v1340_v25  ;;  %v711_v57 = vld [vmem:[%s6591_s3 + $0x134] sm:$0xff]  ;;  %v4700_v3 = vld [vmem:[%s6589_s4 + $0x460] sm:$0xff] }
 0x106   :  { %2649 = vmatprep.mubr.bf16.mxu1 %v3618_v62  ;;  %2477 = vmatmul.mubr.bf16.vlgmr.msra.gmra.mxu0 %v3615_v58  ;;  %v3626_v53 = vcombine.low %v4550_v45, %v4553_v46  ;;  %v1537_v54 = vpack.c.bf16 %v1277_v33, %v1275_v32  ;;  %v1337_v58 = vld [vmem:[%s6589_s4 + $0x690] sm:$0xff]  ;;  %v1270_v45 = vld [vmem:[%s6589_s4 + $0x478] sm:$0xff]  ;;  %v3628_v60 = vcombine.low %v4561_v50, %v4564_v51  ;;  %v1332_v51 = vld [vmem:[%s6589_s4 + $0x668] sm:$0xff] }
 0x107   :  { %2650 = vmatmul.mubr.bf16.vlgmr.msra.gmra.mxu1 %v3617_v63  ;;  %2791 = vmatpush1.bf16.msra.mxu0 %v1541_v59  ;;  %v1268_v59 = vld [vmem:[%s6589_s4 + $0x468] sm:$0xff]  ;;  %v3638_v61 = vcombine.high %v4624_v28, %v4627_v29  ;;  %v1569_v62 = vpack.c.bf16 %v1341_v39, %v1339_v34  ;;  %v706_v63 = vld [vmem:[%s6591_s3 + $0x110] sm:$0xff]  ;;  %v1536_v1 = vpack.c.bf16 %v1274_v43, %v1272_v40  ;;  %v4754_v22 = vld [vmem:[%s6589_s4 + $0x658] sm:$0xff] }
 0x108   :  { %2486 = vmatprep.mubr.bf16.mxu0 %v3627_v15  ;;  %2659 = vmatprep.mubr.bf16.mxu1 %v3629_v16  ;;  %v4705_v50 = vld [vmem:[%s6589_s4 + $0x470] sm:$0xff]  ;;  %v3640_v4 = vcombine.high %v4639_v35, %v4642_v37  ;;  %v1568_v5 = vpack.c.bf16 %v1338_v49, %v1336_v48  ;;  %v4738_v15 = vld [vmem:[%s6589_s4 + $0x440] sm:$0xff]  ;;  %v1567_v18 = vpack.c.bf16 %v1337_v58, %v4668_v52 }
 0x109   :  { %2964 = vmatpush1.bf16.msra.mxu1 %v1573_v9  ;;  %2792 = vmatprep.subr.bf16.mxu0 %v1540_v11  ;;  %v1334_v9 = vld [vmem:[%s6589_s4 + $0x678] sm:$0xff]  ;;  %v4718_v11 = vld [vmem:[%s6589_s4 + $0x660] sm:$0xff]  ;;  %v4723_v12 = vld [vmem:[%s6589_s4 + $0x670] sm:$0xff]  ;;  %v1534_v19 = vpack.c.bf16 %v1270_v45, %v1268_v59  ;;  %v4757_v24 = vmul.bf16 %v4524_v31, %v705_v56  ;;  %v4760_v25 = vmul.bf16 %v4524_v31, %v711_v57 }
 0x10a   :  { %2965 = vmatprep.subr.bf16.mxu1 %v1572_v17  ;;  %v3887_v46 = vpop.eup %3886  ;;  %v1535_v17 = vpack.c.bf16 %v1273_v47, %v1271_v44  ;;  %v4744_v20 = vld [vmem:[%s6589_s4 + $0x450] sm:$0xff]  ;;  %v1533_v26 = vpack.c.bf16 %v4705_v50, %v4700_v3  ;;  %v4768_v32 = vmul.bf16 %v4535_v36, %v712_v0  ;;  %v1566_v33 = vpack.c.bf16 %v1334_v9, %v1332_v51  ;;  %v1327_v47 = vld [vmem:[%s6589_s4 + $0x640] sm:$0xff]  ;;  %v1262_v57 = vld [vmem:[%s6589_s4 + $0x438] sm:$0xff] }
 0x10b   :  { %2793 = vmatpush1.bf16.msra.mxu0 %v1539_v23  ;;  %v3889_v16 = vpop.eup %3888  ;;  %v841_v34 = vpack.c.bf16 %v3887_v46, %v3887_v46  ;;  %v1532_v39 = vpack.c.bf16 %v4733_v14, %v4728_v13  ;;  %v1531_v40 = vpack.c.bf16 %v4744_v20, %v4738_v15  ;;  %v1564_v43 = vpack.c.bf16 %v4754_v22, %v4749_v21  ;;  %v1329_v48 = vld [vmem:[%s6589_s4 + $0x650] sm:$0xff]  ;;  %v718_v59 = vld [vmem:[%s6591_s3 + $0x168] sm:$0xff]  ;;  %v1259_v51 = vld [vmem:[%s6589_s4 + $0x420] sm:$0xff] }
 0x10c   :  { %2794 = vmatprep.subr.bf16.mxu0 %v1538_v27  ;;  %v3891_v23 = vpop.eup %3890  ;;  %v3637_v44 = vcombine.low %v4624_v28, %v4627_v29  ;;  %v842_v52 = vpack.c.bf16 %v3889_v16, %v3889_v16  ;;  %v3649_v56 = vcombine.high %v4757_v24, %v4760_v25  ;;  %v717_v28 = vld [vmem:[%s6591_s3 + $0x160] sm:$0xff]  ;;  %v1260_v29 = vld [vmem:[%s6589_s4 + $0x428] sm:$0xff]  ;;  %v1261_v9 = vld [vmem:[%s6589_s4 + $0x430] sm:$0xff]  ;;  %v4839_v15 = vmul.bf16 %v4535_v36, %v718_v59 }
 0x10d   :  { %2966 = vmatpush1.bf16.msra.mxu1 %v1571_v30  ;;  %v3893_v27 = vpop.eup %3892  ;;  %v4765_v30 = vmul.bf16 %v4535_v36, %v706_v63  ;;  %v877_v49 = vpack.i.b16 %v841_v34, %v841_v34  ;;  %v1326_v63 = vld [vmem:[%s6589_s4 + $0x638] sm:$0xff]  ;;  %v4818_v3 = vmul.bf16 %v4524_v31, %v717_v28  ;;  %v1530_v50 = vpack.c.bf16 %v1262_v57, %v1260_v29  ;;  %v1320_v21 = vld [vmem:[%s6589_s4 + $0x608] sm:$0xff]  ;;  %v1315_v57 = vld [vmem:[%s6589_s4 + $0x5e0] sm:$0xff] }
 0x10e   :  { %2487 = vmatmul.mubr.bf16.gmra.mxu0 %v3626_v53  ;;  %2967 = vmatprep.subr.bf16.mxu1 %v1570_v38  ;;  %v1565_v38 = vpack.c.bf16 %v4723_v12, %v4718_v11  ;;  %v843_v53 = vpack.c.bf16 %v3891_v23, %v3891_v23  ;;  %v844_v58 = vpack.c.bf16 %v3893_v27, %v3893_v27  ;;  %v1323_v11 = vld [vmem:[%s6589_s4 + $0x620] sm:$0xff]  ;;  %v1325_v12 = vld [vmem:[%s6589_s4 + $0x630] sm:$0xff]  ;;  %v1322_v22 = vld [vmem:[%s6589_s4 + $0x618] sm:$0xff] }
 0x10f   :  { %2660 = vmatmul.mubr.bf16.gmra.mxu1 %v3628_v60  ;;  %2496 = vmatprep.mubr.bf16.mxu0 %v3638_v61  ;;  %v882_v45 = vrot.slane %v877_v49, %v4488_v7  ;;  %v884_v46 = vpack.i.b16 %v842_v52, %v842_v52  ;;  %v724_v60 = vld [vmem:[%s6591_s3 + $0x194] sm:$0xff]  ;;  %v1563_v61 = vpack.c.bf16 %v1329_v48, %v1327_v47  ;;  %v1316_v49 = vld [vmem:[%s6589_s4 + $0x5e8] sm:$0xff] }
 0x110   :  { %2669 = vmatprep.mubr.bf16.mxu1 %v3640_v4  ;;  %2795 = vmatpush1.bf16.msra.mxu0 %v1537_v54  ;;  %v3639_v54 = vcombine.low %v4639_v35, %v4642_v37  ;;  %v3651_v35 = vcombine.high %v4765_v30, %v4768_v32  ;;  %v723_v37 = vld [vmem:[%s6591_s3 + $0x18c] sm:$0xff]  ;;  %v891_v0 = vpack.i.b16 %v843_v53, %v843_v53  ;;  %v729_v27 = vld [vmem:[%s6591_s3 + $0x1b8] sm:$0xff] }
 0x111   :  { %2968 = vmatpush1.bf16.msra.mxu1 %v1569_v62  ;;  %2796 = vmatprep.subr.bf16.mxu0 %v1536_v1  ;;  %v1324_v62 = vld [vmem:[%s6589_s4 + $0x628] sm:$0xff]  ;;  %v898_v1 = vpack.i.b16 %v844_v58, %v844_v58  ;;  %v889_v4 = vrot.slane %v884_v46, %v4488_v7  ;;  %v4842_v16 = vmul.bf16 %v4535_v36, %v724_v60  ;;  %v1321_v47 = vld [vmem:[%s6589_s4 + $0x610] sm:$0xff]  ;;  %v1318_v52 = vld [vmem:[%s6589_s4 + $0x5f8] sm:$0xff] }
 0x112   :  { %2969 = vmatprep.subr.bf16.mxu1 %v1568_v5  ;;  %v4825_v5 = vmul.bf16 %v4524_v31, %v723_v37  ;;  %v896_v13 = vrot.slane %v891_v0, %v4488_v7  ;;  %v1529_v34 = vpack.c.bf16 %v1261_v9, %v1259_v51  ;;  %v1560_v48 = vpack.c.bf16 %v1322_v22, %v1320_v21  ;;  %v736_v53 = vld [vmem:[%s6591_s3 + $0x1ec] sm:$0xff]  ;;  %v1314_v0 = vld [vmem:[%s6589_s4 + $0x5d8] sm:$0xff]  ;;  %v748_v21 = vld [vmem:[%s6591_s3 + $0x244] sm:$0xff] }
 0x113   :  { %v903_v14 = vrot.slane %v898_v1, %v4488_v7  ;;  %v4850_v20 = vcombine.low %v882_v45, %v889_v4  ;;  %v4908_v58 = vmul.bf16 %v4524_v31, %v729_v27  ;;  %v1558_v37 = vpack.c.bf16 %v1318_v52, %v1316_v49  ;;  %v1317_v59 = vld [vmem:[%s6589_s4 + $0x5f0] sm:$0xff]  ;;  %v1379_v45 = vld [vmem:[%s6589_s4 + $0x7e0] sm:$0xff]  ;;  %v1376_v1 = vld [vmem:[%s6589_s4 + $0x7c8] sm:$0xff] }
 0x114   :  { %2797 = vmatpush1.bf16.msra.mxu0 %v1535_v17  ;;  %v1562_v17 = vpack.c.bf16 %v1326_v63, %v1324_v62  ;;  %v1381_v46 = vld [vmem:[%s6589_s4 + $0x7f0] sm:$0xff]  ;;  %v1312_v63 = vld [vmem:[%s6589_s4 + $0x5c8] sm:$0xff]  ;;  %v3659_v51 = vcombine.low %v4818_v3, %v4825_v5  ;;  %v747_v9 = vld [vmem:[%s6591_s3 + $0x23c] sm:$0xff] }
 0x115   :  { %2970 = vmatpush1.bf16.msra.mxu1 %v1567_v18  ;;  %2798 = vmatprep.subr.bf16.mxu0 %v1534_v19  ;;  %v1256_v18 = vld [vmem:[%s6589_s4 + $0x408] sm:$0xff]  ;;  %v1258_v19 = vld [vmem:[%s6589_s4 + $0x418] sm:$0xff]  ;;  %v4858_v23 = vcombine.low %v896_v13, %v903_v14  ;;  %v741_v4 = vld [vmem:[%s6591_s3 + $0x210] sm:$0xff]  ;;  %v3661_v14 = vcombine.low %v4839_v15, %v4842_v16 }
 0x116   :  { %2497 = vmatmul.mubr.bf16.gmra.mxu0 %v3637_v44  ;;  %2971 = vmatprep.subr.bf16.mxu1 %v1566_v33  ;;  %v735_v33 = vld [vmem:[%s6591_s3 + $0x1e4] sm:$0xff]  ;;  %v1257_v44 = vld [vmem:[%s6589_s4 + $0x410] sm:$0xff]  ;;  %v1310_v27 = vld [vmem:[%s6589_s4 + $0x5b8] sm:$0xff] }
 0x117   :  { %2670 = vmatmul.mubr.bf16.gmra.mxu1 %v3639_v54  ;;  %2506 = vmatprep.mubr.bf16.mxu0 %v3649_v56  ;;  %v1380_v54 = vld [vmem:[%s6589_s4 + $0x7e8] sm:$0xff]  ;;  %v1382_v56 = vld [vmem:[%s6589_s4 + $0x7f8] sm:$0xff]  ;;  %v1311_v13 = vld [vmem:[%s6589_s4 + $0x5c0] sm:$0xff] }
 0x118   :  { %2679 = vmatprep.mubr.bf16.mxu1 %v3651_v35  ;;  %2799 = vmatpush1.bf16.msra.mxu0 %v1533_v26  ;;  %v3648_v26 = vcombine.low %v4757_v24, %v4760_v25  ;;  %v3660_v24 = vcombine.high %v4818_v3, %v4825_v5  ;;  %v1528_v25 = vpack.c.bf16 %v1258_v19, %v1256_v18  ;;  %v742_v5 = vld [vmem:[%s6591_s3 + $0x218] sm:$0xff]  ;;  %v1313_v18 = vld [vmem:[%s6589_s4 + $0x5d0] sm:$0xff]  ;;  %v1375_v19 = vld [vmem:[%s6589_s4 + $0x7c0] sm:$0xff] }
 0x119   :  { %2972 = vmatpush1.bf16.msra.mxu1 %v1565_v38  ;;  %2800 = vmatprep.subr.bf16.mxu0 %v1532_v39  ;;  %v1561_v38 = vpack.c.bf16 %v1325_v12, %v1323_v11  ;;  %v1255_v39 = vld [vmem:[%s6589_s4 + $0x400] sm:$0xff]  ;;  %v4911_v35 = vmul.bf16 %v4524_v31, %v735_v33  ;;  %v1590_v62 = vpack.c.bf16 %v1382_v56, %v1380_v54  ;;  %v1306_v49 = vld [vmem:[%s6589_s4 + $0x598] sm:$0xff] }
 0x11a   :  { %2973 = vmatprep.subr.bf16.mxu1 %v1564_v43  ;;  %v3650_v43 = vcombine.low %v4765_v30, %v4768_v32  ;;  %v3662_v30 = vcombine.high %v4839_v15, %v4842_v16  ;;  %v730_v32 = vld [vmem:[%s6591_s3 + $0x1c0] sm:$0xff]  ;;  %v1527_v28 = vpack.c.bf16 %v1257_v44, %v1255_v39  ;;  %v1557_v11 = vpack.c.bf16 %v1317_v59, %v1315_v57  ;;  %v1377_v15 = vld [vmem:[%s6589_s4 + $0x7d0] sm:$0xff]  ;;  %v4996_v44 = vld [vmem:[%s6590_s2 + $0x8] sm:$0x7] }
 0x11b   :  { %v4923_v60 = vmul.bf16 %v4535_v36, %v730_v32  ;;  %v1589_v12 = vpack.c.bf16 %v1381_v46, %v1379_v45  ;;  %v3671_v3 = vcombine.high %v4908_v58, %v4911_v35  ;;  %v1307_v33 = vld [vmem:[%s6589_s4 + $0x5a0] sm:$0xff]  ;;  %v1555_v39 = vpack.c.bf16 %v1313_v18, %v1311_v13  ;;  %v1373_v32 = vld [vmem:[%s6589_s4 + $0x7b0] sm:$0xff]  ;;  %v753_v46 = vld [vmem:[%s6591_s3 + $0x268] sm:$0xff] }
 0x11c   :  { %2801 = vmatpush1.bf16.msra.mxu0 %v1531_v40  ;;  %v1319_v40 = vld [vmem:[%s6589_s4 + $0x600] sm:$0xff]  ;;  %v5014_v52 = vmul.bf16 %v4535_v36, %v742_v5  ;;  %v300_v57 = vrot.slane %v4996_v44, %v4488_v7  ;;  %v3670_v59 = vcombine.low %v4908_v58, %v4911_v35  ;;  %v754_v35 = vld [vmem:[%s6591_s3 + $0x270] sm:$0xff]  ;;  %v1366_v13 = vld [vmem:[%s6589_s4 + $0x778] sm:$0xff] }
 0x11d   :  { %2974 = vmatpush1.bf16.msra.mxu1 %v1563_v61  ;;  %2802 = vmatprep.subr.bf16.mxu0 %v1530_v50  ;;  %v1559_v29 = vpack.c.bf16 %v1321_v47, %v1319_v40  ;;  %v4926_v61 = vmul.bf16 %v4535_v36, %v736_v53  ;;  %v1378_v50 = vld [vmem:[%s6589_s4 + $0x7d8] sm:$0xff]  ;;  %v4999_v40 = vmul.bf16 %v4524_v31, %v741_v4  ;;  %v1299_v18 = vld [vmem:[%s6589_s4 + $0x560] sm:$0xff] }
 0x11e   :  { %2507 = vmatmul.mubr.bf16.gmra.mxu0 %v3648_v26  ;;  %2975 = vmatprep.subr.bf16.mxu1 %v1562_v17  ;;  %v1556_v17 = vpack.c.bf16 %v1314_v0, %v1312_v63  ;;  %v1588_v22 = vpack.c.bf16 %v1378_v50, %v1376_v1  ;;  %v1308_v26 = vld [vmem:[%s6589_s4 + $0x5a8] sm:$0xff]  ;;  %v5002_v47 = vmul.bf16 %v4524_v31, %v747_v9  ;;  %v1369_v1 = vld [vmem:[%s6589_s4 + $0x790] sm:$0xff]  ;;  %v760_v9 = vld [vmem:[%s6591_s3 + $0x29c] sm:$0xff] }
 0x11f   :  { %2680 = vmatmul.mubr.bf16.gmra.mxu1 %v3650_v43  ;;  %2516 = vmatprep.mubr.bf16.mxu0 %v3660_v24  ;;  %v3673_v16 = vcombine.high %v4923_v60, %v4926_v61  ;;  %v1587_v43 = vpack.c.bf16 %v1377_v15, %v1375_v19  ;;  %v1309_v24 = vld [vmem:[%s6589_s4 + $0x5b0] sm:$0xff]  ;;  %v5017_v53 = vmul.bf16 %v4535_v36, %v748_v21 }
 0x120   :  { %2689 = vmatprep.mubr.bf16.mxu1 %v3662_v30  ;;  %2803 = vmatpush1.bf16.msra.mxu0 %v1529_v34  ;;  %v1372_v34 = vld [vmem:[%s6589_s4 + $0x7a8] sm:$0xff]  ;;  %v1554_v30 = vpack.c.bf16 %v1310_v27, %v1308_v26  ;;  %v1553_v56 = vpack.c.bf16 %v1309_v24, %v1307_v33  ;;  %v3672_v45 = vcombine.low %v4923_v60, %v4926_v61  ;;  %v1305_v60 = vld [vmem:[%s6589_s4 + $0x590] sm:$0xff]  ;;  %v1367_v61 = vld [vmem:[%s6589_s4 + $0x780] sm:$0xff] }
 0x121   :  { %2976 = vmatpush1.bf16.msra.mxu1 %v1561_v38  ;;  %2804 = vmatprep.subr.bf16.mxu0 %v1528_v25  ;;  %v1374_v38 = vld [vmem:[%s6589_s4 + $0x7b8] sm:$0xff]  ;;  %v1371_v25 = vld [vmem:[%s6589_s4 + $0x7a0] sm:$0xff]  ;;  %v3682_v58 = vcombine.high %v4999_v40, %v5002_v47  ;;  %v557_v50 = vadd.f32 %v4543_v41, %v300_v57  ;;  %v3684_v4 = vcombine.high %v5014_v52, %v5017_v53  ;;  %v1301_v21 = vld [vmem:[%s6589_s4 + $0x570] sm:$0xff] }
 0x122   :  { %2977 = vmatprep.subr.bf16.mxu1 %v1560_v48  ;;  %v1304_v48 = vld [vmem:[%s6589_s4 + $0x588] sm:$0xff]  ;;  %v1586_v54 = vpack.c.bf16 %v1374_v38, %v1372_v34  ;;  %v1585_v63 = vpack.c.bf16 %v1373_v32, %v1371_v25  ;;  %v1302_v41 = vld [vmem:[%s6589_s4 + $0x578] sm:$0xff]  ;;  %v5080_v19 = vmul.bf16 %v4524_v31, %v753_v46  ;;  %v1365_v26 = vld [vmem:[%s6589_s4 + $0x770] sm:$0xff]  ;;  %v5095_v27 = vmul.bf16 %v4535_v36, %v754_v35 }
 0x123   :  { %v1552_v0 = vpack.c.bf16 %v1306_v49, %v1304_v48  ;;  %v5098_v33 = vmul.bf16 %v4535_v36, %v760_v9  ;;  %v1296_v38 = vld [vmem:[%s6589_s4 + $0x548] sm:$0xff]  ;;  %v1362_v24 = vld [vmem:[%s6589_s4 + $0x758] sm:$0xff]  ;;  %v3681_v25 = vcombine.low %v4999_v40, %v5002_v47  ;;  %v1549_v48 = vpack.c.bf16 %v1301_v21, %v1299_v18  ;;  %v1361_v57 = vld [vmem:[%s6589_s4 + $0x750] sm:$0xff] }
 0x124   :  { %2805 = vmatpush1.bf16.msra.mxu0 %v1527_v28  ;;  %v1368_v28 = vld [vmem:[%s6589_s4 + $0x788] sm:$0xff]  ;;  %v772_v46 = vld [vmem:[%s6591_s3 + $0x2f4] sm:$0xff] }
 0x125   :  { %2978 = vmatpush1.bf16.msra.mxu1 %v1559_v29  ;;  %2806 = vmatprep.subr.bf16.mxu0 %v1558_v37  ;;  %v1370_v29 = vld [vmem:[%s6589_s4 + $0x798] sm:$0xff]  ;;  %v304_v37 = vrot.slane %v4996_v44, %v271_v10  ;;  %v1303_v10 = vld [vmem:[%s6589_s4 + $0x580] sm:$0xff]  ;;  %v771_v32 = vld [vmem:[%s6591_s3 + $0x2ec] sm:$0xff]  ;;  %v5178_v9 = vmul.bf16 %v4535_v36, %v772_v46  ;;  %v3694_v21 = vcombine.low %v5095_v27, %v5098_v33 }
 0x126   :  { %2517 = vmatmul.mubr.bf16.gmra.mxu0 %v3659_v51  ;;  %2979 = vmatprep.subr.bf16.mxu1 %v1590_v62  ;;  %v759_v62 = vld [vmem:[%s6591_s3 + $0x294] sm:$0xff]  ;;  %v1551_v5 = vpack.c.bf16 %v1305_v60, %v1303_v10  ;;  %v5163_v60 = vmul.bf16 %v4524_v31, %v771_v32  ;;  %v1460_v32 = vld [vmem:[%s6589_s4 + $0xa68] sm:$0xff] }
 0x127   :  { %2690 = vmatmul.mubr.bf16.gmra.mxu1 %v3661_v14  ;;  %2526 = vmatprep.mubr.bf16.mxu0 %v3671_v3  ;;  %v559_v51 = vadd.f32 %v4575_v55, %v304_v37  ;;  %v1364_v55 = vld [vmem:[%s6589_s4 + $0x768] sm:$0xff]  ;;  %v3606_v14 = vmul.f32 -1.442695, %v557_v50  ;;  %v5083_v15 = vmul.bf16 %v4524_v31, %v759_v62  ;;  %v1355_v50 = vld [vmem:[%s6589_s4 + $0x720] sm:$0xff] }
 0x128   :  { %2699 = vmatprep.mubr.bf16.mxu1 %v3673_v16  ;;  %2807 = vmatpush2.bf16.msra.mxu0 %v1557_v11  ;;  %v1584_v11 = vpack.c.bf16 %v1370_v29, %v1368_v28  ;;  %v1582_v34 = vpack.c.bf16 %v1366_v13, %v1364_v55  ;;  %v1297_v28 = vld [vmem:[%s6589_s4 + $0x550] sm:$0xff]  ;;  %v1359_v29 = vld [vmem:[%s6589_s4 + $0x740] sm:$0xff]  ;;  %v1356_v62 = vld [vmem:[%s6589_s4 + $0x728] sm:$0xff] }
 0x129   :  { %2980 = vmatpush2.bf16.msra.mxu1 %v1589_v12  ;;  %2808 = vmatprep.subr.bf16.mxu0 %v1556_v17  ;;  %v1300_v12 = vld [vmem:[%s6589_s4 + $0x568] sm:$0xff]  ;;  %v3607_v3 = vmul.f32 -1.442695, %v559_v51  ;;  %v1583_v17 = vpack.c.bf16 %v1369_v1, %v1367_v61  ;;  %3894 = vpow2.f32 %v3606_v14  ;;  %v3693_v40 = vcombine.high %v5080_v19, %v5083_v15  ;;  %v1293_v1 = vld [vmem:[%s6589_s4 + $0x530] sm:$0xff]  ;;  %v1354_v13 = vld [vmem:[%s6589_s4 + $0x718] sm:$0xff] }
 0x12a   :  { %2981 = vmatprep.subr.bf16.mxu1 %v1588_v22  ;;  %v1550_v16 = vpack.c.bf16 %v1302_v41, %v1300_v12  ;;  %v1363_v22 = vld [vmem:[%s6589_s4 + $0x760] sm:$0xff]  ;;  %v1579_v10 = vpack.c.bf16 %v1361_v57, %v1359_v29  ;;  %v1357_v51 = vld [vmem:[%s6589_s4 + $0x730] sm:$0xff]  ;;  %v1288_v12 = vld [vmem:[%s6589_s4 + $0x508] sm:$0xff]  ;;  %v3692_v14 = vcombine.low %v5080_v19, %v5083_v15 }
 0x12b   :  { %3896 = vpow2.f32 %v3607_v3  ;;  %v1581_v49 = vpack.c.bf16 %v1365_v26, %v1363_v22  ;;  %v1290_v41 = vld [vmem:[%s6589_s4 + $0x518] sm:$0xff]  ;;  %v1352_v55 = vld [vmem:[%s6589_s4 + $0x708] sm:$0xff]  ;;  %v1577_v18 = vpack.c.bf16 %v1357_v51, %v1355_v50  ;;  %v1289_v22 = vld [vmem:[%s6589_s4 + $0x510] sm:$0xff] }
 0x12c   :  { %2809 = vmatpush2.bf16.msra.mxu0 %v1555_v39  ;;  %v1298_v39 = vld [vmem:[%s6589_s4 + $0x558] sm:$0xff]  ;;  %v1544_v15 = vpack.c.bf16 %v1290_v41, %v1288_v12  ;;  %v1351_v26 = vld [vmem:[%s6589_s4 + $0x700] sm:$0xff] }
 0x12d   :  { %2982 = vmatpush2.bf16.msra.mxu1 %v1587_v43  ;;  %2810 = vmatprep.subr.bf16.mxu0 %v1554_v30  ;;  %v1360_v43 = vld [vmem:[%s6589_s4 + $0x748] sm:$0xff]  ;;  %v765_v30 = vld [vmem:[%s6591_s3 + $0x2c0] sm:$0xff]  ;;  %v1548_v47 = vpack.c.bf16 %v1298_v39, %v1296_v38  ;;  %v777_v3 = vld [vmem:[%s6591_s3 + $0x318] sm:$0xff]  ;;  %v1576_v39 = vpack.c.bf16 %v1354_v13, %v1352_v55 }
 0x12e   :  { %2527 = vmatmul.mubr.bf16.gmra.mxu0 %v3670_v59  ;;  %2983 = vmatprep.subr.bf16.mxu1 %v1586_v54  ;;  %v1295_v54 = vld [vmem:[%s6589_s4 + $0x540] sm:$0xff]  ;;  %v1580_v37 = vpack.c.bf16 %v1362_v24, %v1360_v43  ;;  %v1292_v59 = vld [vmem:[%s6589_s4 + $0x528] sm:$0xff]  ;;  %v5160_v35 = vmul.bf16 %v4524_v31, %v765_v30  ;;  %v1414_v24 = vld [vmem:[%s6589_s4 + $0x8f8] sm:$0xff] }
 0x12f   :  { %2700 = vmatmul.mubr.bf16.gmra.mxu1 %v3672_v45  ;;  %2536 = vmatprep.mubr.bf16.mxu0 %v3682_v58  ;;  %v1294_v45 = vld [vmem:[%s6589_s4 + $0x538] sm:$0xff]  ;;  %v1291_v58 = vld [vmem:[%s6589_s4 + $0x520] sm:$0xff]  ;;  %v1412_v43 = vld [vmem:[%s6589_s4 + $0x8e8] sm:$0xff] }
 0x130   :  { %2709 = vmatprep.mubr.bf16.mxu1 %v3684_v4  ;;  %2811 = vmatpush2.bf16.msra.mxu0 %v1553_v56  ;;  %v3683_v56 = vcombine.low %v5014_v52, %v5017_v53  ;;  %v3695_v52 = vcombine.high %v5095_v27, %v5098_v33  ;;  %v766_v53 = vld [vmem:[%s6591_s3 + $0x2c8] sm:$0xff]  ;;  %v1546_v61 = vpack.c.bf16 %v1294_v45, %v1292_v59  ;;  %v778_v33 = vld [vmem:[%s6591_s3 + $0x320] sm:$0xff]  ;;  %v807_v12 = vld [vmem:[%s6591_s3 + $0x3f4] sm:$0xff] }
 0x131   :  { %2984 = vmatpush2.bf16.msra.mxu1 %v1585_v63  ;;  %2812 = vmatprep.subr.bf16.mxu0 %v1552_v0  ;;  %v1358_v63 = vld [vmem:[%s6589_s4 + $0x738] sm:$0xff]  ;;  %v1547_v0 = vpack.c.bf16 %v1297_v28, %v1295_v54  ;;  %v5175_v4 = vmul.bf16 %v4535_v36, %v766_v53  ;;  %v3704_v19 = vcombine.high %v5160_v35, %v5163_v60  ;;  %v784_v30 = vld [vmem:[%s6591_s3 + $0x34c] sm:$0xff] }
 0x132   :  { %2985 = vmatprep.subr.bf16.mxu1 %v1584_v11  ;;  %v1578_v11 = vpack.c.bf16 %v1358_v63, %v1356_v62  ;;  %v1606_v29 = vpack.c.bf16 %v1414_v24, %v1412_v43  ;;  %v1068_v57 = vmul.bf16 %v4535_v36, %v778_v33  ;;  %v789_v62 = vld [vmem:[%s6591_s3 + $0x370] sm:$0xff]  ;;  %v795_v63 = vld [vmem:[%s6591_s3 + $0x39c] sm:$0xff]  ;;  %v814_v24 = vld [vmem:[%s6591_s3 + $0x428] sm:$0xff] }
 0x133   :  { %v3706_v27 = vcombine.high %v5175_v4, %v5178_v9  ;;  %v3705_v59 = vcombine.low %v5175_v4, %v5178_v9  ;;  %v802_v55 = vld [vmem:[%s6591_s3 + $0x3d0] sm:$0xff]  ;;  %v808_v13 = vld [vmem:[%s6591_s3 + $0x3fc] sm:$0xff] }
 0x134   :  { %2813 = vmatpush2.bf16.msra.mxu0 %v1551_v5  ;;  %v783_v5 = vld [vmem:[%s6591_s3 + $0x344] sm:$0xff] }
 0x135   :  { %2986 = vmatpush2.bf16.msra.mxu1 %v1583_v17  ;;  %2814 = vmatprep.subr.bf16.mxu0 %v1550_v16  ;;  %v1545_v17 = vpack.c.bf16 %v1293_v1, %v1291_v58  ;;  %v1287_v16 = vld [vmem:[%s6589_s4 + $0x500] sm:$0xff]  ;;  %v1073_v28 = vmul.bf16 %v4524_v31, %v783_v5  ;;  %v1079_v58 = vmul.bf16 %v4524_v31, %v789_v62  ;;  %v671_v62 = vld [vmem:[%s6591_s3 + $0x10] sm:$0xff] }
 0x136   :  { %2537 = vmatmul.mubr.bf16.gmra.mxu0 %v3681_v25  ;;  %2987 = vmatprep.subr.bf16.mxu1 %v1582_v34  ;;  %v1353_v34 = vld [vmem:[%s6589_s4 + $0x710] sm:$0xff]  ;;  %v3895_v38 = vpop.eup %3894  ;;  %v1543_v54 = vpack.c.bf16 %v1289_v22, %v1287_v16  ;;  %v1092_v16 = vmul.bf16 %v4535_v36, %v802_v55  ;;  %v813_v33 = vld [vmem:[%s6591_s3 + $0x420] sm:$0xff] }
 0x137   :  { %2710 = vmatmul.mubr.bf16.gmra.mxu1 %v3683_v56  ;;  %2546 = vmatprep.mubr.bf16.mxu0 %v3693_v40  ;;  %v1575_v56 = vpack.c.bf16 %v1353_v34, %v1351_v26  ;;  %v690_v55 = vld [vmem:[%s6591_s3 + $0x9c] sm:$0xff] }
 0x138   :  { %2719 = vmatprep.mubr.bf16.mxu1 %v3695_v52  ;;  %2815 = vmatpush2.bf16.msra.mxu0 %v1549_v48  ;;  %v3897_v25 = vpop.eup %3896  ;;  %v1462_v48 = vld [vmem:[%s6589_s4 + $0xa78] sm:$0xff]  ;;  %v1074_v52 = vmul.bf16 %v4535_v36, %v784_v30  ;;  %v1103_v30 = vmul.bf16 %v4524_v31, %v813_v33  ;;  %v1407_v33 = vld [vmem:[%s6589_s4 + $0x8c0] sm:$0xff] }
 0x139   :  { %2988 = vmatpush2.bf16.msra.mxu1 %v1581_v49  ;;  %2816 = vmatprep.subr.bf16.mxu0 %v1548_v47  ;;  %v644_v49 = vadd.f32 1.0, %v3895_v38  ;;  %v645_v40 = vadd.f32 1.0, %v3897_v25  ;;  %v1067_v47 = vmul.bf16 %v4524_v31, %v777_v3  ;;  %v1630_v53 = vpack.c.bf16 %v1462_v48, %v1460_v32  ;;  %v820_v25 = vld [vmem:[%s6591_s3 + $0x454] sm:$0xff] }
 0x13a   :  { %2989 = vmatprep.subr.bf16.mxu1 %v1580_v37  ;;  %v3703_v37 = vcombine.low %v5160_v35, %v5163_v60  ;;  %v3717_v46 = vcombine.high %v1068_v57, %v1074_v52  ;;  %v1085_v35 = vmul.bf16 %v4524_v31, %v795_v63  ;;  %v3716_v50 = vcombine.low %v1068_v57, %v1074_v52  ;;  %v826_v57 = vld [vmem:[%s6591_s3 + $0x480] sm:$0xff]  ;;  %v832_v52 = vld [vmem:[%s6591_s3 + $0x4ac] sm:$0xff] }
 0x13b   :  { %3898 = vrcp.f32 %v644_v49  ;;  %v3715_v45 = vcombine.high %v1067_v47, %v1073_v28  ;;  %v3714_v1 = vcombine.low %v1067_v47, %v1073_v28  ;;  %v1104_v48 = vmul.bf16 %v4535_v36, %v814_v24  ;;  %v825_v28 = vld [vmem:[%s6591_s3 + $0x478] sm:$0xff]  ;;  %v695_v24 = vld [vmem:[%s6591_s3 + $0xc0] sm:$0xff] }
 0x13c   :  { %2817 = vmatpush2.bf16.msra.mxu0 %v1547_v0  ;;  %3900 = vrcp.f32 %v645_v40  ;;  %v790_v0 = vld [vmem:[%s6591_s3 + $0x378] sm:$0xff]  ;;  %v3726_v51 = vcombine.high %v1079_v58, %v1085_v35  ;;  %v3725_v22 = vcombine.low %v1079_v58, %v1085_v35  ;;  %v1110_v49 = vmul.bf16 %v4535_v36, %v820_v25 }
 0x13d   :  { %2990 = vmatpush2.bf16.msra.mxu1 %v1579_v10  ;;  %2818 = vmatprep.subr.bf16.mxu0 %v1546_v61  ;;  %v796_v10 = vld [vmem:[%s6591_s3 + $0x3a4] sm:$0xff]  ;;  %v1080_v60 = vmul.bf16 %v4535_v36, %v790_v0  ;;  %v677_v63 = vld [vmem:[%s6591_s3 + $0x3c] sm:$0xff]  ;;  %v961_v35 = vmul.bf16 %v4850_v20, %v671_v62 }
 0x13e   :  { %2547 = vmatmul.mubr.bf16.gmra.mxu0 %v3692_v14  ;;  %2991 = vmatprep.subr.bf16.mxu1 %v1578_v11  ;;  %v1086_v61 = vmul.bf16 %v4535_v36, %v796_v10  ;;  %v801_v11 = vld [vmem:[%s6591_s3 + $0x3c8] sm:$0xff]  ;;  %v3750_v47 = vcombine.high %v1104_v48, %v1110_v49  ;;  %v3749_v0 = vcombine.low %v1104_v48, %v1110_v49  ;;  %v672_v58 = vld [vmem:[%s6591_s3 + $0x18] sm:$0xff]  ;;  %v1403_v62 = vld [vmem:[%s6589_s4 + $0x8a0] sm:$0xff] }
 0x13f   :  { %2720 = vmatmul.mubr.bf16.gmra.mxu1 %v3694_v21  ;;  %2556 = vmatprep.mubr.bf16.mxu0 %v3704_v19  ;;  %v1091_v5 = vmul.bf16 %v4524_v31, %v801_v11  ;;  %v1098_v21 = vmul.bf16 %v4535_v36, %v808_v13  ;;  %v683_v11 = vld [vmem:[%s6591_s3 + $0x68] sm:$0xff]  ;;  %v1411_v13 = vld [vmem:[%s6589_s4 + $0x8e0] sm:$0xff]  ;;  %v1406_v49 = vld [vmem:[%s6589_s4 + $0x8b8] sm:$0xff] }
 0x140   :  { %2729 = vmatprep.mubr.bf16.mxu1 %v3706_v27  ;;  %2819 = vmatpush2.bf16.msra.mxu0 %v1545_v17  ;;  %v3728_v9 = vcombine.high %v1080_v60, %v1086_v61  ;;  %v1097_v17 = vmul.bf16 %v4524_v31, %v807_v12  ;;  %v3727_v34 = vcombine.low %v1080_v60, %v1086_v61  ;;  %v689_v12 = vld [vmem:[%s6591_s3 + $0x94] sm:$0xff]  ;;  %v1404_v48 = vld [vmem:[%s6589_s4 + $0x8a8] sm:$0xff] }
 0x141   :  { %2992 = vmatpush2.bf16.msra.mxu1 %v1577_v18  ;;  %2820 = vmatprep.subr.bf16.mxu0 %v1544_v15  ;;  %v3739_v27 = vcombine.high %v1092_v16, %v1098_v21  ;;  %v967_v60 = vmul.bf16 %v4850_v20, %v677_v63  ;;  %v962_v61 = vmul.bf16 %v4858_v23, %v672_v58  ;;  %v1405_v63 = vld [vmem:[%s6589_s4 + $0x8b0] sm:$0xff] }
 0x142   :  { %2993 = vmatprep.subr.bf16.mxu1 %v1576_v39  ;;  %v3737_v38 = vcombine.high %v1091_v5, %v1097_v17  ;;  %v819_v39 = vld [vmem:[%s6591_s3 + $0x44c] sm:$0xff] }
 0x143   :  { %v1109_v32 = vmul.bf16 %v4524_v31, %v819_v39  ;;  %v1409_v39 = vld [vmem:[%s6589_s4 + $0x8d0] sm:$0xff] }
 0x144   :  { %2821 = vmatpush2.bf16.msra.mxu0 %v1543_v54  ;;  %v3736_v54 = vcombine.low %v1091_v5, %v1097_v17  ;;  %v5350_v5 = vmul.bf16 %v4850_v20, %v683_v11  ;;  %v5353_v17 = vmul.bf16 %v4850_v20, %v689_v12  ;;  %v713_v11 = vld [vmem:[%s6591_s3 + $0x144] sm:$0xff] }
 0x145   :  { %2994 = vmatpush2.bf16.msra.mxu1 %v1575_v56  ;;  %3136 = vmatprep.subr.bf16.mxu0 %v1606_v29  ;;  %v3738_v56 = vcombine.low %v1092_v16, %v1098_v21  ;;  %v3748_v40 = vcombine.high %v1103_v30, %v1109_v32  ;;  %v831_v29 = vld [vmem:[%s6591_s3 + $0x4a4] sm:$0xff]  ;;  %v5359_v16 = vmul.bf16 %v4858_v23, %v690_v55  ;;  %v1461_v21 = vld [vmem:[%s6589_s4 + $0xa70] sm:$0xff] }
 0x146   :  { %2557 = vmatmul.mubr.bf16.gmra.mxu0 %v3703_v37  ;;  %3317 = vmatprep.subr.bf16.mxu1 %v1630_v53  ;;  %v1115_v53 = vmul.bf16 %v4524_v31, %v825_v28  ;;  %v1121_v37 = vmul.bf16 %v4524_v31, %v831_v29  ;;  %v678_v31 = vld [vmem:[%s6591_s3 + $0x44] sm:$0xff]  ;;  %v1457_v29 = vld [vmem:[%s6589_s4 + $0xa50] sm:$0xff] }
 0x147   :  { %2730 = vmatmul.mubr.bf16.gmra.mxu1 %v3705_v59  ;;  %2566 = vmatprep.mubr.bf16.mxu0 %v3715_v45  ;;  %v1116_v59 = vmul.bf16 %v4535_v36, %v826_v57  ;;  %v1122_v45 = vmul.bf16 %v4535_v36, %v832_v52  ;;  %v1455_v28 = vld [vmem:[%s6589_s4 + $0xa40] sm:$0xff]  ;;  %v1603_v57 = vpack.c.bf16 %v1409_v39, %v1407_v33  ;;  %v702_v52 = vld [vmem:[%s6591_s3 + $0xf4] sm:$0xff] }
 0x148   :  { %2739 = vmatprep.mubr.bf16.mxu1 %v3717_v46  ;;  %v3899_v4 = vpop.eup %3898  ;;  %v3747_v46 = vcombine.low %v1103_v30, %v1109_v32  ;;  %v3759_v10 = vcombine.high %v1115_v53, %v1121_v37  ;;  %v701_v32 = vld [vmem:[%s6591_s3 + $0xec] sm:$0xff]  ;;  %v1395_v33 = vld [vmem:[%s6589_s4 + $0x860] sm:$0xff] }
 0x149   :  { %v3901_v41 = vpop.eup %3900  ;;  %v845_v14 = vpack.c.bf16 %v3899_v4, %v3899_v4  ;;  %v3761_v36 = vcombine.high %v1116_v59, %v1122_v45  ;;  %v1397_v39 = vld [vmem:[%s6589_s4 + $0x870] sm:$0xff] }
 0x14a   :  { %v846_v3 = vpack.c.bf16 %v3901_v41, %v3901_v41  ;;  %v684_v41 = vld [vmem:[%s6591_s3 + $0x70] sm:$0xff] }
 0x14b   :  { %v905_v18 = vpack.i.b16 %v845_v14, %v845_v14  ;;  %v1413_v14 = vld [vmem:[%s6589_s4 + $0x8f0] sm:$0xff] }
 0x14c   :  { %v912_v19 = vpack.i.b16 %v846_v3, %v846_v3  ;;  %v1459_v3 = vld [vmem:[%s6589_s4 + $0xa60] sm:$0xff] }
 0x14d   :  { %v910_v15 = vrot.slane %v905_v18, %v4488_v7  ;;  %v5356_v18 = vmul.bf16 %v4858_v23, %v684_v41  ;;  %v1629_v25 = vpack.c.bf16 %v1461_v21, %v1459_v3  ;;  %v1396_v3 = vld [vmem:[%s6589_s4 + $0x868] sm:$0xff]  ;;  %v1447_v21 = vld [vmem:[%s6589_s4 + $0xa00] sm:$0xff] }
 0x14e   :  { %2567 = vmatmul.mubr.bf16.gmra.mxu0 %v3714_v1  ;;  %v917_v26 = vrot.slane %v912_v19, %v4488_v7  ;;  %v968_v1 = vmul.bf16 %v4858_v23, %v678_v31  ;;  %v1408_v19 = vld [vmem:[%s6589_s4 + $0x8c8] sm:$0xff]  ;;  %v5435_v31 = vmul.bf16 %v4858_v23, %v702_v52 }
 0x14f   :  { %2740 = vmatmul.mubr.bf16.gmra.mxu1 %v3716_v50  ;;  %2576 = vmatprep.mubr.bf16.mxu0 %v3726_v51  ;;  %v3620_v50 = vcombine.high %v961_v35, %v967_v60  ;;  %v3758_v51 = vcombine.low %v1115_v53, %v1121_v37  ;;  %v1452_v53 = vld [vmem:[%s6589_s4 + $0xa28] sm:$0xff]  ;;  %v1454_v37 = vld [vmem:[%s6589_s4 + $0xa38] sm:$0xff]  ;;  %v3632_v12 = vcombine.low %v5356_v18, %v5359_v16 }
 0x150   :  { %2749 = vmatprep.mubr.bf16.mxu1 %v3728_v9  ;;  %v5284_v43 = vcombine.low %v910_v15, %v917_v26  ;;  %v3622_v4 = vcombine.high %v962_v61, %v968_v1  ;;  %v3760_v9 = vcombine.low %v1116_v59, %v1122_v45  ;;  %v1410_v15 = vld [vmem:[%s6589_s4 + $0x8d8] sm:$0xff]  ;;  %v1605_v26 = vpack.c.bf16 %v1413_v14, %v1411_v13  ;;  %v1399_v13 = vld [vmem:[%s6589_s4 + $0x880] sm:$0xff]  ;;  %v1401_v14 = vld [vmem:[%s6589_s4 + $0x890] sm:$0xff] }
 0x151   :  { %v1604_v30 = vpack.c.bf16 %v1410_v15, %v1408_v19  ;;  %v1602_v59 = vpack.c.bf16 %v1406_v49, %v1404_v48  ;;  %v5417_v45 = vmul.bf16 %v4850_v20, %v695_v24  ;;  %v1449_v19 = vld [vmem:[%s6589_s4 + $0xa10] sm:$0xff]  ;;  %v708_v15 = vld [vmem:[%s6591_s3 + $0x120] sm:$0xff]  ;;  %v1394_v48 = vld [vmem:[%s6589_s4 + $0x858] sm:$0xff] }
 0x152   :  { %v1623_v24 = vpack.c.bf16 %v1449_v19, %v1447_v21 }
 0x156   :  { %2577 = vmatmul.mubr.bf16.gmra.mxu0 %v3725_v22  ;;  %v3621_v22 = vcombine.low %v962_v61, %v968_v1  ;;  %v1453_v61 = vld [vmem:[%s6589_s4 + $0xa30] sm:$0xff]  ;;  %v1448_v1 = vld [vmem:[%s6589_s4 + $0xa08] sm:$0xff] }
 0x157   :  { %2750 = vmatmul.mubr.bf16.gmra.mxu1 %v3727_v34  ;;  %2586 = vmatprep.mubr.bf16.mxu0 %v3737_v38  ;;  %v1456_v34 = vld [vmem:[%s6589_s4 + $0xa48] sm:$0xff]  ;;  %v1458_v38 = vld [vmem:[%s6589_s4 + $0xa58] sm:$0xff] }
 0x158   :  { %2759 = vmatprep.mubr.bf16.mxu1 %v3739_v27  ;;  %v3619_v27 = vcombine.low %v961_v35, %v967_v60  ;;  %v1626_v35 = vpack.c.bf16 %v1454_v37, %v1452_v53  ;;  %v1451_v60 = vld [vmem:[%s6589_s4 + $0xa20] sm:$0xff]  ;;  %v1388_v37 = vld [vmem:[%s6589_s4 + $0x828] sm:$0xff] }
 0x159   :  { %v725_v53 = vld [vmem:[%s6591_s3 + $0x19c] sm:$0xff] }
 0x15e   :  { %2587 = vmatmul.mubr.bf16.gmra.mxu0 %v3736_v54  ;;  %v3631_v54 = vcombine.high %v5350_v5, %v5353_v17 }
 0x15f   :  { %2760 = vmatmul.mubr.bf16.gmra.mxu1 %v3738_v56  ;;  %2596 = vmatprep.mubr.bf16.mxu0 %v3748_v40  ;;  %v3633_v56 = vcombine.high %v5356_v18, %v5359_v16  ;;  %v696_v40 = vld [vmem:[%s6591_s3 + $0xc8] sm:$0xff]  ;;  %v1398_v18 = vld [vmem:[%s6589_s4 + $0x878] sm:$0xff] }
 0x160   :  { %2769 = vmatprep.mubr.bf16.mxu1 %v3750_v47  ;;  %v1628_v47 = vpack.c.bf16 %v1458_v38, %v1456_v34  ;;  %v5432_v58 = vmul.bf16 %v4858_v23, %v696_v40  ;;  %v1599_v34 = vpack.c.bf16 %v1401_v14, %v1399_v13  ;;  %v1003_v38 = vmul.bf16 %v4850_v20, %v713_v11  ;;  %v737_v13 = vld [vmem:[%s6591_s3 + $0x1f4] sm:$0xff]  ;;  %v1444_v14 = vld [vmem:[%s6589_s4 + $0x9e8] sm:$0xff] }
 0x161   :  { %v1027_v21 = vmul.bf16 %v4850_v20, %v737_v13 }
 0x166   :  { %2597 = vmatmul.mubr.bf16.gmra.mxu0 %v3747_v46  ;;  %v5420_v46 = vmul.bf16 %v4850_v20, %v701_v32  ;;  %v1392_v32 = vld [vmem:[%s6589_s4 + $0x848] sm:$0xff] }
 0x167   :  { %2770 = vmatmul.mubr.bf16.gmra.mxu1 %v3749_v0  ;;  %2606 = vmatprep.mubr.bf16.mxu0 %v3759_v10  ;;  %v1400_v0 = vld [vmem:[%s6589_s4 + $0x888] sm:$0xff]  ;;  %v1627_v10 = vpack.c.bf16 %v1457_v29, %v1455_v28  ;;  %v1596_v28 = vpack.c.bf16 %v1394_v48, %v1392_v32  ;;  %v1391_v29 = vld [vmem:[%s6589_s4 + $0x840] sm:$0xff] }
 0x168   :  { %2779 = vmatprep.mubr.bf16.mxu1 %v3761_v36  ;;  %v1402_v36 = vld [vmem:[%s6589_s4 + $0x898] sm:$0xff]  ;;  %v3642_v41 = vcombine.high %v5417_v45, %v5420_v46  ;;  %v3641_v49 = vcombine.low %v5417_v45, %v5420_v46  ;;  %v726_v46 = vld [vmem:[%s6591_s3 + $0x1a4] sm:$0xff] }
 0x169   :  { %v1600_v55 = vpack.c.bf16 %v1402_v36, %v1400_v0  ;;  %v720_v45 = vld [vmem:[%s6591_s3 + $0x178] sm:$0xff]  ;;  %v1015_v0 = vmul.bf16 %v4850_v20, %v725_v53  ;;  %v1439_v48 = vld [vmem:[%s6589_s4 + $0x9c0] sm:$0xff] }
 0x16a   :  { %v1010_v36 = vmul.bf16 %v4858_v23, %v720_v45  ;;  %v1437_v45 = vld [vmem:[%s6589_s4 + $0x9b0] sm:$0xff] }
 0x16e   :  { %2607 = vmatmul.mubr.bf16.gmra.mxu0 %v3758_v51  ;;  %v3630_v51 = vcombine.low %v5350_v5, %v5353_v17  ;;  %v1625_v5 = vpack.c.bf16 %v1453_v61, %v1451_v60  ;;  %v3644_v17 = vcombine.high %v5432_v58, %v5435_v31  ;;  %v1384_v60 = vld [vmem:[%s6589_s4 + $0x808] sm:$0xff]  ;;  %v1386_v61 = vld [vmem:[%s6589_s4 + $0x818] sm:$0xff] }
 0x16f   :  { %2780 = vmatmul.mubr.bf16.gmra.mxu1 %v3760_v9  ;;  %2822 = vmatprep.mubr.bf16.mxu0 %v3620_v50  ;;  %v1450_v50 = vld [vmem:[%s6589_s4 + $0xa18] sm:$0xff]  ;;  %v1592_v11 = vpack.c.bf16 %v1386_v61, %v1384_v60  ;;  %v1431_v61 = vld [vmem:[%s6589_s4 + $0x980] sm:$0xff] }
 0x170   :  { %2995 = vmatprep.mubr.bf16.mxu1 %v3622_v4  ;;  %v1601_v4 = vpack.c.bf16 %v1405_v63, %v1403_v62  ;;  %v707_v9 = vld [vmem:[%s6591_s3 + $0x118] sm:$0xff]  ;;  %v1624_v16 = vpack.c.bf16 %v1450_v50, %v1448_v1 }
 0x176   :  { %2823 = vmatmul.mubr.bf16.vlgmr.msra.gmra.mxu0 %v3619_v27  ;;  %v1598_v27 = vpack.c.bf16 %v1398_v18, %v1396_v3  ;;  %v1446_v3 = vld [vmem:[%s6589_s4 + $0x9f8] sm:$0xff] }
 0x177   :  { %2996 = vmatmul.mubr.bf16.vlgmr.msra.gmra.mxu1 %v3621_v22  ;;  %3137 = vmatpush1.bf16.msra.mxu0 %v1605_v26  ;;  %v714_v22 = vld [vmem:[%s6591_s3 + $0x14c] sm:$0xff]  ;;  %v997_v26 = vmul.bf16 %v4850_v20, %v707_v9  ;;  %v1622_v19 = vpack.c.bf16 %v1446_v3, %v1444_v14 }
 0x178   :  { %2832 = vmatprep.mubr.bf16.mxu0 %v3631_v54  ;;  %3005 = vmatprep.mubr.bf16.mxu1 %v3633_v56  ;;  %v1597_v54 = vpack.c.bf16 %v1397_v39, %v1395_v33  ;;  %v3643_v56 = vcombine.low %v5432_v58, %v5435_v31  ;;  %v1387_v58 = vld [vmem:[%s6589_s4 + $0x820] sm:$0xff]  ;;  %v1389_v31 = vld [vmem:[%s6589_s4 + $0x830] sm:$0xff]  ;;  %v731_v9 = vld [vmem:[%s6591_s3 + $0x1c8] sm:$0xff] }
 0x179   :  { %3318 = vmatpush1.bf16.msra.mxu1 %v1629_v25  ;;  %3138 = vmatprep.subr.bf16.mxu0 %v1604_v30  ;;  %v998_v25 = vmul.bf16 %v4858_v23, %v708_v15  ;;  %v1004_v30 = vmul.bf16 %v4858_v23, %v714_v22  ;;  %v3653_v40 = vcombine.high %v997_v26, %v1003_v38  ;;  %v1443_v15 = vld [vmem:[%s6589_s4 + $0x9e0] sm:$0xff]  ;;  %v1445_v22 = vld [vmem:[%s6589_s4 + $0x9f0] sm:$0xff] }
 0x17a   :  { %3319 = vmatprep.subr.bf16.mxu1 %v1628_v47  ;;  %v719_v47 = vld [vmem:[%s6591_s3 + $0x170] sm:$0xff]  ;;  %v3652_v1 = vcombine.low %v997_v26, %v1003_v38  ;;  %v1593_v50 = vpack.c.bf16 %v1389_v31, %v1387_v58  ;;  %v1440_v38 = vld [vmem:[%s6589_s4 + $0x9c8] sm:$0xff]  ;;  %v1621_v39 = vpack.c.bf16 %v1445_v22, %v1443_v15 }
 0x17b   :  { %3139 = vmatpush1.bf16.msra.mxu0 %v1603_v57  ;;  %v1393_v57 = vld [vmem:[%s6589_s4 + $0x850] sm:$0xff]  ;;  %v3655_v52 = vcombine.high %v998_v25, %v1004_v30  ;;  %v1009_v63 = vmul.bf16 %v4850_v20, %v719_v47  ;;  %v1438_v47 = vld [vmem:[%s6589_s4 + $0x9b8] sm:$0xff] }
 0x17c   :  { %3140 = vmatprep.subr.bf16.mxu0 %v1602_v59  ;;  %v1390_v59 = vld [vmem:[%s6589_s4 + $0x838] sm:$0xff]  ;;  %v1595_v62 = vpack.c.bf16 %v1393_v57, %v1391_v29 }
 0x17d   :  { %3320 = vmatpush1.bf16.msra.mxu1 %v1627_v10  ;;  %v1594_v10 = vpack.c.bf16 %v1390_v59, %v1388_v37  ;;  %v3663_v33 = vcombine.low %v1009_v63, %v1015_v0  ;;  %v750_v29 = vld [vmem:[%s6591_s3 + $0x254] sm:$0xff]  ;;  %v1435_v59 = vld [vmem:[%s6589_s4 + $0x9a0] sm:$0xff] }
 0x17e   :  { %2833 = vmatmul.mubr.bf16.gmra.mxu0 %v3630_v51  ;;  %3321 = vmatprep.subr.bf16.mxu1 %v1626_v35  ;;  %v1016_v35 = vmul.bf16 %v4858_v23, %v726_v46  ;;  %v3654_v51 = vcombine.low %v998_v25, %v1004_v30  ;;  %v743_v30 = vld [vmem:[%s6591_s3 + $0x220] sm:$0xff]  ;;  %v1617_v58 = vpack.c.bf16 %v1437_v45, %v1435_v59 }
 0x17f   :  { %3006 = vmatmul.mubr.bf16.gmra.mxu1 %v3632_v12  ;;  %2842 = vmatprep.mubr.bf16.mxu0 %v3642_v41  ;;  %v1383_v12 = vld [vmem:[%s6589_s4 + $0x800] sm:$0xff]  ;;  %v1385_v41 = vld [vmem:[%s6589_s4 + $0x810] sm:$0xff] }
 0x180   :  { %3015 = vmatprep.mubr.bf16.mxu1 %v3644_v17  ;;  %3141 = vmatpush1.bf16.msra.mxu0 %v1601_v4  ;;  %v3664_v4 = vcombine.high %v1009_v63, %v1015_v0  ;;  %v738_v17 = vld [vmem:[%s6591_s3 + $0x1fc] sm:$0xff]  ;;  %v1591_v18 = vpack.c.bf16 %v1385_v41, %v1383_v12  ;;  %v1432_v63 = vld [vmem:[%s6589_s4 + $0x988] sm:$0xff] }
 0x181   :  { %3142 = vmatprep.subr.bf16.mxu0 %v1600_v55  ;;  %3322 = vmatpush1.bf16.msra.mxu1 %v1625_v5  ;;  %v3666_v55 = vcombine.high %v1010_v36, %v1016_v35  ;;  %v732_v5 = vld [vmem:[%s6591_s3 + $0x1d0] sm:$0xff]  ;;  %v1434_v0 = vld [vmem:[%s6589_s4 + $0x998] sm:$0xff] }
 0x182   :  { %3323 = vmatprep.subr.bf16.mxu1 %v1624_v16  ;;  %v1021_v16 = vmul.bf16 %v4850_v20, %v731_v9  ;;  %v1022_v26 = vmul.bf16 %v4858_v23, %v732_v5  ;;  %v1616_v60 = vpack.c.bf16 %v1434_v0, %v1432_v63  ;;  %v1430_v9 = vld [vmem:[%s6589_s4 + $0x978] sm:$0xff]  ;;  %v762_v12 = vld [vmem:[%s6591_s3 + $0x2ac] sm:$0xff]  ;;  %v1427_v5 = vld [vmem:[%s6589_s4 + $0x960] sm:$0xff] }
 0x183   :  { %v1052_v6 = vmul.bf16 %v4858_v23, %v762_v12  ;;  %v1417_v63 = vld [vmem:[%s6589_s4 + $0x910] sm:$0xff]  ;;  %v791_v12 = vld [vmem:[%s6591_s3 + $0x380] sm:$0xff] }
 0x184   :  { %3143 = vmatpush1.bf16.msra.mxu0 %v1599_v34  ;;  %v1028_v34 = vmul.bf16 %v4858_v23, %v738_v17  ;;  %v3675_v25 = vcombine.high %v1021_v16, %v1027_v21  ;;  %v1429_v17 = vld [vmem:[%s6589_s4 + $0x970] sm:$0xff] }
 0x185   :  { %3144 = vmatprep.subr.bf16.mxu0 %v1598_v27  ;;  %3324 = vmatpush1.bf16.msra.mxu1 %v1623_v24  ;;  %v1442_v27 = vld [vmem:[%s6589_s4 + $0x9d8] sm:$0xff]  ;;  %v3665_v24 = vcombine.low %v1010_v36, %v1016_v35 }
 0x186   :  { %2843 = vmatmul.mubr.bf16.gmra.mxu0 %v3641_v49  ;;  %v1620_v32 = vpack.c.bf16 %v1442_v27, %v1440_v38  ;;  %v1441_v49 = vld [vmem:[%s6589_s4 + $0x9d0] sm:$0xff]  ;;  %v3676_v31 = vcombine.low %v1022_v26, %v1028_v34  ;;  %v755_v35 = vld [vmem:[%s6591_s3 + $0x278] sm:$0xff]  ;;  %v1423_v38 = vld [vmem:[%s6589_s4 + $0x940] sm:$0xff] }
 0x187   :  { %3016 = vmatmul.mubr.bf16.gmra.mxu1 %v3643_v56  ;;  %2852 = vmatprep.mubr.bf16.mxu0 %v3653_v40  ;;  %v749_v56 = vld [vmem:[%s6591_s3 + $0x24c] sm:$0xff]  ;;  %v1619_v57 = vpack.c.bf16 %v1441_v49, %v1439_v48  ;;  %v1045_v13 = vmul.bf16 %v4850_v20, %v755_v35 }
 0x188   :  { %3025 = vmatprep.mubr.bf16.mxu1 %v3655_v52  ;;  %3145 = vmatpush1.bf16.msra.mxu0 %v1597_v54  ;;  %v3677_v54 = vcombine.high %v1022_v26, %v1028_v34  ;;  %v1436_v40 = vld [vmem:[%s6589_s4 + $0x9a8] sm:$0xff]  ;;  %v1033_v52 = vmul.bf16 %v4850_v20, %v743_v30  ;;  %v1039_v53 = vmul.bf16 %v4850_v20, %v749_v56  ;;  %v767_v26 = vld [vmem:[%s6591_s3 + $0x2d0] sm:$0xff] }
 0x189   :  { %3146 = vmatprep.subr.bf16.mxu0 %v1596_v28  ;;  %v744_v28 = vld [vmem:[%s6591_s3 + $0x228] sm:$0xff]  ;;  %v1618_v37 = vpack.c.bf16 %v1438_v47, %v1436_v40  ;;  %v1425_v27 = vld [vmem:[%s6589_s4 + $0x950] sm:$0xff]  ;;  %v1057_v49 = vmul.bf16 %v4850_v20, %v767_v26  ;;  %v1419_v40 = vld [vmem:[%s6589_s4 + $0x920] sm:$0xff] }
 0x18a   :  { %v1034_v46 = vmul.bf16 %v4858_v23, %v744_v28  ;;  %v3686_v36 = vcombine.high %v1033_v52, %v1039_v53  ;;  %v774_v30 = vld [vmem:[%s6591_s3 + $0x304] sm:$0xff]  ;;  %v1421_v47 = vld [vmem:[%s6589_s4 + $0x930] sm:$0xff] }
 0x18b   :  { %v810_v26 = vld [vmem:[%s6591_s3 + $0x40c] sm:$0xff] }
 0x18c   :  { %3147 = vmatpush1.bf16.msra.mxu0 %v1595_v62  ;;  %v1040_v62 = vmul.bf16 %v4858_v23, %v750_v29  ;;  %v1064_v29 = vmul.bf16 %v4858_v23, %v774_v30 }
 0x18d   :  { %3148 = vmatprep.subr.bf16.mxu0 %v1594_v10  ;;  %v3674_v10 = vcombine.low %v1021_v16, %v1027_v21  ;;  %v3685_v16 = vcombine.low %v1033_v52, %v1039_v53  ;;  %v1613_v21 = vpack.c.bf16 %v1429_v17, %v1427_v5  ;;  %v1418_v52 = vld [vmem:[%s6589_s4 + $0x918] sm:$0xff] }
 0x18e   :  { %2853 = vmatmul.mubr.bf16.gmra.mxu0 %v3652_v1  ;;  %v1433_v1 = vld [vmem:[%s6589_s4 + $0x990] sm:$0xff]  ;;  %v3687_v15 = vcombine.low %v1034_v46, %v1040_v62 }
 0x18f   :  { %3026 = vmatmul.mubr.bf16.gmra.mxu1 %v3654_v51  ;;  %2862 = vmatprep.mubr.bf16.mxu0 %v3664_v4  ;;  %v761_v51 = vld [vmem:[%s6591_s3 + $0x2a4] sm:$0xff]  ;;  %v1615_v41 = vpack.c.bf16 %v1433_v1, %v1431_v61 }
 0x190   :  { %3035 = vmatprep.mubr.bf16.mxu1 %v3666_v55  ;;  %3149 = vmatpush1.bf16.msra.mxu0 %v1593_v50  ;;  %v3688_v50 = vcombine.high %v1034_v46, %v1040_v62  ;;  %v1428_v4 = vld [vmem:[%s6589_s4 + $0x968] sm:$0xff]  ;;  %v308_v55 = vrot.slane %v4996_v44, %v275_v8  ;;  %v1051_v14 = vmul.bf16 %v4850_v20, %v761_v51  ;;  %v1426_v44 = vld [vmem:[%s6589_s4 + $0x958] sm:$0xff]  ;;  %v1415_v62 = vld [vmem:[%s6589_s4 + $0x900] sm:$0xff] }
 0x191   :  { %3150 = vmatprep.subr.bf16.mxu0 %v1592_v11  ;;  %v756_v11 = vld [vmem:[%s6591_s3 + $0x280] sm:$0xff]  ;;  %v1614_v3 = vpack.c.bf16 %v1430_v9, %v1428_v4  ;;  %v1424_v8 = vld [vmem:[%s6589_s4 + $0x948] sm:$0xff]  ;;  %v1607_v35 = vpack.c.bf16 %v1417_v63, %v1415_v62 }
 0x192   :  { %v3697_v22 = vcombine.high %v1045_v13, %v1051_v14  ;;  %v1612_v34 = vpack.c.bf16 %v1426_v44, %v1424_v8  ;;  %v3696_v53 = vcombine.low %v1045_v13, %v1051_v14  ;;  %v798_v13 = vld [vmem:[%s6591_s3 + $0x3b4] sm:$0xff]  ;;  %v1081_v14 = vmul.bf16 %v4850_v20, %v791_v12 }
 0x194   :  { %3151 = vmatpush1.bf16.msra.mxu0 %v1591_v18  ;;  %v1046_v18 = vmul.bf16 %v4858_v23, %v756_v11 }
 0x195   :  { %3152 = vmatprep.subr.bf16.mxu0 %v1622_v19  ;;  %v598_v19 = vadd.f32 %v4545_v42, %v308_v55  ;;  %v773_v42 = vld [vmem:[%s6591_s3 + $0x2fc] sm:$0xff]  ;;  %v792_v55 = vld [vmem:[%s6591_s3 + $0x388] sm:$0xff] }
 0x196   :  { %2863 = vmatmul.mubr.bf16.gmra.mxu0 %v3663_v33  ;;  %v3699_v33 = vcombine.high %v1046_v18, %v1052_v6  ;;  %v3698_v59 = vcombine.low %v1046_v18, %v1052_v6  ;;  %v1082_v17 = vmul.bf16 %v4858_v23, %v792_v55  ;;  %v1088_v18 = vmul.bf16 %v4858_v23, %v798_v13 }
 0x197   :  { %3036 = vmatmul.mubr.bf16.gmra.mxu1 %v3665_v24  ;;  %2872 = vmatprep.mubr.bf16.mxu0 %v3675_v25  ;;  %v1422_v24 = vld [vmem:[%s6589_s4 + $0x938] sm:$0xff]  ;;  %v3608_v48 = vmul.f32 -1.442695, %v598_v19 }
 0x198   :  { %3045 = vmatprep.mubr.bf16.mxu1 %v3677_v54  ;;  %3153 = vmatpush2.bf16.msra.mxu0 %v1621_v39  ;;  %v1420_v39 = vld [vmem:[%s6589_s4 + $0x928] sm:$0xff]  ;;  %v768_v25 = vld [vmem:[%s6591_s3 + $0x2d8] sm:$0xff]  ;;  %v1063_v54 = vmul.bf16 %v4850_v20, %v773_v42 }
 0x199   :  { %3154 = vmatprep.subr.bf16.mxu0 %v1620_v32  ;;  %v1611_v32 = vpack.c.bf16 %v1425_v27, %v1423_v38  ;;  %v1610_v56 = vpack.c.bf16 %v1422_v24, %v1420_v39  ;;  %v1058_v28 = vmul.bf16 %v4858_v23, %v768_v25  ;;  %3902 = vpow2.f32 %v3608_v48  ;;  %v803_v19 = vld [vmem:[%s6591_s3 + $0x3d8] sm:$0xff] }
 0x19a   :  { %v3708_v45 = vcombine.high %v1057_v49, %v1063_v54  ;;  %v3707_v51 = vcombine.low %v1057_v49, %v1063_v54  ;;  %v3731_v39 = vcombine.low %v1082_v17, %v1088_v18  ;;  %v821_v48 = vld [vmem:[%s6591_s3 + $0x45c] sm:$0xff] }
 0x19b   :  { %v3710_v0 = vcombine.high %v1058_v28, %v1064_v29  ;;  %v3709_v4 = vcombine.low %v1058_v28, %v1064_v29  ;;  %v816_v54 = vld [vmem:[%s6591_s3 + $0x438] sm:$0xff] }
 0x19c   :  { %3155 = vmatpush2.bf16.msra.mxu0 %v1619_v57  ;;  %v1416_v57 = vld [vmem:[%s6589_s4 + $0x908] sm:$0xff] }
 0x19d   :  { %3156 = vmatprep.subr.bf16.mxu0 %v1618_v37  ;;  %v1609_v37 = vpack.c.bf16 %v1421_v47, %v1419_v40  ;;  %v1608_v46 = vpack.c.bf16 %v1418_v52, %v1416_v57  ;;  %v1111_v57 = vmul.bf16 %v4850_v20, %v821_v48 }
 0x19e   :  { %2873 = vmatmul.mubr.bf16.gmra.mxu0 %v3674_v10  ;;  %v779_v10 = vld [vmem:[%s6591_s3 + $0x328] sm:$0xff] }
 0x19f   :  { %3046 = vmatmul.mubr.bf16.gmra.mxu1 %v3676_v31  ;;  %2882 = vmatprep.mubr.bf16.mxu0 %v3686_v36  ;;  %v780_v31 = vld [vmem:[%s6591_s3 + $0x330] sm:$0xff]  ;;  %v786_v36 = vld [vmem:[%s6591_s3 + $0x35c] sm:$0xff] }
 0x1a0   :  { %3055 = vmatprep.mubr.bf16.mxu1 %v3688_v50  ;;  %3157 = vmatpush2.bf16.msra.mxu0 %v1617_v58  ;;  %v785_v58 = vld [vmem:[%s6591_s3 + $0x354] sm:$0xff]  ;;  %v1070_v1 = vmul.bf16 %v4858_v23, %v780_v31  ;;  %v1076_v50 = vmul.bf16 %v4858_v23, %v786_v36 }
 0x1a1   :  { %3158 = vmatprep.subr.bf16.mxu0 %v1616_v60  ;;  %v1069_v60 = vmul.bf16 %v4850_v20, %v779_v10  ;;  %v1075_v61 = vmul.bf16 %v4850_v20, %v785_v58 }
 0x1a2   :  { %v3721_v11 = vcombine.high %v1070_v1, %v1076_v50  ;;  %v3720_v44 = vcombine.low %v1070_v1, %v1076_v50  ;;  %v833_v1 = vld [vmem:[%s6591_s3 + $0x4b4] sm:$0xff] }
 0x1a3   :  { %v3719_v9 = vcombine.high %v1069_v60, %v1075_v61  ;;  %v3718_v6 = vcombine.low %v1069_v60, %v1075_v61  ;;  %v827_v61 = vld [vmem:[%s6591_s3 + $0x488] sm:$0xff]  ;;  %v1123_v13 = vmul.bf16 %v4850_v20, %v833_v1 }
 0x1a4   :  { %3159 = vmatpush2.bf16.msra.mxu0 %v1615_v41  ;;  %v797_v41 = vld [vmem:[%s6591_s3 + $0x3ac] sm:$0xff]  ;;  %v1117_v55 = vmul.bf16 %v4850_v20, %v827_v61 }
 0x1a5   :  { %3160 = vmatprep.subr.bf16.mxu0 %v1614_v3  ;;  %v1087_v3 = vmul.bf16 %v4850_v20, %v797_v41 }
 0x1a6   :  { %2883 = vmatmul.mubr.bf16.gmra.mxu0 %v3685_v16  ;;  %v3903_v5 = vpop.eup %3902 }
 0x1a7   :  { %3056 = vmatmul.mubr.bf16.gmra.mxu1 %v3687_v15  ;;  %2892 = vmatprep.mubr.bf16.mxu0 %v3697_v22  ;;  %v646_v8 = vadd.f32 1.0, %v3903_v5  ;;  %v3730_v16 = vcombine.high %v1081_v14, %v1087_v3  ;;  %v809_v15 = vld [vmem:[%s6591_s3 + $0x404] sm:$0xff]  ;;  %v3729_v42 = vcombine.low %v1081_v14, %v1087_v3 }
 0x1a8   :  { %3065 = vmatprep.mubr.bf16.mxu1 %v3699_v33  ;;  %3161 = vmatpush2.bf16.msra.mxu0 %v1613_v21  ;;  %v3732_v21 = vcombine.high %v1082_v17, %v1088_v18  ;;  %v804_v22 = vld [vmem:[%s6591_s3 + $0x3e0] sm:$0xff]  ;;  %v1099_v38 = vmul.bf16 %v4850_v20, %v809_v15  ;;  %v1100_v33 = vmul.bf16 %v4858_v23, %v810_v26 }
 0x1a9   :  { %3162 = vmatprep.subr.bf16.mxu0 %v1612_v34  ;;  %3904 = vrcp.f32 %v646_v8  ;;  %v1093_v34 = vmul.bf16 %v4850_v20, %v803_v19  ;;  %v1094_v27 = vmul.bf16 %v4858_v23, %v804_v22  ;;  %v3763_v15 = vcombine.high %v1117_v55, %v1123_v13 }
 0x1ab   :  { %v3741_v24 = vcombine.high %v1093_v34, %v1099_v38  ;;  %v3743_v30 = vcombine.high %v1094_v27, %v1100_v33  ;;  %v3740_v63 = vcombine.low %v1093_v34, %v1099_v38  ;;  %v3742_v10 = vcombine.low %v1094_v27, %v1100_v33  ;;  %v673_v34 = vld [vmem:[%s6591_s3 + $0x20] sm:$0xff] }
 0x1ac   :  { %3163 = vmatpush2.bf16.msra.mxu0 %v1611_v32  ;;  %v815_v32 = vld [vmem:[%s6591_s3 + $0x430] sm:$0xff] }
 0x1ad   :  { %3164 = vmatprep.subr.bf16.mxu0 %v1610_v56  ;;  %v822_v56 = vld [vmem:[%s6591_s3 + $0x464] sm:$0xff]  ;;  %v1105_v29 = vmul.bf16 %v4850_v20, %v815_v32 }
 0x1ae   :  { %2893 = vmatmul.mubr.bf16.gmra.mxu0 %v3696_v53 }
 0x1af   :  { %3066 = vmatmul.mubr.bf16.gmra.mxu1 %v3698_v59  ;;  %2902 = vmatprep.mubr.bf16.mxu0 %v3708_v45  ;;  %v1112_v59 = vmul.bf16 %v4858_v23, %v822_v56  ;;  %v3752_v58 = vcombine.high %v1105_v29, %v1111_v57  ;;  %v3762_v56 = vcombine.low %v1117_v55, %v1123_v13 }
 0x1b0   :  { %3075 = vmatprep.mubr.bf16.mxu1 %v3710_v0  ;;  %3165 = vmatpush2.bf16.msra.mxu0 %v1609_v37  ;;  %v1106_v37 = vmul.bf16 %v4858_v23, %v816_v54 }
 0x1b1   :  { %3166 = vmatprep.subr.bf16.mxu0 %v1608_v46 }
 0x1b2   :  { %v3754_v60 = vcombine.high %v1106_v37, %v1112_v59  ;;  %v3753_v19 = vcombine.low %v1106_v37, %v1112_v59  ;;  %v674_v59 = vld [vmem:[%s6591_s3 + $0x28] sm:$0xf] }
 0x1b4   :  { %3167 = vmatpush2.bf16.msra.mxu0 %v1607_v35 }
 0x1b6   :  { %2903 = vmatmul.mubr.bf16.gmra.mxu0 %v3707_v51  ;;  %v3905_v31 = vpop.eup %3904  ;;  %v828_v51 = vld [vmem:[%s6591_s3 + $0x490] sm:$0xff] }
 0x1b7   :  { %3076 = vmatmul.mubr.bf16.gmra.mxu1 %v3709_v4  ;;  %2912 = vmatprep.mubr.bf16.mxu0 %v3719_v9  ;;  %v834_v4 = vld [vmem:[%s6591_s3 + $0x4bc] sm:$0xff]  ;;  %v847_v12 = vpack.c.bf16 %v3905_v31, %v3905_v31  ;;  %v1118_v5 = vmul.bf16 %v4858_v23, %v828_v51 }
 0x1b8   :  { %3085 = vmatprep.mubr.bf16.mxu1 %v3721_v11  ;;  %v1124_v17 = vmul.bf16 %v4858_v23, %v834_v4  ;;  %v679_v23 = vld [vmem:[%s6591_s3 + $0x4c] sm:$0xff] }
 0x1ba   :  { %v3765_v20 = vcombine.high %v1118_v5, %v1124_v17 }
 0x1be   :  { %2913 = vmatmul.mubr.bf16.gmra.mxu0 %v3718_v6 }
 0x1bf   :  { %3086 = vmatmul.mubr.bf16.gmra.mxu1 %v3720_v44  ;;  %2922 = vmatprep.mubr.bf16.mxu0 %v3730_v16  ;;  %v3751_v44 = vcombine.low %v1105_v29, %v1111_v57  ;;  %v919_v16 = vpack.i.b16 %v847_v12, %v847_v12  ;;  %v3764_v29 = vcombine.low %v1118_v5, %v1124_v17 }
 0x1c0   :  { %3095 = vmatprep.mubr.bf16.mxu1 %v3732_v21 }
 0x1c6   :  { %v2478_v25 = vpop.f32.mrf.mxu0  ;;  %2923 = vmatmul.mubr.bf16.gmra.mxu0 %v3729_v42  ;;  %v924_v42 = vrot.slane %v919_v16, %v4488_v7  ;;  %v685_v7 = vld [vmem:[%s6591_s3 + $0x78] sm:$0xff] }
 0x1c7   :  { %v2651_v49 = vpop.f32.mrf.mxu1  ;;  %3096 = vmatmul.mubr.bf16.gmra.mxu1 %v3731_v39  ;;  %2932 = vmatprep.mubr.bf16.mxu0 %v3741_v24  ;;  %v963_v24 = vmul.bf16 %v5284_v43, %v673_v34 }
 0x1c8   :  { %v5780_v40 = vadd.f32 %v2651_v49, %v2478_v25  ;;  %3105 = vmatprep.mubr.bf16.mxu1 %v3743_v30  ;;  %v2480_v47 = vpop.f32.mrf.mxu0  ;;  %v969_v25 = vmul.bf16 %v5284_v43, %v679_v23 }
 0x1c9   :  { %v2653_v28 = vpop.f32.mrf.mxu1 }
 0x1ca   :  { %v5784_v52 = vadd.f32 %v2653_v28, %v2480_v47  ;;  %v2482_v53 = vpop.f32.mrf.mxu0  ;;  %v5831_v47 = vcombine.low %v924_v42, %v924_v42  ;;  %v3624_v57 = vcombine.high %v963_v24, %v969_v25  ;;  %v3623_v4 = vcombine.low %v963_v24, %v969_v25 }
 0x1cb   :  { %v2655_v45 = vpop.f32.mrf.mxu1 }
 0x1cc   :  { %v5788_v46 = vadd.f32 %v2655_v45, %v2482_v53  ;;  %v2484_v62 = vpop.f32.mrf.mxu0  ;;  %v680_v45 = vld [vmem:[%s6591_s3 + $0x54] sm:$0xf]  ;;  %v964_v31 = vmul.bf16 %v5831_v47, %v674_v59 }
 0x1cd   :  { %v2657_v0 = vpop.f32.mrf.mxu1 }
 0x1ce   :  { %v5790_v36 = vadd.f32 %v2657_v0, %v2484_v62  ;;  %v2488_v35 = vpop.f32.mrf.mxu0  ;;  %2933 = vmatmul.mubr.bf16.gmra.mxu0 %v3740_v63  ;;  %v691_v62 = vld [vmem:[%s6591_s3 + $0xa4] sm:$0xff] }
 0x1cf   :  { %v2661_v50 = vpop.f32.mrf.mxu1  ;;  %3106 = vmatmul.mubr.bf16.gmra.mxu1 %v3742_v10  ;;  %2942 = vmatprep.mubr.bf16.mxu0 %v3752_v58  ;;  %v981_v61 = vmul.bf16 %v5284_v43, %v691_v62 }
 0x1d0   :  { %v5804_v9 = vadd.f32 %v2661_v50, %v2488_v35  ;;  %3115 = vmatprep.mubr.bf16.mxu1 %v3754_v60  ;;  %v2490_v11 = vpop.f32.mrf.mxu0  ;;  %v970_v35 = vmul.bf16 %v5831_v47, %v680_v45  ;;  %v975_v60 = vmul.bf16 %v5284_v43, %v685_v7  ;;  %v709_v7 = vld [vmem:[%s6591_s3 + $0x128] sm:$0xff] }
 0x1d1   :  { %v2663_v41 = vpop.f32.mrf.mxu1 }
 0x1d2   :  { %v5808_v14 = vadd.f32 %v2663_v41, %v2490_v11  ;;  %v2492_v3 = vpop.f32.mrf.mxu0  ;;  %v3625_v55 = vcombine.low %v964_v31, %v970_v35  ;;  %v3635_v13 = vcombine.high %v975_v60, %v981_v61  ;;  %v3634_v25 = vcombine.low %v975_v60, %v981_v61 }
 0x1d3   :  { %v2665_v18 = vpop.f32.mrf.mxu1  ;;  %v999_v31 = vmul.bf16 %v5284_v43, %v709_v7 }
 0x1d4   :  { %v5812_v6 = vadd.f32 %v2665_v18, %v2492_v3  ;;  %v2494_v8 = vpop.f32.mrf.mxu0  ;;  %v697_v3 = vld [vmem:[%s6591_s3 + $0xd0] sm:$0xff]  ;;  %v686_v18 = vld [vmem:[%s6591_s3 + $0x80] sm:$0xf] }
 0x1d5   :  { %v2667_v21 = vpop.f32.mrf.mxu1  ;;  %v987_v34 = vmul.bf16 %v5284_v43, %v697_v3  ;;  %v710_v3 = vld [vmem:[%s6591_s3 + $0x130] sm:$0xf] }
 0x1d6   :  { %v5814_v22 = vadd.f32 %v2667_v21, %v2494_v8  ;;  %v2498_v26 = vpop.f32.mrf.mxu0  ;;  %2943 = vmatmul.mubr.bf16.gmra.mxu0 %v3751_v44  ;;  %v692_v8 = vld [vmem:[%s6591_s3 + $0xac] sm:$0xf]  ;;  %v703_v44 = vld [vmem:[%s6591_s3 + $0xfc] sm:$0xff] }
 0x1d7   :  { %v2671_v38 = vpop.f32.mrf.mxu1  ;;  %3116 = vmatmul.mubr.bf16.gmra.mxu1 %v3753_v19  ;;  %2952 = vmatprep.mubr.bf16.mxu0 %v3763_v15  ;;  %v993_v23 = vmul.bf16 %v5284_v43, %v703_v44  ;;  %v721_v44 = vld [vmem:[%s6591_s3 + $0x180] sm:$0xff] }
 0x1d8   :  { %v5822_v27 = vadd.f32 %v2671_v38, %v2498_v26  ;;  %3125 = vmatprep.mubr.bf16.mxu1 %v3765_v20  ;;  %v2500_v33 = vpop.f32.mrf.mxu0  ;;  %v976_v26 = vmul.bf16 %v5831_v47, %v686_v18  ;;  %v982_v20 = vmul.bf16 %v5831_v47, %v692_v8  ;;  %v716_v8 = vld [vmem:[%s6591_s3 + $0x15c] sm:$0xf] }
 0x1d9   :  { %v2673_v39 = vpop.f32.mrf.mxu1 }
 0x1da   :  { %v5827_v30 = vadd.f32 %v2673_v39, %v2500_v33  ;;  %v2502_v32 = vpop.f32.mrf.mxu0 }
 0x1db   :  { %v2675_v48 = vpop.f32.mrf.mxu1 }
 0x1dc   :  { %v5829_v49 = vadd.f32 %v2675_v48, %v2502_v32  ;;  %v2504_v54 = vpop.f32.mrf.mxu0  ;;  %v3636_v48 = vcombine.low %v976_v26, %v982_v20 }
 0x1dd   :  { %v2677_v28 = vpop.f32.mrf.mxu1 }
 0x1de   :  { %v5836_v53 = vadd.f32 %v2677_v28, %v2504_v54  ;;  %v2508_v37 = vpop.f32.mrf.mxu0  ;;  %2953 = vmatmul.mubr.bf16.gmra.mxu0 %v3762_v56  ;;  %v3646_v54 = vcombine.high %v987_v34, %v993_v23  ;;  %v698_v56 = vld [vmem:[%s6591_s3 + $0xd8] sm:$0xf] }
 0x1df   :  { %v2681_v63 = vpop.f32.mrf.mxu1  ;;  %3126 = vmatmul.mubr.bf16.gmra.mxu1 %v3764_v29  ;;  %3168 = vmatprep.mubr.bf16.mxu0 %v3624_v57  ;;  %v704_v57 = vld [vmem:[%s6591_s3 + $0x104] sm:$0xf] }
 0x1e0   :  { %v5847_v0 = vadd.f32 %v2681_v63, %v2508_v37  ;;  %v2510_v10 = vpop.f32.mrf.mxu0  ;;  %3341 = vmatprep.mubr.bf16.mxu1 %v6593_v2  ;;  %v715_v37 = vld [vmem:[%s6591_s3 + $0x154] sm:$0xff] }
 0x1e1   :  { %v2683_v58 = vpop.f32.mrf.mxu1  ;;  %v1005_v35 = vmul.bf16 %v5284_v43, %v715_v37  ;;  %v722_v37 = vld [vmem:[%s6591_s3 + $0x188] sm:$0xf] }
 0x1e2   :  { %v5854_v1 = vadd.f32 %v2683_v58, %v2510_v10  ;;  %v2512_v50 = vpop.f32.mrf.mxu0  ;;  %v988_v10 = vmul.bf16 %v5831_v47, %v698_v56  ;;  %v994_v58 = vmul.bf16 %v5831_v47, %v704_v57 }
 0x1e3   :  { %v2685_v51 = vpop.f32.mrf.mxu1  ;;  %v3656_v56 = vcombine.low %v999_v31, %v1005_v35 }
 0x1e4   :  { %v5856_v11 = vadd.f32 %v2685_v51, %v2512_v50  ;;  %v2514_v12 = vpop.f32.mrf.mxu0 }
 0x1e5   :  { %v2687_v41 = vpop.f32.mrf.mxu1 }
 0x1e6   :  { %v5861_v5 = vadd.f32 %v2687_v41, %v2514_v12  ;;  %v2518_v17 = vpop.f32.mrf.mxu0  ;;  %3169 = vmatmul.mubr.bf16.vlgmr.msra.gmra.mxu0 %v3623_v4  ;;  %v3645_v12 = vcombine.low %v987_v34, %v993_v23  ;;  %v1000_v34 = vmul.bf16 %v5831_v47, %v710_v3  ;;  %v1006_v23 = vmul.bf16 %v5831_v47, %v716_v8 }
 0x1e7   :  { %v2691_v16 = vpop.f32.mrf.mxu1  ;;  %3769 = vmatmul.mubr.msk.bf16.vlgmr.msra.gmra.mxu1 %vm2401_vm3, %v3625_v55  ;;  %3178 = vmatprep.mubr.bf16.mxu0 %v3635_v13  ;;  %v3647_v55 = vcombine.low %v988_v10, %v994_v58  ;;  %v3657_v13 = vcombine.high %v999_v31, %v1005_v35  ;;  %v733_v10 = vld [vmem:[%s6591_s3 + $0x1d8] sm:$0xff]  ;;  %v739_v58 = vld [vmem:[%s6591_s3 + $0x204] sm:$0xff] }
 0x1e8   :  { %v5873_v21 = vadd.f32 %v2691_v16, %v2518_v17  ;;  %v2520_v19 = vpop.f32.mrf.mxu0  ;;  %3351 = vmatprep.mubr.bf16.mxu1 %v6593_v2  ;;  %v727_v16 = vld [vmem:[%s6591_s3 + $0x1ac] sm:$0xff]  ;;  %v3658_v57 = vcombine.low %v1000_v34, %v1006_v23  ;;  %v734_v34 = vld [vmem:[%s6591_s3 + $0x1e0] sm:$0xf] }
 0x1e9   :  { %v2693_v15 = vpop.f32.mrf.mxu1 }
 0x1ea   :  { %v5880_v38 = vadd.f32 %v2693_v15, %v2520_v19  ;;  %v2522_v33 = vpop.f32.mrf.mxu0 }
 0x1eb   :  { %v2695_v42 = vpop.f32.mrf.mxu1 }
 0x1ec   :  { %v5882_v39 = vadd.f32 %v2695_v42, %v2522_v33  ;;  %v2524_v24 = vpop.f32.mrf.mxu0  ;;  %v1011_v33 = vmul.bf16 %v5284_v43, %v721_v44  ;;  %v1017_v42 = vmul.bf16 %v5284_v43, %v727_v16 }
 0x1ed   :  { %v2697_v32 = vpop.f32.mrf.mxu1 }
 0x1ee   :  { %v5887_v28 = vadd.f32 %v2697_v32, %v2524_v24  ;;  %v2528_v29 = vpop.f32.mrf.mxu0  ;;  %3179 = vmatmul.mubr.bf16.gmra.mxu0 %v3634_v25  ;;  %v3668_v7 = vcombine.high %v1011_v33, %v1017_v42  ;;  %v3667_v16 = vcombine.low %v1011_v33, %v1017_v42  ;;  %v751_v33 = vld [vmem:[%s6591_s3 + $0x25c] sm:$0xff] }
 0x1ef   :  { %v2701_v59 = vpop.f32.mrf.mxu1  ;;  %3770 = vmatmul.mubr.msk.bf16.gmra.mxu1 %vm2401_vm3, %v3636_v48  ;;  %3188 = vmatprep.mubr.bf16.mxu0 %v3646_v54 }
 0x1f0   :  { %v5899_v45 = vadd.f32 %v2701_v59, %v2528_v29  ;;  %v2530_v62 = vpop.f32.mrf.mxu0  ;;  %3361 = vmatprep.mubr.bf16.mxu1 %v6593_v2 }
 0x1f1   :  { %v2703_v63 = vpop.f32.mrf.mxu1 }
 0x1f2   :  { %v5906_v60 = vadd.f32 %v2703_v63, %v2530_v62  ;;  %v2532_v61 = vpop.f32.mrf.mxu0  ;;  %v728_v63 = vld [vmem:[%s6591_s3 + $0x1b4] sm:$0xf] }
 0x1f3   :  { %v2705_v50 = vpop.f32.mrf.mxu1 }
 0x1f4   :  { %v5908_v51 = vadd.f32 %v2705_v50, %v2532_v61  ;;  %v2534_v4 = vpop.f32.mrf.mxu0 }
 0x1f5   :  { %v2707_v41 = vpop.f32.mrf.mxu1 }
 0x1f6   :  { %v5913_v17 = vadd.f32 %v2707_v41, %v2534_v4  ;;  %v2538_v18 = vpop.f32.mrf.mxu0  ;;  %3189 = vmatmul.mubr.bf16.gmra.mxu0 %v3645_v12  ;;  %v1012_v4 = vmul.bf16 %v5831_v47, %v722_v37  ;;  %v1018_v12 = vmul.bf16 %v5831_v47, %v728_v63  ;;  %v1023_v41 = vmul.bf16 %v5284_v43, %v733_v10 }
 0x1f7   :  { %v2711_v19 = vpop.f32.mrf.mxu1  ;;  %3771 = vmatmul.mubr.msk.bf16.gmra.mxu1 %vm2401_vm3, %v3647_v55  ;;  %3198 = vmatprep.mubr.bf16.mxu0 %v3657_v13  ;;  %v1029_v55 = vmul.bf16 %v5284_v43, %v739_v58  ;;  %v1041_v63 = vmul.bf16 %v5284_v43, %v751_v33 }
 0x1f8   :  { %v5925_v15 = vadd.f32 %v2711_v19, %v2538_v18  ;;  %v2540_v26 = vpop.f32.mrf.mxu0  ;;  %3371 = vmatprep.mubr.bf16.mxu1 %v6593_v2 }
 0x1f9   :  { %v2713_v20 = vpop.f32.mrf.mxu1 }
 0x1fa   :  { %v5932_v24 = vadd.f32 %v2713_v20, %v2540_v26  ;;  %v2542_v25 = vpop.f32.mrf.mxu0  ;;  %v3669_v26 = vcombine.low %v1012_v4, %v1018_v12  ;;  %v3679_v20 = vcombine.high %v1023_v41, %v1029_v55  ;;  %v3678_v4 = vcombine.low %v1023_v41, %v1029_v55  ;;  %v763_v41 = vld [vmem:[%s6591_s3 + $0x2b4] sm:$0xff] }
 0x1fb   :  { %v2715_v32 = vpop.f32.mrf.mxu1 }
 0x1fc   :  { %v5934_v48 = vadd.f32 %v2715_v32, %v2542_v25  ;;  %v2544_v54 = vpop.f32.mrf.mxu0  ;;  %v740_v32 = vld [vmem:[%s6591_s3 + $0x20c] sm:$0xf] }
 0x1fd   :  { %v2717_v29 = vpop.f32.mrf.mxu1  ;;  %v1030_v37 = vmul.bf16 %v5831_v47, %v740_v32 }
 0x1fe   :  { %v5939_v59 = vadd.f32 %v2717_v29, %v2544_v54  ;;  %v2548_v62 = vpop.f32.mrf.mxu0  ;;  %3199 = vmatmul.mubr.bf16.gmra.mxu0 %v3656_v56  ;;  %v745_v54 = vld [vmem:[%s6591_s3 + $0x230] sm:$0xff] }
 0x1ff   :  { %v2721_v31 = vpop.f32.mrf.mxu1  ;;  %3772 = vmatmul.mubr.msk.bf16.gmra.mxu1 %vm2401_vm3, %v3658_v57  ;;  %3208 = vmatprep.mubr.bf16.mxu0 %v3668_v7  ;;  %v1024_v7 = vmul.bf16 %v5831_v47, %v734_v34 }
 0x200   :  { %v5951_v35 = vadd.f32 %v2721_v31, %v2548_v62  ;;  %v2550_v61 = vpop.f32.mrf.mxu0  ;;  %3381 = vmatprep.mubr.bf16.mxu1 %v6593_v2  ;;  %v1035_v62 = vmul.bf16 %v5284_v43, %v745_v54 }
 0x201   :  { %v2723_v50 = vpop.f32.mrf.mxu1 }
 0x202   :  { %v5958_v13 = vadd.f32 %v2723_v50, %v2550_v61  ;;  %v2552_v3 = vpop.f32.mrf.mxu0 }
 0x203   :  { %v2725_v18 = vpop.f32.mrf.mxu1 }
 0x204   :  { %v5960_v8 = vadd.f32 %v2725_v18, %v2552_v3  ;;  %v2554_v44 = vpop.f32.mrf.mxu0  ;;  %v3680_v3 = vcombine.low %v1024_v7, %v1030_v37  ;;  %v3690_v18 = vcombine.high %v1035_v62, %v1041_v63 }
 0x205   :  { %v2727_v19 = vpop.f32.mrf.mxu1 }
 0x206   :  { %v5965_v23 = vadd.f32 %v2727_v19, %v2554_v44  ;;  %v2558_v25 = vpop.f32.mrf.mxu0  ;;  %3209 = vmatmul.mubr.bf16.gmra.mxu0 %v3667_v16  ;;  %v746_v44 = vld [vmem:[%s6591_s3 + $0x238] sm:$0xf] }
 0x207   :  { %v2731_v42 = vpop.f32.mrf.mxu1  ;;  %3773 = vmatmul.mubr.msk.bf16.gmra.mxu1 %vm2401_vm3, %v3669_v26  ;;  %3218 = vmatprep.mubr.bf16.mxu0 %v3679_v20  ;;  %v752_v26 = vld [vmem:[%s6591_s3 + $0x264] sm:$0xf]  ;;  %v757_v20 = vld [vmem:[%s6591_s3 + $0x288] sm:$0xff]  ;;  %v1036_v54 = vmul.bf16 %v5831_v47, %v746_v44 }
 0x208   :  { %v5977_v56 = vadd.f32 %v2731_v42, %v2558_v25  ;;  %v2560_v29 = vpop.f32.mrf.mxu0  ;;  %3391 = vmatprep.mubr.bf16.mxu1 %v6593_v2  ;;  %v1042_v33 = vmul.bf16 %v5831_v47, %v752_v26  ;;  %v1047_v42 = vmul.bf16 %v5284_v43, %v757_v20  ;;  %v764_v26 = vld [vmem:[%s6591_s3 + $0x2bc] sm:$0xf]  ;;  %v769_v20 = vld [vmem:[%s6591_s3 + $0x2e0] sm:$0xff] }
 0x209   :  { %v2733_v57 = vpop.f32.mrf.mxu1 }
 0x20a   :  { %v5984_v10 = vadd.f32 %v2733_v57, %v2560_v29  ;;  %v2562_v58 = vpop.f32.mrf.mxu0  ;;  %v1053_v29 = vmul.bf16 %v5284_v43, %v763_v41 }
 0x20b   :  { %v2735_v31 = vpop.f32.mrf.mxu1 }
 0x20c   :  { %v5986_v61 = vadd.f32 %v2735_v31, %v2562_v58  ;;  %v2564_v50 = vpop.f32.mrf.mxu0 }
 0x20d   :  { %v2737_v12 = vpop.f32.mrf.mxu1 }
 0x20e   :  { %v5991_v16 = vadd.f32 %v2737_v12, %v2564_v50  ;;  %v2568_v19 = vpop.f32.mrf.mxu0  ;;  %3219 = vmatmul.mubr.bf16.gmra.mxu0 %v3678_v4  ;;  %v3689_v50 = vcombine.low %v1035_v62, %v1041_v63  ;;  %v3691_v12 = vcombine.low %v1036_v54, %v1042_v33  ;;  %v775_v62 = vld [vmem:[%s6591_s3 + $0x30c] sm:$0xff]  ;;  %v1054_v54 = vmul.bf16 %v5831_v47, %v764_v26 }
 0x20f   :  { %v2741_v55 = vpop.f32.mrf.mxu1  ;;  %3774 = vmatmul.mubr.msk.bf16.gmra.mxu1 %vm2401_vm3, %v3680_v3  ;;  %3228 = vmatprep.mubr.bf16.mxu0 %v3690_v18  ;;  %v3701_v3 = vcombine.high %v1047_v42, %v1053_v29  ;;  %v758_v18 = vld [vmem:[%s6591_s3 + $0x290] sm:$0xf]  ;;  %v1059_v33 = vmul.bf16 %v5284_v43, %v769_v20 }
 0x210   :  { %v6003_v34 = vadd.f32 %v2741_v55, %v2568_v19  ;;  %v2570_v25 = vpop.f32.mrf.mxu0  ;;  %3401 = vmatprep.mubr.bf16.mxu1 %v6593_v2 }
 0x211   :  { %v2743_v32 = vpop.f32.mrf.mxu1 }
 0x212   :  { %v6010_v57 = vadd.f32 %v2743_v32, %v2570_v25  ;;  %v2572_v7 = vpop.f32.mrf.mxu0  ;;  %v1048_v32 = vmul.bf16 %v5831_v47, %v758_v18  ;;  %v770_v18 = vld [vmem:[%s6591_s3 + $0x2e8] sm:$0xf] }
 0x213   :  { %v2745_v37 = vpop.f32.mrf.mxu1 }
 0x214   :  { %v6012_v58 = vadd.f32 %v2745_v37, %v2572_v7  ;;  %v2574_v31 = vpop.f32.mrf.mxu0  ;;  %v1065_v7 = vmul.bf16 %v5284_v43, %v775_v62  ;;  %v776_v62 = vld [vmem:[%s6591_s3 + $0x314] sm:$0xf] }
 0x215   :  { %v2747_v4 = vpop.f32.mrf.mxu1 }
 0x216   :  { %v6017_v44 = vadd.f32 %v2747_v4, %v2574_v31  ;;  %v2578_v19 = vpop.f32.mrf.mxu0  ;;  %3229 = vmatmul.mubr.bf16.gmra.mxu0 %v3689_v50 }
 0x217   :  { %v2751_v63 = vpop.f32.mrf.mxu1  ;;  %3775 = vmatmul.mubr.msk.bf16.gmra.mxu1 %vm2401_vm3, %v3691_v12  ;;  %3238 = vmatprep.mubr.bf16.mxu0 %v3701_v3  ;;  %v3700_v3 = vcombine.low %v1047_v42, %v1053_v29  ;;  %v787_v42 = vld [vmem:[%s6591_s3 + $0x364] sm:$0xff] }
 0x218   :  { %v6029_v41 = vadd.f32 %v2751_v63, %v2578_v19  ;;  %v2580_v55 = vpop.f32.mrf.mxu0  ;;  %3411 = vmatprep.mubr.bf16.mxu1 %v6593_v2  ;;  %v3702_v63 = vcombine.low %v1048_v32, %v1054_v54  ;;  %v3712_v2 = vcombine.high %v1059_v33, %v1065_v7  ;;  %v6600_v54 = vmov 0  }
 0x219   :  { %v2753_v25 = vpop.f32.mrf.mxu1 }
 0x21a   :  { %6595 = vst [vmem:[#allocation2_spill] sm:$0xff] %v6029_v41  ;;  %v6036_v37 = vadd.f32 %v2753_v25, %v2580_v55  ;;  %v2582_v31 = vpop.f32.mrf.mxu0  ;;  %v781_v55 = vld [vmem:[%s6591_s3 + $0x338] sm:$0xff] }
 0x21b   :  { %v2755_v50 = vpop.f32.mrf.mxu1 }
 0x21c   :  { %6596 = vst [vmem:[#allocation3_spill] sm:$0xff] %v6036_v37  ;;  %v6038_v4 = vadd.f32 %v2755_v50, %v2582_v31  ;;  %v2584_v12 = vpop.f32.mrf.mxu0  ;;  %v1060_v50 = vmul.bf16 %v5831_v47, %v770_v18  ;;  %v782_v18 = vld [vmem:[%s6591_s3 + $0x340] sm:$0xf] }
 0x21d   :  { %v2757_v19 = vpop.f32.mrf.mxu1 }
 0x21e   :  { %6597 = vst [vmem:[#allocation4_spill] sm:$0xff] %v6038_v4  ;;  %v6043_v26 = vadd.f32 %v2757_v19, %v2584_v12  ;;  %v2588_v20 = vpop.f32.mrf.mxu0  ;;  %3239 = vmatmul.mubr.bf16.gmra.mxu0 %v3700_v3  ;;  %v1066_v12 = vmul.bf16 %v5831_v47, %v776_v62  ;;  %v1071_v3 = vmul.bf16 %v5284_v43, %v781_v55 }
 0x21f   :  { %v2761_v29 = vpop.f32.mrf.mxu1  ;;  %3776 = vmatmul.mubr.msk.bf16.gmra.mxu1 %vm2401_vm3, %v3702_v63  ;;  %3248 = vmatprep.mubr.bf16.mxu0 %v3712_v2  ;;  %v1077_v19 = vmul.bf16 %v5284_v43, %v787_v42  ;;  %v788_v42 = vld [vmem:[%s6591_s3 + $0x36c] sm:$0xf] }
 0x220   :  { %6598 = vst [vmem:[#allocation5_spill] sm:$0xff] %v6043_v26  ;;  %v6055_v25 = vadd.f32 %v2761_v29, %v2588_v20  ;;  %v2590_v32 = vpop.f32.mrf.mxu0  ;;  %3421 = vmatprep.mubr.bf16.mxu1 %v6600_v54  ;;  %v3711_v20 = vcombine.low %v1059_v33, %v1065_v7  ;;  %v799_v33 = vld [vmem:[%s6591_s3 + $0x3bc] sm:$0xff] }
 0x221   :  { %v2763_v31 = vpop.f32.mrf.mxu1  ;;  %v3723_v41 = vcombine.high %v1071_v3, %v1077_v19 }
 0x222   :  { %6599 = vst [vmem:[#allocation6_spill] sm:$0xff] %v6055_v25  ;;  %v6062_v26 = vadd.f32 %v2763_v31, %v2590_v32  ;;  %v2592_v4 = vpop.f32.mrf.mxu0  ;;  %v3713_v25 = vcombine.low %v1060_v50, %v1066_v12  ;;  %v1072_v50 = vmul.bf16 %v5831_v47, %v782_v18  ;;  %v1078_v12 = vmul.bf16 %v5831_v47, %v788_v42  ;;  %v794_v18 = vld [vmem:[%s6591_s3 + $0x398] sm:$0xf] }
 0x223   :  { %v2765_v37 = vpop.f32.mrf.mxu1 }
 0x224   :  { %6601 = vst [vmem:[#allocation7_spill] sm:$0xff] %v6062_v26  ;;  %v6064_v63 = vadd.f32 %v2765_v37, %v2592_v4  ;;  %v2594_v2 = vpop.f32.mrf.mxu0  ;;  %v793_v37 = vld [vmem:[%s6591_s3 + $0x390] sm:$0xff] }
 0x225   :  { %v2767_v29 = vpop.f32.mrf.mxu1 }
 0x226   :  { %6602 = vst [vmem:[#allocation8_spill] sm:$0xff] %v6064_v63  ;;  %v6069_v62 = vadd.f32 %v2767_v29, %v2594_v2  ;;  %v2598_v55 = vpop.f32.mrf.mxu0  ;;  %3249 = vmatmul.mubr.bf16.gmra.mxu0 %v3711_v20  ;;  %v1083_v2 = vmul.bf16 %v5284_v43, %v793_v37  ;;  %v1089_v20 = vmul.bf16 %v5284_v43, %v799_v33  ;;  %v800_v33 = vld [vmem:[%s6591_s3 + $0x3c4] sm:$0xf] }
 0x227   :  { %v2771_v7 = vpop.f32.mrf.mxu1  ;;  %3777 = vmatmul.mubr.msk.bf16.gmra.mxu1 %vm2401_vm3, %v3713_v25  ;;  %3258 = vmatprep.mubr.bf16.mxu0 %v3723_v41 }
 0x228   :  { %6603 = vst [vmem:[#allocation9_spill] sm:$0xff] %v6069_v62  ;;  %v6081_v4 = vadd.f32 %v2771_v7, %v2598_v55  ;;  %v2600_v32 = vpop.f32.mrf.mxu0  ;;  %3431 = vmatprep.mubr.bf16.mxu1 %v6600_v54  ;;  %v3722_v55 = vcombine.low %v1071_v3, %v1077_v19  ;;  %v3734_v26 = vcombine.high %v1083_v2, %v1089_v20  ;;  %v811_v3 = vld [vmem:[%s6591_s3 + $0x414] sm:$0xff] }
 0x229   :  { %v2773_v31 = vpop.f32.mrf.mxu1 }
 0x22a   :  { %6604 = vst [vmem:[#allocation10_spill] sm:$0xff] %v6081_v4  ;;  %v6088_v29 = vadd.f32 %v2773_v31, %v2600_v32  ;;  %v2602_v62 = vpop.f32.mrf.mxu0  ;;  %v3724_v4 = vcombine.low %v1072_v50, %v1078_v12  ;;  %v1084_v50 = vmul.bf16 %v5831_v47, %v794_v18  ;;  %v1090_v12 = vmul.bf16 %v5831_v47, %v800_v33  ;;  %v806_v18 = vld [vmem:[%s6591_s3 + $0x3f0] sm:$0xf]  ;;  %v812_v33 = vld [vmem:[%s6591_s3 + $0x41c] sm:$0xf] }
 0x22b   :  { %v2775_v63 = vpop.f32.mrf.mxu1 }
 0x22c   :  { %6605 = vst [vmem:[#allocation11_spill] sm:$0xff] %v6088_v29  ;;  %v6090_v25 = vadd.f32 %v2775_v63, %v2602_v62  ;;  %v2604_v41 = vpop.f32.mrf.mxu0  ;;  %v805_v63 = vld [vmem:[%s6591_s3 + $0x3e8] sm:$0xff] }
 0x22d   :  { %v2777_v7 = vpop.f32.mrf.mxu1 }
 0x22e   :  { %6606 = vst [vmem:[#allocation12_spill] sm:$0xff] %v6090_v25  ;;  %v6095_v42 = vadd.f32 %v2777_v7, %v2604_v41  ;;  %v2608_v37 = vpop.f32.mrf.mxu0  ;;  %3259 = vmatmul.mubr.bf16.gmra.mxu0 %v3722_v55  ;;  %v1095_v41 = vmul.bf16 %v5284_v43, %v805_v63  ;;  %v1101_v55 = vmul.bf16 %v5284_v43, %v811_v3 }
 0x22f   :  { %v2781_v19 = vpop.f32.mrf.mxu1  ;;  %3778 = vmatmul.mubr.msk.bf16.gmra.mxu1 %vm2401_vm3, %v3724_v4  ;;  %3268 = vmatprep.mubr.bf16.mxu0 %v3734_v26 }
 0x230   :  { %6607 = vst [vmem:[#allocation13_spill] sm:$0xff] %v6095_v42  ;;  %v6107_v62 = vadd.f32 %v2781_v19, %v2608_v37  ;;  %v2610_v32 = vpop.f32.mrf.mxu0  ;;  %3441 = vmatprep.mubr.bf16.mxu1 %v6600_v54  ;;  %v3733_v37 = vcombine.low %v1083_v2, %v1089_v20  ;;  %v3745_v29 = vcombine.high %v1095_v41, %v1101_v55  ;;  %v823_v2 = vld [vmem:[%s6591_s3 + $0x46c] sm:$0xff] }
 0x231   :  { %v2783_v31 = vpop.f32.mrf.mxu1 }
 0x232   :  { %6608 = vst [vmem:[#allocation14_spill] sm:$0xff] %v6107_v62  ;;  %v6114_v7 = vadd.f32 %v2783_v31, %v2610_v32  ;;  %v2612_v42 = vpop.f32.mrf.mxu0  ;;  %v3735_v62 = vcombine.low %v1084_v50, %v1090_v12  ;;  %v1096_v31 = vmul.bf16 %v5831_v47, %v806_v18  ;;  %v1102_v50 = vmul.bf16 %v5831_v47, %v812_v33 }
 0x233   :  { %v2785_v25 = vpop.f32.mrf.mxu1 }
 0x234   :  { %6609 = vst [vmem:[#allocation15_spill] sm:$0xff] %v6114_v7  ;;  %v6116_v4 = vadd.f32 %v2785_v25, %v2612_v42  ;;  %v2614_v26 = vpop.f32.mrf.mxu0  ;;  %v817_v25 = vld [vmem:[%s6591_s3 + $0x440] sm:$0xff]  ;;  %v3744_v7 = vcombine.low %v1095_v41, %v1101_v55 }
 0x235   :  { %v2787_v19 = vpop.f32.mrf.mxu1 }
 0x236   :  { %6610 = vst [vmem:[#allocation16_spill] sm:$0xff] %v6116_v4  ;;  %v6124_v63 = vadd.f32 %v2787_v19, %v2614_v26  ;;  %v2824_v3 = vpop.f32.mrf.mxu0  ;;  %3269 = vmatmul.mubr.bf16.gmra.mxu0 %v3733_v37  ;;  %v1107_v19 = vmul.bf16 %v5284_v43, %v817_v25  ;;  %v818_v25 = vld [vmem:[%s6591_s3 + $0x448] sm:$0xf] }
 0x237   :  { %v2825_v20 = vadd.f32 %v2824_v3, %v5780_v40  ;;  %v2997_v42 = vpop.f32.mrf.mxu1  ;;  %3779 = vmatmul.mubr.msk.bf16.gmra.mxu1 %vm2401_vm3, %v3735_v62  ;;  %3278 = vmatprep.mubr.bf16.mxu0 %v3745_v29  ;;  %v1113_v40 = vmul.bf16 %v5284_v43, %v823_v2  ;;  %v824_v2 = vld [vmem:[%s6591_s3 + $0x474] sm:$0xf] }
 0x238   :  { %6611 = vst [vmem:[#allocation17_spill] sm:$0xff] %v6124_v63  ;;  %v2826_v32 = vpop.f32.mrf.mxu0  ;;  %3451 = vmatprep.mubr.bf16.mxu1 %v6600_v54 }
 0x239   :  { %v6137_v12 = vadd.f32 %v2997_v42, %v2825_v20  ;;  %v2827_v26 = vadd.f32 %v2826_v32, %v5784_v52  ;;  %v2999_v37 = vpop.f32.mrf.mxu1  ;;  %v3746_v42 = vcombine.low %v1096_v31, %v1102_v50  ;;  %v3756_v52 = vcombine.high %v1107_v19, %v1113_v40 }
 0x23a   :  { %v2828_v3 = vpop.f32.mrf.mxu0  ;;  %v1114_v50 = vmul.bf16 %v5831_v47, %v824_v2 }
 0x23b   :  { %v6142_v63 = vadd.f32 %v2999_v37, %v2827_v26  ;;  %v2829_v29 = vadd.f32 %v2828_v3, %v5788_v46  ;;  %v3001_v62 = vpop.f32.mrf.mxu1  ;;  %v829_v46 = vld [vmem:[%s6591_s3 + $0x498] sm:$0xff] }
 0x23c   :  { %v2830_v4 = vpop.f32.mrf.mxu0 }
 0x23d   :  { %v6145_v18 = vadd.f32 %v3001_v62, %v2829_v29  ;;  %v2831_v33 = vadd.f32 %v2830_v4, %v5790_v36  ;;  %v3003_v20 = vpop.f32.mrf.mxu1  ;;  %v835_v36 = vld [vmem:[%s6591_s3 + $0x4c4] sm:$0xff]  ;;  %v1119_v29 = vmul.bf16 %v5284_v43, %v829_v46 }
 0x23e   :  { %v2834_v32 = vpop.f32.mrf.mxu0  ;;  %3279 = vmatmul.mubr.bf16.gmra.mxu0 %v3744_v7  ;;  %v1108_v7 = vmul.bf16 %v5831_v47, %v818_v25 }
 0x23f   :  { %v6160_v41 = vadd.f32 %v3003_v20, %v2831_v33  ;;  %v2835_v55 = vadd.f32 %v2834_v32, %v5804_v9  ;;  %v3007_v4 = vpop.f32.mrf.mxu1  ;;  %3780 = vmatmul.mubr.msk.bf16.gmra.mxu1 %vm2401_vm3, %v3746_v42  ;;  %3288 = vmatprep.mubr.bf16.mxu0 %v3756_v52  ;;  %v1125_v9 = vmul.bf16 %v5284_v43, %v835_v36  ;;  %v830_v43 = vld [vmem:[%s6591_s3 + $0x4a0] sm:$0xf] }
 0x240   :  { %v2836_v31 = vpop.f32.mrf.mxu0  ;;  %3461 = vmatprep.mubr.bf16.mxu1 %v6600_v54  ;;  %v3755_v32 = vcombine.low %v1107_v19, %v1113_v40 }
 0x241   :  { %v6167_v26 = vadd.f32 %v3007_v4, %v2835_v55  ;;  %v2837_v37 = vadd.f32 %v2836_v31, %v5808_v14  ;;  %v3009_v3 = vpop.f32.mrf.mxu1  ;;  %v3757_v4 = vcombine.low %v1108_v7, %v1114_v50  ;;  %v3767_v14 = vcombine.high %v1119_v29, %v1125_v9 }
 0x242   :  { %v2838_v62 = vpop.f32.mrf.mxu0 }
 0x243   :  { %v6172_v33 = vadd.f32 %v3009_v3, %v2837_v37  ;;  %v2839_v20 = vadd.f32 %v2838_v62, %v5812_v6  ;;  %v3011_v42 = vpop.f32.mrf.mxu1  ;;  %v836_v6 = vld [vmem:[%s6591_s3 + $0x4cc] sm:$0xf]  ;;  %v1120_v37 = vmul.bf16 %v5831_v47, %v830_v43 }
 0x244   :  { %v2840_v52 = vpop.f32.mrf.mxu0  ;;  %v1126_v3 = vmul.bf16 %v5831_v47, %v836_v6 }
 0x245   :  { %v6175_v25 = vadd.f32 %v3011_v42, %v2839_v20  ;;  %v2841_v2 = vadd.f32 %v2840_v52, %v5814_v22  ;;  %v3013_v55 = vpop.f32.mrf.mxu1 }
 0x246   :  { %v2844_v31 = vpop.f32.mrf.mxu0  ;;  %3289 = vmatmul.mubr.bf16.gmra.mxu0 %v3755_v32  ;;  %v3766_v32 = vcombine.low %v1119_v29, %v1125_v9 }
 0x247   :  { %v6184_v46 = vadd.f32 %v3013_v55, %v2841_v2  ;;  %v2845_v19 = vadd.f32 %v2844_v31, %v5822_v27  ;;  %v3017_v40 = vpop.f32.mrf.mxu1  ;;  %3781 = vmatmul.mubr.msk.bf16.gmra.mxu1 %vm2401_vm3, %v3757_v4  ;;  %3298 = vmatprep.mubr.bf16.mxu0 %v3767_v14  ;;  %v3768_v4 = vcombine.low %v1120_v37, %v1126_v3 }
 0x248   :  { %v2846_v22 = vpop.f32.mrf.mxu0  ;;  %3471 = vmatprep.mubr.bf16.mxu1 %v6600_v54 }
 0x249   :  { %v6189_v36 = vadd.f32 %v3017_v40, %v2845_v19  ;;  %v2847_v7 = vadd.f32 %v2846_v22, %v5827_v30  ;;  %v3019_v50 = vpop.f32.mrf.mxu1 }
 0x24a   :  { %v2848_v62 = vpop.f32.mrf.mxu0 }
 0x24b   :  { %v6194_v20 = vadd.f32 %v3019_v50, %v2847_v7  ;;  %v2849_v27 = vadd.f32 %v2848_v62, %v5829_v49  ;;  %v3021_v42 = vpop.f32.mrf.mxu1 }
 0x24c   :  { %v2850_v52 = vpop.f32.mrf.mxu0 }
 0x24d   :  { %v6197_v2 = vadd.f32 %v3021_v42, %v2849_v27  ;;  %v2851_v54 = vadd.f32 %v2850_v52, %v5836_v53  ;;  %v3023_v55 = vpop.f32.mrf.mxu1 }
 0x24e   :  { %v2854_v30 = vpop.f32.mrf.mxu0  ;;  %3299 = vmatmul.mubr.bf16.gmra.mxu0 %v3766_v32 }
 0x24f   :  { %v6200_v14 = vadd.f32 %v3023_v55, %v2851_v54  ;;  %v2855_v47 = vadd.f32 %v2854_v30, %v5847_v0  ;;  %v3027_v31 = vpop.f32.mrf.mxu1  ;;  %3782 = vmatmul.mubr.msk.bf16.gmra.mxu1 %vm2401_vm3, %v3768_v4 }
 0x250   :  { %v2856_v43 = vpop.f32.mrf.mxu0 }
 0x251   :  { %v6204_v49 = vadd.f32 %v3027_v31, %v2855_v47  ;;  %v2857_v29 = vadd.f32 %v2856_v43, %v5854_v1  ;;  %v3029_v9 = vpop.f32.mrf.mxu1 }
 0x252   :  { %v2858_v6 = vpop.f32.mrf.mxu0 }
 0x253   :  { %v6207_v19 = vadd.f32 %v3029_v9, %v2857_v29  ;;  %v2859_v53 = vadd.f32 %v2858_v6, %v5856_v11  ;;  %v3031_v40 = vpop.f32.mrf.mxu1 }
 0x254   :  { %v2860_v22 = vpop.f32.mrf.mxu0 }
 0x255   :  { %v6210_v7 = vadd.f32 %v3031_v40, %v2859_v53  ;;  %v2861_v0 = vadd.f32 %v2860_v22, %v5861_v5  ;;  %v3033_v50 = vpop.f32.mrf.mxu1 }
 0x256   :  { %v2864_v37 = vpop.f32.mrf.mxu0 }
 0x257   :  { %v6213_v3 = vadd.f32 %v3033_v50, %v2861_v0  ;;  %v2865_v62 = vadd.f32 %v2864_v37, %v5873_v21  ;;  %v3037_v27 = vpop.f32.mrf.mxu1 }
 0x258   :  { %v2866_v1 = vpop.f32.mrf.mxu0 }
 0x259   :  { %v6216_v42 = vadd.f32 %v3037_v27, %v2865_v62  ;;  %v2867_v52 = vadd.f32 %v2866_v1, %v5880_v38  ;;  %v3039_v32 = vpop.f32.mrf.mxu1 }
 0x25a   :  { %v2868_v11 = vpop.f32.mrf.mxu0 }
 0x25b   :  { %v6219_v54 = vadd.f32 %v3039_v32, %v2867_v52  ;;  %v2869_v55 = vadd.f32 %v2868_v11, %v5882_v39  ;;  %v3041_v4 = vpop.f32.mrf.mxu1 }
 0x25c   :  { %v2870_v5 = vpop.f32.mrf.mxu0 }
 0x25d   :  { %v6222_v30 = vadd.f32 %v3041_v4, %v2869_v55  ;;  %v2871_v47 = vadd.f32 %v2870_v5, %v5887_v28  ;;  %v3043_v31 = vpop.f32.mrf.mxu1 }
 0x25e   :  { %v2874_v21 = vpop.f32.mrf.mxu0 }
 0x25f   :  { %v6225_v43 = vadd.f32 %v3043_v31, %v2871_v47  ;;  %v2875_v29 = vadd.f32 %v2874_v21, %v5899_v45  ;;  %v3047_v9 = vpop.f32.mrf.mxu1 }
 0x260   :  { %v2876_v38 = vpop.f32.mrf.mxu0 }
 0x261   :  { %v6228_v6 = vadd.f32 %v3047_v9, %v2875_v29  ;;  %v2877_v53 = vadd.f32 %v2876_v38, %v5906_v60  ;;  %v3049_v40 = vpop.f32.mrf.mxu1 }
 0x262   :  { %v2878_v39 = vpop.f32.mrf.mxu0 }
 0x263   :  { %v6231_v22 = vadd.f32 %v3049_v40, %v2877_v53  ;;  %v2879_v0 = vadd.f32 %v2878_v39, %v5908_v51  ;;  %v3051_v50 = vpop.f32.mrf.mxu1 }
 0x264   :  { %v2880_v28 = vpop.f32.mrf.mxu0 }
 0x265   :  { %v6234_v37 = vadd.f32 %v3051_v50, %v2879_v0  ;;  %v2881_v62 = vadd.f32 %v2880_v28, %v5913_v17  ;;  %v3053_v27 = vpop.f32.mrf.mxu1 }
 0x266   :  { %v2884_v45 = vpop.f32.mrf.mxu0 }
 0x267   :  { %v6237_v1 = vadd.f32 %v3053_v27, %v2881_v62  ;;  %v2885_v52 = vadd.f32 %v2884_v45, %v5925_v15  ;;  %v3057_v32 = vpop.f32.mrf.mxu1 }
 0x268   :  { %v2886_v60 = vpop.f32.mrf.mxu0 }
 0x269   :  { %v6240_v11 = vadd.f32 %v3057_v32, %v2885_v52  ;;  %v2887_v55 = vadd.f32 %v2886_v60, %v5932_v24  ;;  %v3059_v4 = vpop.f32.mrf.mxu1 }
 0x26a   :  { %v2888_v51 = vpop.f32.mrf.mxu0 }
 0x26b   :  { %v6243_v5 = vadd.f32 %v3059_v4, %v2887_v55  ;;  %v2889_v47 = vadd.f32 %v2888_v51, %v5934_v48  ;;  %v3061_v31 = vpop.f32.mrf.mxu1 }
 0x26c   :  { %v2890_v17 = vpop.f32.mrf.mxu0 }
 0x26d   :  { %v6246_v21 = vadd.f32 %v3061_v31, %v2889_v47  ;;  %v2891_v29 = vadd.f32 %v2890_v17, %v5939_v59  ;;  %v3063_v9 = vpop.f32.mrf.mxu1 }
 0x26e   :  { %v2894_v15 = vpop.f32.mrf.mxu0 }
 0x26f   :  { %v6249_v38 = vadd.f32 %v3063_v9, %v2891_v29  ;;  %v2895_v53 = vadd.f32 %v2894_v15, %v5951_v35  ;;  %v3067_v40 = vpop.f32.mrf.mxu1 }
 0x270   :  { %v2896_v24 = vpop.f32.mrf.mxu0 }
 0x271   :  { %v6252_v39 = vadd.f32 %v3067_v40, %v2895_v53  ;;  %v2897_v0 = vadd.f32 %v2896_v24, %v5958_v13  ;;  %v3069_v50 = vpop.f32.mrf.mxu1 }
 0x272   :  { %v2898_v48 = vpop.f32.mrf.mxu0 }
 0x273   :  { %v6255_v28 = vadd.f32 %v3069_v50, %v2897_v0  ;;  %v2899_v62 = vadd.f32 %v2898_v48, %v5960_v8  ;;  %v3071_v27 = vpop.f32.mrf.mxu1 }
 0x274   :  { %v2900_v59 = vpop.f32.mrf.mxu0 }
 0x275   :  { %v6258_v45 = vadd.f32 %v3071_v27, %v2899_v62  ;;  %v2901_v52 = vadd.f32 %v2900_v59, %v5965_v23  ;;  %v3073_v32 = vpop.f32.mrf.mxu1 }
 0x276   :  { %v2904_v35 = vpop.f32.mrf.mxu0 }
 0x277   :  { %v6261_v60 = vadd.f32 %v3073_v32, %v2901_v52  ;;  %v2905_v55 = vadd.f32 %v2904_v35, %v5977_v56  ;;  %v3077_v4 = vpop.f32.mrf.mxu1 }
 0x278   :  { %v2906_v13 = vpop.f32.mrf.mxu0 }
 0x279   :  { %v6264_v51 = vadd.f32 %v3077_v4, %v2905_v55  ;;  %v2907_v47 = vadd.f32 %v2906_v13, %v5984_v10  ;;  %v3079_v31 = vpop.f32.mrf.mxu1 }
 0x27a   :  { %v2908_v8 = vpop.f32.mrf.mxu0 }
 0x27b   :  { %v6267_v17 = vadd.f32 %v3079_v31, %v2907_v47  ;;  %v2909_v29 = vadd.f32 %v2908_v8, %v5986_v61  ;;  %v3081_v9 = vpop.f32.mrf.mxu1  ;;  %v6612_v47 = vld [vmem:[#allocation2_spill] sm:$0xff] }
 0x27c   :  { %v2910_v23 = vpop.f32.mrf.mxu0 }
 0x27d   :  { %v6270_v15 = vadd.f32 %v3081_v9, %v2909_v29  ;;  %v2911_v53 = vadd.f32 %v2910_v23, %v5991_v16  ;;  %v3083_v40 = vpop.f32.mrf.mxu1  ;;  %v6613_v9 = vld [vmem:[#allocation3_spill] sm:$0xff] }
 0x27e   :  { %v2914_v56 = vpop.f32.mrf.mxu0 }
 0x27f   :  { %v6273_v24 = vadd.f32 %v3083_v40, %v2911_v53  ;;  %v2915_v0 = vadd.f32 %v2914_v56, %v6003_v34  ;;  %v3087_v50 = vpop.f32.mrf.mxu1  ;;  %v6614_v56 = vld [vmem:[#allocation4_spill] sm:$0xff] }
 0x280   :  { %v2916_v10 = vpop.f32.mrf.mxu0 }
 0x281   :  { %v6276_v48 = vadd.f32 %v3087_v50, %v2915_v0  ;;  %v2917_v62 = vadd.f32 %v2916_v10, %v6010_v57  ;;  %v3089_v27 = vpop.f32.mrf.mxu1 }
 0x282   :  { %v2918_v61 = vpop.f32.mrf.mxu0 }
 0x283   :  { %v6279_v59 = vadd.f32 %v3089_v27, %v2917_v62  ;;  %v2919_v52 = vadd.f32 %v2918_v61, %v6012_v58  ;;  %v3091_v32 = vpop.f32.mrf.mxu1  ;;  %v6615_v62 = vld [vmem:[#allocation5_spill] sm:$0xff] }
 0x284   :  { %v2920_v16 = vpop.f32.mrf.mxu0 }
 0x285   :  { %v6282_v35 = vadd.f32 %v3091_v32, %v2919_v52  ;;  %v2921_v55 = vadd.f32 %v2920_v16, %v6017_v44  ;;  %v3093_v4 = vpop.f32.mrf.mxu1  ;;  %v6616_v16 = vld [vmem:[#allocation6_spill] sm:$0xff] }
 0x286   :  { %v2924_v34 = vpop.f32.mrf.mxu0 }
 0x287   :  { %v6285_v13 = vadd.f32 %v3093_v4, %v2921_v55  ;;  %v2925_v31 = vadd.f32 %v2924_v34, %v6612_v47  ;;  %v3097_v8 = vpop.f32.mrf.mxu1 }
 0x288   :  { %v2926_v57 = vpop.f32.mrf.mxu0 }
 0x289   :  { %v6288_v29 = vadd.f32 %v3097_v8, %v2925_v31  ;;  %v2927_v23 = vadd.f32 %v2926_v57, %v6613_v9  ;;  %v3099_v53 = vpop.f32.mrf.mxu1  ;;  %v6617_v31 = vld [vmem:[#allocation7_spill] sm:$0xff] }
 0x28a   :  { %v2928_v58 = vpop.f32.mrf.mxu0 }
 0x28b   :  { %v6291_v40 = vadd.f32 %v3099_v53, %v2927_v23  ;;  %v2929_v0 = vadd.f32 %v2928_v58, %v6614_v56  ;;  %v3101_v50 = vpop.f32.mrf.mxu1  ;;  %v6619_v53 = vld [vmem:[#allocation8_spill] sm:$0xff] }
 0x28c   :  { %v2930_v44 = vpop.f32.mrf.mxu0 }
 0x28d   :  { %v6294_v10 = vadd.f32 %v3101_v50, %v2929_v0  ;;  %v2931_v27 = vadd.f32 %v2930_v44, %v6615_v62  ;;  %v3103_v61 = vpop.f32.mrf.mxu1  ;;  %v6621_v44 = vld [vmem:[#allocation9_spill] sm:$0xff] }
 0x28e   :  { %v2934_v52 = vpop.f32.mrf.mxu0 }
 0x28f   :  { %v6297_v32 = vadd.f32 %v3103_v61, %v2931_v27  ;;  %v2935_v55 = vadd.f32 %v2934_v52, %v6616_v16  ;;  %v3107_v4 = vpop.f32.mrf.mxu1  ;;  %v6623_v16 = vld [vmem:[#allocation10_spill] sm:$0xff] }
 0x290   :  { %v2936_v34 = vpop.f32.mrf.mxu0 }
 0x291   :  { %v6300_v47 = vadd.f32 %v3107_v4, %v2935_v55  ;;  %v2937_v8 = vadd.f32 %v2936_v34, %v6617_v31  ;;  %v3109_v57 = vpop.f32.mrf.mxu1 }
 0x292   :  { %v2938_v9 = vpop.f32.mrf.mxu0 }
 0x293   :  { %v6303_v23 = vadd.f32 %v3109_v57, %v2937_v8  ;;  %v2939_v58 = vadd.f32 %v2938_v9, %v6619_v53  ;;  %v3111_v56 = vpop.f32.mrf.mxu1  ;;  %v6625_v8 = vld [vmem:[#allocation11_spill] sm:$0xff] }
 0x294   :  { %v2940_v0 = vpop.f32.mrf.mxu0 }
 0x295   :  { %6618 = vst [vmem:[#allocation2_spill] sm:$0xff] %v6303_v23  ;;  %v6306_v50 = vadd.f32 %v3111_v56, %v2939_v58  ;;  %v2941_v62 = vadd.f32 %v2940_v0, %v6621_v44  ;;  %v3113_v27 = vpop.f32.mrf.mxu1  ;;  %v6627_v58 = vld [vmem:[#allocation12_spill] sm:$0xff] }
 0x296   :  { %v2944_v61 = vpop.f32.mrf.mxu0 }
 0x297   :  { %6620 = vst [vmem:[#allocation3_spill] sm:$0xff] %v6306_v50  ;;  %v6309_v52 = vadd.f32 %v3113_v27, %v2941_v62  ;;  %v2945_v55 = vadd.f32 %v2944_v61, %v6623_v16  ;;  %v3117_v4 = vpop.f32.mrf.mxu1  ;;  %v6629_v62 = vld [vmem:[#allocation13_spill] sm:$0xff] }
 0x298   :  { %v2946_v34 = vpop.f32.mrf.mxu0 }
 0x299   :  { %6622 = vst [vmem:[#allocation4_spill] sm:$0xff] %v6309_v52  ;;  %v6312_v31 = vadd.f32 %v3117_v4, %v2945_v55  ;;  %v2947_v57 = vadd.f32 %v2946_v34, %v6625_v8  ;;  %v3119_v23 = vpop.f32.mrf.mxu1  ;;  %v6631_v55 = vld [vmem:[#allocation14_spill] sm:$0xff] }
 0x29a   :  { %v2948_v9 = vpop.f32.mrf.mxu0 }
 0x29b   :  { %6624 = vst [vmem:[#allocation5_spill] sm:$0xff] %v6312_v31  ;;  %v6315_v53 = vadd.f32 %v3119_v23, %v2947_v57  ;;  %v2949_v56 = vadd.f32 %v2948_v9, %v6627_v58  ;;  %v3121_v50 = vpop.f32.mrf.mxu1  ;;  %v6632_v23 = vld [vmem:[#allocation15_spill] sm:$0xff] }
 0x29c   :  { %v2950_v0 = vpop.f32.mrf.mxu0 }
 0x29d   :  { %6626 = vst [vmem:[#allocation6_spill] sm:$0xff] %v6315_v53  ;;  %v6318_v44 = vadd.f32 %v3121_v50, %v2949_v56  ;;  %v2951_v27 = vadd.f32 %v2950_v0, %v6629_v62  ;;  %v3123_v52 = vpop.f32.mrf.mxu1  ;;  %v6633_v50 = vld [vmem:[#allocation16_spill] sm:$0xff] }
 0x29e   :  { %v2954_v61 = vpop.f32.mrf.mxu0 }
 0x29f   :  { %6628 = vst [vmem:[#allocation7_spill] sm:$0xff] %v6318_v44  ;;  %v6321_v16 = vadd.f32 %v3123_v52, %v2951_v27  ;;  %v2955_v4 = vadd.f32 %v2954_v61, %v6631_v55  ;;  %v3127_v31 = vpop.f32.mrf.mxu1  ;;  %v6634_v52 = vld [vmem:[#allocation17_spill] sm:$0xff] }
 0x2a0   :  { %v2956_v34 = vpop.f32.mrf.mxu0 }
 0x2a1   :  { %6630 = vst [vmem:[#allocation8_spill] sm:$0xff] %v6321_v16  ;;  %v6324_v8 = vadd.f32 %v3127_v31, %v2955_v4  ;;  %v2957_v57 = vadd.f32 %v2956_v34, %v6632_v23  ;;  %v3129_v53 = vpop.f32.mrf.mxu1 }
 0x2a2   :  { %v2958_v9 = vpop.f32.mrf.mxu0 }
 0x2a3   :  { %v6327_v58 = vadd.f32 %v3129_v53, %v2957_v57  ;;  %v2959_v56 = vadd.f32 %v2958_v9, %v6633_v50  ;;  %v3131_v44 = vpop.f32.mrf.mxu1 }
 0x2a4   :  { %v2960_v0 = vpop.f32.mrf.mxu0 }
 0x2a5   :  { %v6330_v62 = vadd.f32 %v3131_v44, %v2959_v56  ;;  %v2961_v27 = vadd.f32 %v2960_v0, %v6634_v52  ;;  %v3133_v16 = vpop.f32.mrf.mxu1 }
 0x2a6   :  { %v3170_v61 = vpop.f32.mrf.mxu0 }
 0x2a7   :  { %v6333_v55 = vadd.f32 %v3133_v16, %v2961_v27  ;;  %v3171_v31 = vadd.f32 %v3170_v61, %v6137_v12  ;;  %v3343_v4 = vpop.f32.mrf.mxu1 }
 0x2a8   :  { %v3172_v34 = vpop.f32.mrf.mxu0 }
 0x2a9   :  { %v3344_v23 = vadd.f32 %v3343_v4, %v3171_v31  ;;  %v3173_v53 = vadd.f32 %v3172_v34, %v6142_v63  ;;  %v3345_v57 = vpop.f32.mrf.mxu1 }
 0x2aa   :  { %v3174_v9 = vpop.f32.mrf.mxu0 }
 0x2ab   :  { %3482 = vst [vmem:[%s6592_s5] sm:$0xff] %v3344_v23  ;;  %v3346_v44 = vadd.f32 %v3345_v57, %v3173_v53  ;;  %v3175_v50 = vadd.f32 %v3174_v9, %v6145_v18  ;;  %v3347_v56 = vpop.f32.mrf.mxu1 }
 0x2ac   :  { %v3176_v16 = vpop.f32.mrf.mxu0 }
 0x2ad   :  { %3484 = vst.msk [vmem:[%s6592_s5 + $0x8] sm:$0xff] %vm3483_vm4, %v3346_v44  ;;  %v3348_v12 = vadd.f32 %v3347_v56, %v3175_v50  ;;  %v3177_v63 = vadd.f32 %v3176_v16, %v6160_v41  ;;  %v3349_v0 = vpop.f32.mrf.mxu1 }
 0x2ae   :  { %v3180_v52 = vpop.f32.mrf.mxu0 }
 0x2af   :  { %3485 = vst [vmem:[%s6592_s5 + $0x10] sm:$0xff] %v3348_v12  ;;  %v3350_v27 = vadd.f32 %v3349_v0, %v3177_v63  ;;  %v3181_v61 = vadd.f32 %v3180_v52, %v6167_v26  ;;  %v3353_v18 = vpop.f32.mrf.mxu1 }
 0x2b0   :  { %v3182_v31 = vpop.f32.mrf.mxu0 }
 0x2b1   :  { %3486 = vst.msk [vmem:[%s6592_s5 + $0x18] sm:$0xff] %vm3483_vm4, %v3350_v27  ;;  %v3354_v4 = vadd.f32 %v3353_v18, %v3181_v61  ;;  %v3183_v34 = vadd.f32 %v3182_v31, %v6172_v33  ;;  %v3355_v41 = vpop.f32.mrf.mxu1 }
 0x2b2   :  { %v3184_v23 = vpop.f32.mrf.mxu0 }
 0x2b3   :  { %3487 = vst [vmem:[%s6592_s5 + $0x20] sm:$0xff] %v3354_v4  ;;  %v3356_v53 = vadd.f32 %v3355_v41, %v3183_v34  ;;  %v3185_v57 = vadd.f32 %v3184_v23, %v6175_v25  ;;  %v3357_v26 = vpop.f32.mrf.mxu1 }
 0x2b4   :  { %v3186_v9 = vpop.f32.mrf.mxu0 }
 0x2b5   :  { %3488 = vst.msk [vmem:[%s6592_s5 + $0x28] sm:$0xff] %vm3483_vm4, %v3356_v53  ;;  %v3358_v44 = vadd.f32 %v3357_v26, %v3185_v57  ;;  %v3187_v50 = vadd.f32 %v3186_v9, %v6184_v46  ;;  %v3359_v33 = vpop.f32.mrf.mxu1 }
 0x2b6   :  { %v3190_v56 = vpop.f32.mrf.mxu0 }
 0x2b7   :  { %3489 = vst [vmem:[%s6592_s5 + $0x30] sm:$0xff] %v3358_v44  ;;  %v3360_v16 = vadd.f32 %v3359_v33, %v3187_v50  ;;  %v3191_v12 = vadd.f32 %v3190_v56, %v6189_v36  ;;  %v3363_v25 = vpop.f32.mrf.mxu1 }
 0x2b8   :  { %v3192_v63 = vpop.f32.mrf.mxu0 }
 0x2b9   :  { %3490 = vst.msk [vmem:[%s6592_s5 + $0x38] sm:$0xff] %vm3483_vm4, %v3360_v16  ;;  %v3364_v0 = vadd.f32 %v3363_v25, %v3191_v12  ;;  %v3193_v52 = vadd.f32 %v3192_v63, %v6194_v20  ;;  %v3365_v46 = vpop.f32.mrf.mxu1 }
 0x2ba   :  { %v3194_v27 = vpop.f32.mrf.mxu0 }
 0x2bb   :  { %3491 = vst [vmem:[%s6592_s5 + $0x40] sm:$0xff] %v3364_v0  ;;  %v3366_v61 = vadd.f32 %v3365_v46, %v3193_v52  ;;  %v3195_v18 = vadd.f32 %v3194_v27, %v6197_v2  ;;  %v3367_v36 = vpop.f32.mrf.mxu1 }
 0x2bc   :  { %v3196_v31 = vpop.f32.mrf.mxu0 }
 0x2bd   :  { %3492 = vst.msk [vmem:[%s6592_s5 + $0x48] sm:$0xff] %vm3483_vm4, %v3366_v61  ;;  %v3368_v4 = vadd.f32 %v3367_v36, %v3195_v18  ;;  %v3197_v34 = vadd.f32 %v3196_v31, %v6200_v14  ;;  %v3369_v20 = vpop.f32.mrf.mxu1 }
 0x2be   :  { %v3200_v41 = vpop.f32.mrf.mxu0 }
 0x2bf   :  { %3493 = vst [vmem:[%s6592_s5 + $0x50] sm:$0xff] %v3368_v4  ;;  %v3370_v23 = vadd.f32 %v3369_v20, %v3197_v34  ;;  %v3201_v53 = vadd.f32 %v3200_v41, %v6204_v49  ;;  %v3373_v2 = vpop.f32.mrf.mxu1 }
 0x2c0   :  { %v3202_v57 = vpop.f32.mrf.mxu0 }
 0x2c1   :  { %3494 = vst.msk [vmem:[%s6592_s5 + $0x58] sm:$0xff] %vm3483_vm4, %v3370_v23  ;;  %v3374_v26 = vadd.f32 %v3373_v2, %v3201_v53  ;;  %v3203_v9 = vadd.f32 %v3202_v57, %v6207_v19  ;;  %v3375_v14 = vpop.f32.mrf.mxu1 }
 0x2c2   :  { %v3204_v44 = vpop.f32.mrf.mxu0 }
 0x2c3   :  { %3495 = vst [vmem:[%s6592_s5 + $0x60] sm:$0xff] %v3374_v26  ;;  %v3376_v50 = vadd.f32 %v3375_v14, %v3203_v9  ;;  %v3205_v33 = vadd.f32 %v3204_v44, %v6210_v7  ;;  %v3377_v49 = vpop.f32.mrf.mxu1 }
 0x2c4   :  { %v3206_v56 = vpop.f32.mrf.mxu0 }
 0x2c5   :  { %3496 = vst.msk [vmem:[%s6592_s5 + $0x68] sm:$0xff] %vm3483_vm4, %v3376_v50  ;;  %v3378_v16 = vadd.f32 %v3377_v49, %v3205_v33  ;;  %v3207_v12 = vadd.f32 %v3206_v56, %v6213_v3  ;;  %v3379_v19 = vpop.f32.mrf.mxu1 }
 0x2c6   :  { %v3210_v25 = vpop.f32.mrf.mxu0 }
 0x2c7   :  { %3497 = vst [vmem:[%s6592_s5 + $0x70] sm:$0xff] %v3378_v16  ;;  %v3380_v63 = vadd.f32 %v3379_v19, %v3207_v12  ;;  %v3211_v0 = vadd.f32 %v3210_v25, %v6216_v42  ;;  %v3383_v7 = vpop.f32.mrf.mxu1 }
 0x2c8   :  { %v3212_v52 = vpop.f32.mrf.mxu0 }
 0x2c9   :  { %3498 = vst.msk [vmem:[%s6592_s5 + $0x78] sm:$0xff] %vm3483_vm4, %v3380_v63  ;;  %v3384_v46 = vadd.f32 %v3383_v7, %v3211_v0  ;;  %v3213_v27 = vadd.f32 %v3212_v52, %v6219_v54  ;;  %v3385_v3 = vpop.f32.mrf.mxu1 }
 0x2ca   :  { %v3214_v61 = vpop.f32.mrf.mxu0 }
 0x2cb   :  { %3499 = vst [vmem:[%s6592_s5 + $0x80] sm:$0xff] %v3384_v46  ;;  %v3386_v18 = vadd.f32 %v3385_v3, %v3213_v27  ;;  %v3215_v36 = vadd.f32 %v3214_v61, %v6222_v30  ;;  %v3387_v42 = vpop.f32.mrf.mxu1 }
 0x2cc   :  { %v3216_v31 = vpop.f32.mrf.mxu0 }
 0x2cd   :  { %3500 = vst.msk [vmem:[%s6592_s5 + $0x88] sm:$0xff] %vm3483_vm4, %v3386_v18  ;;  %v3388_v4 = vadd.f32 %v3387_v42, %v3215_v36  ;;  %v3217_v34 = vadd.f32 %v3216_v31, %v6225_v43  ;;  %v3389_v54 = vpop.f32.mrf.mxu1 }
 0x2ce   :  { %v3220_v20 = vpop.f32.mrf.mxu0 }
 0x2cf   :  { %3501 = vst [vmem:[%s6592_s5 + $0x90] sm:$0xff] %v3388_v4  ;;  %v3390_v41 = vadd.f32 %v3389_v54, %v3217_v34  ;;  %v3221_v23 = vadd.f32 %v3220_v20, %v6228_v6  ;;  %v3393_v30 = vpop.f32.mrf.mxu1 }
 0x2d0   :  { %v3222_v53 = vpop.f32.mrf.mxu0 }
 0x2d1   :  { %3502 = vst.msk [vmem:[%s6592_s5 + $0x98] sm:$0xff] %vm3483_vm4, %v3390_v41  ;;  %v3394_v2 = vadd.f32 %v3393_v30, %v3221_v23  ;;  %v3223_v57 = vadd.f32 %v3222_v53, %v6231_v22  ;;  %v3395_v43 = vpop.f32.mrf.mxu1 }
 0x2d2   :  { %v3224_v26 = vpop.f32.mrf.mxu0 }
 0x2d3   :  { %3503 = vst [vmem:[%s6592_s5 + $0xa0] sm:$0xff] %v3394_v2  ;;  %v3396_v9 = vadd.f32 %v3395_v43, %v3223_v57  ;;  %v3225_v14 = vadd.f32 %v3224_v26, %v6234_v37  ;;  %v3397_v6 = vpop.f32.mrf.mxu1 }
 0x2d4   :  { %v3226_v44 = vpop.f32.mrf.mxu0 }
 0x2d5   :  { %3504 = vst.msk [vmem:[%s6592_s5 + $0xa8] sm:$0xff] %vm3483_vm4, %v3396_v9  ;;  %v3398_v50 = vadd.f32 %v3397_v6, %v3225_v14  ;;  %v3227_v33 = vadd.f32 %v3226_v44, %v6237_v1  ;;  %v3399_v22 = vpop.f32.mrf.mxu1 }
 0x2d6   :  { %v3230_v49 = vpop.f32.mrf.mxu0 }
 0x2d7   :  { %3505 = vst [vmem:[%s6592_s5 + $0xb0] sm:$0xff] %v3398_v50  ;;  %v3400_v56 = vadd.f32 %v3399_v22, %v3227_v33  ;;  %v3231_v16 = vadd.f32 %v3230_v49, %v6240_v11  ;;  %v3403_v37 = vpop.f32.mrf.mxu1 }
 0x2d8   :  { %v3232_v12 = vpop.f32.mrf.mxu0 }
 0x2d9   :  { %3506 = vst.msk [vmem:[%s6592_s5 + $0xb8] sm:$0xff] %vm3483_vm4, %v3400_v56  ;;  %v3404_v19 = vadd.f32 %v3403_v37, %v3231_v16  ;;  %v3233_v25 = vadd.f32 %v3232_v12, %v6243_v5  ;;  %v3405_v1 = vpop.f32.mrf.mxu1 }
 0x2da   :  { %v3234_v63 = vpop.f32.mrf.mxu0 }
 0x2db   :  { %3507 = vst [vmem:[%s6592_s5 + $0xc0] sm:$0xff] %v3404_v19  ;;  %v3406_v0 = vadd.f32 %v3405_v1, %v3233_v25  ;;  %v3235_v7 = vadd.f32 %v3234_v63, %v6246_v21  ;;  %v3407_v11 = vpop.f32.mrf.mxu1 }
 0x2dc   :  { %v3236_v52 = vpop.f32.mrf.mxu0 }
 0x2dd   :  { %3508 = vst.msk [vmem:[%s6592_s5 + $0xc8] sm:$0xff] %vm3483_vm4, %v3406_v0  ;;  %v3408_v46 = vadd.f32 %v3407_v11, %v3235_v7  ;;  %v3237_v27 = vadd.f32 %v3236_v52, %v6249_v38  ;;  %v3409_v5 = vpop.f32.mrf.mxu1 }
 0x2de   :  { %v3240_v3 = vpop.f32.mrf.mxu0 }
 0x2df   :  { %3509 = vst [vmem:[%s6592_s5 + $0xd0] sm:$0xff] %v3408_v46  ;;  %v3410_v61 = vadd.f32 %v3409_v5, %v3237_v27  ;;  %v3241_v18 = vadd.f32 %v3240_v3, %v6252_v39  ;;  %v3413_v21 = vpop.f32.mrf.mxu1 }
 0x2e0   :  { %v3242_v36 = vpop.f32.mrf.mxu0 }
 0x2e1   :  { %3510 = vst.msk [vmem:[%s6592_s5 + $0xd8] sm:$0xff] %vm3483_vm4, %v3410_v61  ;;  %v3414_v42 = vadd.f32 %v3413_v21, %v3241_v18  ;;  %v3243_v31 = vadd.f32 %v3242_v36, %v6255_v28  ;;  %v3415_v38 = vpop.f32.mrf.mxu1 }
 0x2e2   :  { %v3244_v4 = vpop.f32.mrf.mxu0 }
 0x2e3   :  { %3511 = vst [vmem:[%s6592_s5 + $0xe0] sm:$0xff] %v3414_v42  ;;  %v3416_v34 = vadd.f32 %v3415_v38, %v3243_v31  ;;  %v3245_v54 = vadd.f32 %v3244_v4, %v6258_v45  ;;  %v3417_v39 = vpop.f32.mrf.mxu1 }
 0x2e4   :  { %v3246_v20 = vpop.f32.mrf.mxu0 }
 0x2e5   :  { %3512 = vst.msk [vmem:[%s6592_s5 + $0xe8] sm:$0xff] %vm3483_vm4, %v3416_v34  ;;  %v3418_v41 = vadd.f32 %v3417_v39, %v3245_v54  ;;  %v3247_v23 = vadd.f32 %v3246_v20, %v6261_v60  ;;  %v3419_v28 = vpop.f32.mrf.mxu1  ;;  %v6635_v20 = vld [vmem:[#allocation2_spill] sm:$0xff] }
 0x2e6   :  { %v3250_v30 = vpop.f32.mrf.mxu0 }
 0x2e7   :  { %3513 = vst [vmem:[%s6592_s5 + $0xf0] sm:$0xff] %v3418_v41  ;;  %v3420_v53 = vadd.f32 %v3419_v28, %v3247_v23  ;;  %v3251_v2 = vadd.f32 %v3250_v30, %v6264_v51  ;;  %v3423_v45 = vpop.f32.mrf.mxu1  ;;  %v6636_v30 = vld [vmem:[#allocation3_spill] sm:$0xff] }
 0x2e8   :  { %v3252_v57 = vpop.f32.mrf.mxu0 }
 0x2e9   :  { %3514 = vst.msk [vmem:[%s6592_s5 + $0xf8] sm:$0xff] %vm3483_vm4, %v3420_v53  ;;  %v3424_v43 = vadd.f32 %v3423_v45, %v3251_v2  ;;  %v3253_v26 = vadd.f32 %v3252_v57, %v6267_v17  ;;  %v3425_v60 = vpop.f32.mrf.mxu1  ;;  %v6637_v57 = vld [vmem:[#allocation4_spill] sm:$0xff] }
 0x2ea   :  { %v3254_v9 = vpop.f32.mrf.mxu0 }
 0x2eb   :  { %3515 = vst [vmem:[%s6592_s5 + $0x100] sm:$0xff] %v3424_v43  ;;  %v3426_v14 = vadd.f32 %v3425_v60, %v3253_v26  ;;  %v3255_v6 = vadd.f32 %v3254_v9, %v6270_v15  ;;  %v3427_v51 = vpop.f32.mrf.mxu1 }
 0x2ec   :  { %v3256_v44 = vpop.f32.mrf.mxu0 }
 0x2ed   :  { %3516 = vst.msk [vmem:[%s6592_s5 + $0x108] sm:$0xff] %vm3483_vm4, %v3426_v14  ;;  %v3428_v50 = vadd.f32 %v3427_v51, %v3255_v6  ;;  %v3257_v33 = vadd.f32 %v3256_v44, %v6273_v24  ;;  %v3429_v17 = vpop.f32.mrf.mxu1  ;;  %v6638_v14 = vld [vmem:[#allocation5_spill] sm:$0xff] }
 0x2ee   :  { %v3260_v22 = vpop.f32.mrf.mxu0 }
 0x2ef   :  { %3517 = vst [vmem:[%s6592_s5 + $0x110] sm:$0xff] %v3428_v50  ;;  %v3430_v49 = vadd.f32 %v3429_v17, %v3257_v33  ;;  %v3261_v56 = vadd.f32 %v3260_v22, %v6276_v48  ;;  %v3433_v15 = vpop.f32.mrf.mxu1  ;;  %v6639_v33 = vld [vmem:[#allocation6_spill] sm:$0xff] }
 0x2f0   :  { %v3262_v16 = vpop.f32.mrf.mxu0 }
 0x2f1   :  { %3518 = vst.msk [vmem:[%s6592_s5 + $0x118] sm:$0xff] %vm3483_vm4, %v3430_v49  ;;  %v3434_v37 = vadd.f32 %v3433_v15, %v3261_v56  ;;  %v3263_v12 = vadd.f32 %v3262_v16, %v6279_v59  ;;  %v3435_v24 = vpop.f32.mrf.mxu1  ;;  %v6640_v15 = vld [vmem:[#allocation7_spill] sm:$0xff] }
 0x2f2   :  { %v3264_v19 = vpop.f32.mrf.mxu0 }
 0x2f3   :  { %3519 = vst [vmem:[%s6592_s5 + $0x120] sm:$0xff] %v3434_v37  ;;  %v3436_v25 = vadd.f32 %v3435_v24, %v3263_v12  ;;  %v3265_v1 = vadd.f32 %v3264_v19, %v6282_v35  ;;  %v3437_v48 = vpop.f32.mrf.mxu1  ;;  %v6641_v19 = vld [vmem:[#allocation8_spill] sm:$0xff] }
 0x2f4   :  { %v3266_v63 = vpop.f32.mrf.mxu0 }
 0x2f5   :  { %3520 = vst.msk [vmem:[%s6592_s5 + $0x128] sm:$0xff] %vm3483_vm4, %v3436_v25  ;;  %v3438_v0 = vadd.f32 %v3437_v48, %v3265_v1  ;;  %v3267_v7 = vadd.f32 %v3266_v63, %v6285_v13  ;;  %v3439_v59 = vpop.f32.mrf.mxu1 }
 0x2f6   :  { %v3270_v11 = vpop.f32.mrf.mxu0 }
 0x2f7   :  { %3521 = vst [vmem:[%s6592_s5 + $0x130] sm:$0xff] %v3438_v0  ;;  %v3440_v52 = vadd.f32 %v3439_v59, %v3267_v7  ;;  %v3271_v46 = vadd.f32 %v3270_v11, %v6288_v29  ;;  %v3443_v35 = vpop.f32.mrf.mxu1 }
 0x2f8   :  { %v3272_v27 = vpop.f32.mrf.mxu0 }
 0x2f9   :  { %3522 = vst.msk [vmem:[%s6592_s5 + $0x138] sm:$0xff] %vm3483_vm4, %v3440_v52  ;;  %v3444_v5 = vadd.f32 %v3443_v35, %v3271_v46  ;;  %v3273_v3 = vadd.f32 %v3272_v27, %v6291_v40  ;;  %v3445_v13 = vpop.f32.mrf.mxu1 }
 0x2fa   :  { %v3274_v61 = vpop.f32.mrf.mxu0 }
 0x2fb   :  { %3523 = vst [vmem:[%s6592_s5 + $0x140] sm:$0xff] %v3444_v5  ;;  %v3446_v18 = vadd.f32 %v3445_v13, %v3273_v3  ;;  %v3275_v21 = vadd.f32 %v3274_v61, %v6294_v10  ;;  %v3447_v29 = vpop.f32.mrf.mxu1 }
 0x2fc   :  { %v3276_v36 = vpop.f32.mrf.mxu0 }
 0x2fd   :  { %3524 = vst.msk [vmem:[%s6592_s5 + $0x148] sm:$0xff] %vm3483_vm4, %v3446_v18  ;;  %v3448_v42 = vadd.f32 %v3447_v29, %v3275_v21  ;;  %v3277_v31 = vadd.f32 %v3276_v36, %v6297_v32  ;;  %v3449_v40 = vpop.f32.mrf.mxu1 }
 0x2fe   :  { %v3280_v38 = vpop.f32.mrf.mxu0 }
 0x2ff   :  { %3525 = vst [vmem:[%s6592_s5 + $0x150] sm:$0xff] %v3448_v42  ;;  %v3450_v4 = vadd.f32 %v3449_v40, %v3277_v31  ;;  %v3281_v34 = vadd.f32 %v3280_v38, %v6300_v47  ;;  %v3453_v10 = vpop.f32.mrf.mxu1 }
 0x300   :  { %v3282_v54 = vpop.f32.mrf.mxu0 }
 0x301   :  { %3526 = vst.msk [vmem:[%s6592_s5 + $0x158] sm:$0xff] %vm3483_vm4, %v3450_v4  ;;  %v3454_v39 = vadd.f32 %v3453_v10, %v3281_v34  ;;  %v3283_v41 = vadd.f32 %v3282_v54, %v6635_v20  ;;  %v3455_v32 = vpop.f32.mrf.mxu1 }
 0x302   :  { %v3284_v23 = vpop.f32.mrf.mxu0 }
 0x303   :  { %3527 = vst [vmem:[%s6592_s5 + $0x160] sm:$0xff] %v3454_v39  ;;  %v3456_v28 = vadd.f32 %v3455_v32, %v3283_v41  ;;  %v3285_v53 = vadd.f32 %v3284_v23, %v6636_v30  ;;  %v3457_v47 = vpop.f32.mrf.mxu1 }
 0x304   :  { %v3286_v2 = vpop.f32.mrf.mxu0 }
 0x305   :  { %3528 = vst.msk [vmem:[%s6592_s5 + $0x168] sm:$0xff] %vm3483_vm4, %v3456_v28  ;;  %v3458_v45 = vadd.f32 %v3457_v47, %v3285_v53  ;;  %v3287_v43 = vadd.f32 %v3286_v2, %v6637_v57  ;;  %v3459_v26 = vpop.f32.mrf.mxu1 }
 0x306   :  { %v3290_v60 = vpop.f32.mrf.mxu0 }
 0x307   :  { %3529 = vst [vmem:[%s6592_s5 + $0x170] sm:$0xff] %v3458_v45  ;;  %v3460_v9 = vadd.f32 %v3459_v26, %v3287_v43  ;;  %v3291_v6 = vadd.f32 %v3290_v60, %v6638_v14  ;;  %v3463_v51 = vpop.f32.mrf.mxu1 }
 0x308   :  { %v3292_v44 = vpop.f32.mrf.mxu0 }
 0x309   :  { %3530 = vst.msk [vmem:[%s6592_s5 + $0x178] sm:$0xff] %vm3483_vm4, %v3460_v9  ;;  %v3464_v50 = vadd.f32 %v3463_v51, %v3291_v6  ;;  %v3293_v17 = vadd.f32 %v3292_v44, %v6639_v33  ;;  %v3465_v22 = vpop.f32.mrf.mxu1 }
 0x30a   :  { %v3294_v49 = vpop.f32.mrf.mxu0 }
 0x30b   :  { %3531 = vst [vmem:[%s6592_s5 + $0x180] sm:$0xff] %v3464_v50  ;;  %v3466_v56 = vadd.f32 %v3465_v22, %v3293_v17  ;;  %v3295_v16 = vadd.f32 %v3294_v49, %v6640_v15  ;;  %v3467_v37 = vpop.f32.mrf.mxu1 }
 0x30c   :  { %v3296_v12 = vpop.f32.mrf.mxu0 }
 0x30d   :  { %3532 = vst.msk [vmem:[%s6592_s5 + $0x188] sm:$0xff] %vm3483_vm4, %v3466_v56  ;;  %v3468_v24 = vadd.f32 %v3467_v37, %v3295_v16  ;;  %v3297_v25 = vadd.f32 %v3296_v12, %v6641_v19  ;;  %v3469_v1 = vpop.f32.mrf.mxu1 }
 0x30e   :  { %v3300_v48 = vpop.f32.mrf.mxu0 }
 0x30f   :  { %3533 = vst [vmem:[%s6592_s5 + $0x190] sm:$0xff] %v3468_v24  ;;  %v3470_v63 = vadd.f32 %v3469_v1, %v3297_v25  ;;  %v3301_v0 = vadd.f32 %v3300_v48, %v6324_v8  ;;  %v3473_v7 = vpop.f32.mrf.mxu1 }
 0x310   :  { %v3302_v59 = vpop.f32.mrf.mxu0 }
 0x311   :  { %3534 = vst.msk [vmem:[%s6592_s5 + $0x198] sm:$0xff] %vm3483_vm4, %v3470_v63  ;;  %v3474_v11 = vadd.f32 %v3473_v7, %v3301_v0  ;;  %v3303_v52 = vadd.f32 %v3302_v59, %v6327_v58  ;;  %v3475_v46 = vpop.f32.mrf.mxu1 }
 0x312   :  { %v3304_v35 = vpop.f32.mrf.mxu0 }
 0x313   :  { %3535 = vst [vmem:[%s6592_s5 + $0x1a0] sm:$0xff] %v3474_v11  ;;  %v3476_v27 = vadd.f32 %v3475_v46, %v3303_v52  ;;  %v3305_v5 = vadd.f32 %v3304_v35, %v6330_v62  ;;  %v3477_v8 = vpop.f32.mrf.mxu1 }
 0x314   :  { %v3306_v3 = vpop.f32.mrf.mxu0 }
 0x315   :  { %3536 = vst.msk [vmem:[%s6592_s5 + $0x1a8] sm:$0xff] %vm3483_vm4, %v3476_v27  ;;  %v3478_v13 = vadd.f32 %v3477_v8, %v3305_v5  ;;  %v3307_v61 = vadd.f32 %v3306_v3, %v6333_v55  ;;  %v3479_v58 = vpop.f32.mrf.mxu1 }
 0x317   :  { %3537 = vst [vmem:[%s6592_s5 + $0x1b0] sm:$0xff] %v3478_v13  ;;  %v3480_v18 = vadd.f32 %v3479_v58, %v3307_v61 }
 0x319   :  { %3538 = vst.msk [vmem:[%s6592_s5 + $0x1b8] sm:$0xff] %vm3483_vm4, %v3480_v18 }

</bundles_post_ra>
